<compile_context>
chip_gen: v7x
topology: tpu7x:2x2x1
jax: 0.10.0
libtpu: 0.0.40
codegen_flags: <defaults>
</compile_context>

<pallas_src>
import math
import jax
import jax.numpy as jnp
from jax import lax
from jax.experimental import pallas as pl

# ----------------------------- tiny ViT config -------------------------------
B, C, IMG, PATCH = 2, 3, 16, 4
GRIDS = IMG // PATCH
N = GRIDS * GRIDS            # 16 patch tokens
S = N + 1                    # + cls token = 17 real tokens
SP = 24                      # padded sequence (multiple of 8 sublanes)
D = 32                       # embed dim
HEADS = 2
HD = D // HEADS              # 16
DH = 4 * D                   # MLP hidden dim (= 128)
DEPTH = 2                    # number of transformer blocks
LN_EPS = 1e-6
CPP = C * PATCH * PATCH      # 48 features per im2col patch row


def _layer_norm(v, w, b):
    mu = jnp.mean(v, axis=-1, keepdims=True)
    var = jnp.mean(jnp.square(v - mu), axis=-1, keepdims=True)
    return (v - mu) * lax.rsqrt(var + LN_EPS) * w + b


def _bf16(x):
    return x.astype(jnp.bfloat16)


# --------------------------------- kernel -------------------------------------
def fused_vit_kernel(patches_ref, glob_ref, misc_ref,
                     pw_ref, wqkv_ref, wo_ref, w1_ref, w2_ref,
                     layers_ref, feat_ref):
    # packed global params: rows [0:SP] = per-row sequence bias
    # (pos_embed + patch_bias for tokens, cls_token + pos_embed[0] for the cls
    # row, zeros for pad rows), row SP = norm_w, row SP+1 = norm_b.
    glob = glob_ref[...]                                   # (SP+2, D) f32
    seq_bias = glob[0:SP, :]
    norm_w = glob[SP:SP + 1, :]
    norm_b = glob[SP + 1:SP + 2, :]

    # ---- patch embedding: (B*N, CPP) @ (CPP, D) ----
    tok = jnp.dot(_bf16(patches_ref[...]), pw_ref[...],
                  preferred_element_type=jnp.float32)      # (B*N, D) f32

    # ---- assemble [tokens | cls | pad] in registers (no scratch) ----
    x = jnp.concatenate(
        [tok.reshape(B, N, D),
         jnp.zeros((B, SP - N, D), jnp.float32)], axis=1)  # aligned concat
    x2 = (x + seq_bias[None]).reshape(B * SP, D)           # (B*SP, D) f32

    # real keys are rows 0..S-1 ([tokens | cls]); pad keys masked out
    key_valid = lax.broadcasted_iota(jnp.int32, (1, 1, SP), 2) < S

    for l in range(DEPTH):                                 # static unroll
        misc = misc_ref[l]                                 # (4, 4D) f32
        ln1w, ln1b = misc[0:1, 0:D], misc[0:1, D:2 * D]
        ln2w, ln2b = misc[0:1, 2 * D:3 * D], misc[0:1, 3 * D:4 * D]
        b_qkv = misc[1:2, 0:3 * D]
        b_o = misc[1:2, 3 * D:4 * D]
        b_fc1 = misc[2:3, :]
        b_fc2 = misc[3:4, 0:D]

        # ------------------------------ attention -----------------------------
        h = _layer_norm(x2, ln1w, ln1b)
        qkv = jnp.dot(_bf16(h), wqkv_ref[l],
                      preferred_element_type=jnp.float32) + b_qkv   # (B*SP, 3D)
        qkv_b = _bf16(qkv)
        q = qkv_b[:, 0 * D:1 * D].reshape(B, SP, D)
        k = qkv_b[:, 1 * D:2 * D].reshape(B, SP, D)
        v = qkv_b[:, 2 * D:3 * D].reshape(B, SP, D)

        # fold heads into the dot_general batch dim: (B*HEADS, SP, HD)
        qh = jnp.concatenate([q[:, :, hh * HD:(hh + 1) * HD] for hh in range(HEADS)], 0)
        kh = jnp.concatenate([k[:, :, hh * HD:(hh + 1) * HD] for hh in range(HEADS)], 0)
        vh = jnp.concatenate([v[:, :, hh * HD:(hh + 1) * HD] for hh in range(HEADS)], 0)

        # scores; the 1/sqrt(HD) scale is folded into w_qkv/b_qkv at pack time
        s = lax.dot_general(qh, kh, (((2,), (2,)), ((0,), (0,))),
                            preferred_element_type=jnp.float32)     # (B*H, SP, SP)
        s = jnp.where(key_valid, s, -1e30)
        s = s - jnp.max(s, axis=-1, keepdims=True)
        p = jnp.exp(s)
        p = p * pl.reciprocal(jnp.sum(p, axis=-1, keepdims=True), approx=True)
        oh = lax.dot_general(_bf16(p), vh, (((2,), (1,)), ((0,), (0,))),
                             preferred_element_type=jnp.float32)    # (B*H, SP, HD)

        # merge heads along lanes, one output projection, bias added once
        o = jnp.concatenate([oh[hh * B:(hh + 1) * B] for hh in range(HEADS)],
                            axis=-1)                                # (B, SP, D)
        x2 = x2 + (jnp.dot(_bf16(o.reshape(B * SP, D)), wo_ref[l],
                           preferred_element_type=jnp.float32) + b_o)

        # -------------------------------- MLP ---------------------------------
        h2 = _layer_norm(x2, ln2w, ln2b)
        h2 = jnp.dot(_bf16(h2), w1_ref[l],
                     preferred_element_type=jnp.float32) + b_fc1
        # TODO(synk): timm's nn.GELU() is the exact erf form; the tanh
        # approximation is used for guaranteed Mosaic lowering (~1e-3 rel diff).
        h2 = jax.nn.gelu(h2, approximate=True)
        x2 = x2 + (jnp.dot(_bf16(h2), w2_ref[l],
                           preferred_element_type=jnp.float32) + b_fc2)

        # ---- per-layer epilogue: final norm on real patch tokens (cls dropped)
        tokens = x2.reshape(B, SP, D)[:, 0:N, :]            # aligned rows 0..N-1
        normed = _layer_norm(tokens, norm_w, norm_b)
        layers_ref[l] = normed.astype(layers_ref.dtype)
        if l == DEPTH - 1:                                  # pool only last layer
            feat_ref[...] = jnp.mean(normed, axis=1).astype(feat_ref.dtype)


# ------------------------------ pallas wrapper ---------------------------------
def _fused_forward(patches, pk):
    return pl.pallas_call(
        fused_vit_kernel,
        out_shape=(jax.ShapeDtypeStruct((DEPTH, B, N, D), jnp.float32),
                   jax.ShapeDtypeStruct((B, D), jnp.float32)),
    )(patches, pk['glob'], pk['misc'], pk['patch_w'],
      pk['w_qkv'], pk['w_o'], pk['w_fc1'], pk['w_fc2'])


# --------------------------------- params --------------------------------------
def init_params(key):
    scale = 0.02
    ks = jax.random.split(key, 4)

    def nrm(k, shape):
        return scale * jax.random.normal(k, shape, jnp.float32)

    bkeys = jax.random.split(ks[3], DEPTH * 4)

    def stack(kidx, shape):
        return jnp.stack([nrm(bkeys[l * 4 + kidx], shape) for l in range(DEPTH)])

    return {
        'patch_w': nrm(ks[0], (CPP, D)),
        'patch_b': jnp.zeros((1, D), jnp.float32),
        'cls_token': nrm(ks[1], (1, D)),
        'pos_embed': nrm(ks[2], (S, D)),
        'norm_w': jnp.ones((1, D), jnp.float32),
        'norm_b': jnp.zeros((1, D), jnp.float32),
        'blocks': {
            'ln1_w': jnp.ones((DEPTH, 1, D), jnp.float32),
            'ln1_b': jnp.zeros((DEPTH, 1, D), jnp.float32),
            'w_qkv': stack(0, (D, 3 * D)),
            'b_qkv': jnp.zeros((DEPTH, 1, 3 * D), jnp.float32),
            'w_o': stack(1, (D, D)),
            'b_o': jnp.zeros((DEPTH, 1, D), jnp.float32),
            'ln2_w': jnp.ones((DEPTH, 1, D), jnp.float32),
            'ln2_b': jnp.zeros((DEPTH, 1, D), jnp.float32),
            'w_fc1': stack(2, (D, DH)),
            'b_fc1': jnp.zeros((DEPTH, 1, DH), jnp.float32),
            'w_fc2': stack(3, (DH, D)),
            'b_fc2': jnp.zeros((DEPTH, 1, D), jnp.float32),
        },
    }


def pack_params(p):
    """One-time packing of logical params into the kernel's 8 inputs."""
    blk = p['blocks']
    qscale = 1.0 / math.sqrt(HD)        # 0.25 -> exact in bf16

    # fold the softmax scale into the q columns of the qkv projection
    w_qkv = blk['w_qkv'].at[:, :, 0:D].multiply(qscale)
    b_qkv = blk['b_qkv'].at[:, :, 0:D].multiply(qscale)

    # sequence bias in [tokens | cls | pad] order; patch bias folded in
    seq_bias = jnp.concatenate([
        p['pos_embed'][1:S] + p['patch_b'],                 # (N, D)
        p['cls_token'] + p['pos_embed'][0:1],               # (1, D)
        jnp.zeros((SP - S, D), jnp.float32)], axis=0)       # (SP, D)
    glob = jnp.concatenate([seq_bias, p['norm_w'], p['norm_b']], axis=0)

    # per-block small f32 params packed into (DEPTH, 4, 4D)
    misc = jnp.stack([
        jnp.concatenate([
            jnp.concatenate([blk['ln1_w'][l], blk['ln1_b'][l],
                             blk['ln2_w'][l], blk['ln2_b'][l]], axis=-1),
            jnp.concatenate([b_qkv[l], blk['b_o'][l]], axis=-1),
            blk['b_fc1'][l],
            jnp.concatenate([blk['b_fc2'][l],
                             jnp.zeros((1, 3 * D), jnp.float32)], axis=-1),
        ], axis=0)
        for l in range(DEPTH)])

    return {
        'glob': glob,
        'misc': misc,
        'patch_w': _bf16(p['patch_w']),
        'w_qkv': _bf16(w_qkv),
        'w_o': _bf16(blk['w_o']),
        'w_fc1': _bf16(blk['w_fc1']),
        'w_fc2': _bf16(blk['w_fc2']),
    }


# --------------------------------- forward -------------------------------------
def timm_model_forward(x_nchw, packed):
    bsz = x_nchw.shape[0]
    # im2col glue: (B, C, H, W) -> (B*N, C*P*P); feature order matches torch
    # Conv2d weight flattening (c, ph, pw); patch grid row-major like timm.
    patches = (x_nchw.reshape(bsz, C, GRIDS, PATCH, GRIDS, PATCH)
               .transpose(0, 2, 4, 1, 3, 5)
               .reshape(bsz * N, CPP))
    layers, features = _fused_forward(patches, packed)

    # get_intermediate_layers(n=range(len(blocks)), reshape=False, norm=True)
    per_layer_raw_features = [layers[l] for l in range(DEPTH)]
    raw_features_as_sequence = per_layer_raw_features[-1]
    return {
        'classifier': features,
        'features': features,
        'raw_features': raw_features_as_sequence,
        'per_layer_raw_features': per_layer_raw_features,
    }


# ----------------------------------- main ---------------------------------------
if __name__ == "__main__":
    key = jax.random.PRNGKey(0)
    kx, kp = jax.random.split(key)
    x = jax.random.normal(kx, (B, C, IMG, IMG), jnp.float32)
    params = init_params(kp)
    packed = pack_params(params)        # one-time packing / scale folding

    fwd = jax.jit(timm_model_forward)
    out = fwd(x, packed)
    jax.block_until_ready(out)

    assert out['classifier'].shape == (B, D)
    assert out['features'].shape == (B, D)
    assert out['raw_features'].shape == (B, N, D)
    assert len(out['per_layer_raw_features']) == DEPTH
    assert all(l.shape == (B, N, D) for l in out['per_layer_raw_features'])
    assert bool(jnp.isfinite(out['features']).all())
    print("KERNEL_OK")
</pallas_src>

<mosaic_0001>
module attributes {stable_mosaic.version = 11 : i64} {
  func.func @fused_vit_kernel(%arg0: memref<32x48xf32, #tpu.memory_space<vmem>>, %arg1: memref<26x32xf32, #tpu.memory_space<vmem>>, %arg2: memref<2x4x128xf32, #tpu.memory_space<vmem>>, %arg3: memref<48x32xbf16, #tpu.memory_space<vmem>>, %arg4: memref<2x32x96xbf16, #tpu.memory_space<vmem>>, %arg5: memref<2x32x32xbf16, #tpu.memory_space<vmem>>, %arg6: memref<2x32x128xbf16, #tpu.memory_space<vmem>>, %arg7: memref<2x128x32xbf16, #tpu.memory_space<vmem>>, %arg8: memref<2x2x16x32xf32, #tpu.memory_space<vmem>>, %arg9: memref<2x32xf32, #tpu.memory_space<vmem>>) attributes {dimension_semantics = [], scalar_prefetch = 0 : i64, scratch_operands = 0 : i64, tpu.core_type = #tpu.core_type<tc>} {
    %c0 = arith.constant 0 : index
    %c0_0 = arith.constant 0 : index
    %0 = vector.load %arg1[%c0, %c0_0] : memref<26x32xf32, #tpu.memory_space<vmem>>, vector<26x32xf32>
    %1 = vector.extract_strided_slice %0 {offsets = [0, 0], sizes = [24, 32], strides = [1, 1]} : vector<26x32xf32> to vector<24x32xf32>
    %2 = vector.extract_strided_slice %0 {offsets = [24, 0], sizes = [1, 32], strides = [1, 1]} : vector<26x32xf32> to vector<1x32xf32>
    %3 = vector.extract_strided_slice %0 {offsets = [25, 0], sizes = [1, 32], strides = [1, 1]} : vector<26x32xf32> to vector<1x32xf32>
    %c0_1 = arith.constant 0 : index
    %c0_2 = arith.constant 0 : index
    %4 = vector.load %arg0[%c0_1, %c0_2] : memref<32x48xf32, #tpu.memory_space<vmem>>, vector<32x48xf32>
    %5 = arith.truncf %4 : vector<32x48xf32> to vector<32x48xbf16>
    %c0_3 = arith.constant 0 : index
    %c0_4 = arith.constant 0 : index
    %6 = vector.load %arg3[%c0_3, %c0_4] : memref<48x32xbf16, #tpu.memory_space<vmem>>, vector<48x32xbf16>
    %cst = arith.constant dense<0.000000e+00> : vector<32x32xf32>
    %7 = tpu.matmul %5, %6, %cst {dimension_numbers = #tpu.dot_dimension_numbers<[1], [0], [0], [1], [0, 0, 1, 1], [], []>} : vector<32x48xbf16>, vector<48x32xbf16>, vector<32x32xf32> -> vector<32x32xf32>
    %8 = vector.shape_cast %7 : vector<32x32xf32> to vector<2x16x32xf32>
    %cst_5 = arith.constant 0.000000e+00 : f32
    %9 = vector.broadcast %cst_5 : f32 to vector<2x8x32xf32>
    %10 = tpu.concatenate %8, %9 in 1 : vector<2x16x32xf32>, vector<2x8x32xf32> -> vector<2x24x32xf32>
    %11 = vector.shape_cast %1 : vector<24x32xf32> to vector<1x24x32xf32>
    %12 = vector.broadcast %11 : vector<1x24x32xf32> to vector<2x24x32xf32>
    %13 = arith.addf %10, %12 : vector<2x24x32xf32>
    %14 = vector.shape_cast %13 : vector<2x24x32xf32> to vector<48x32xf32>
    %15 = tpu.iota {dimensions = array<i32: 2>} : vector<1x1x24xi32>
    %c17_i32 = arith.constant 17 : i32
    %16 = vector.broadcast %c17_i32 : i32 to vector<1x1x24xi32>
    %17 = arith.cmpi slt, %15, %16 : vector<1x1x24xi32>
    %c0_6 = arith.constant 0 : index
    %c0_7 = arith.constant 0 : index
    %c0_8 = arith.constant 0 : index
    %18 = vector.load %arg2[%c0_6, %c0_7, %c0_8] : memref<2x4x128xf32, #tpu.memory_space<vmem>>, vector<1x4x128xf32>
    %19 = vector.shape_cast %18 : vector<1x4x128xf32> to vector<4x128xf32>
    %20 = vector.extract_strided_slice %19 {offsets = [0, 0], sizes = [1, 32], strides = [1, 1]} : vector<4x128xf32> to vector<1x32xf32>
    %21 = vector.extract_strided_slice %19 {offsets = [0, 32], sizes = [1, 32], strides = [1, 1]} : vector<4x128xf32> to vector<1x32xf32>
    %22 = vector.extract_strided_slice %19 {offsets = [0, 64], sizes = [1, 32], strides = [1, 1]} : vector<4x128xf32> to vector<1x32xf32>
    %23 = vector.extract_strided_slice %19 {offsets = [0, 96], sizes = [1, 32], strides = [1, 1]} : vector<4x128xf32> to vector<1x32xf32>
    %24 = vector.extract_strided_slice %19 {offsets = [1, 0], sizes = [1, 96], strides = [1, 1]} : vector<4x128xf32> to vector<1x96xf32>
    %25 = vector.extract_strided_slice %19 {offsets = [1, 96], sizes = [1, 32], strides = [1, 1]} : vector<4x128xf32> to vector<1x32xf32>
    %26 = vector.extract_strided_slice %19 {offsets = [2, 0], sizes = [1, 128], strides = [1, 1]} : vector<4x128xf32> to vector<1x128xf32>
    %27 = vector.extract_strided_slice %19 {offsets = [3, 0], sizes = [1, 32], strides = [1, 1]} : vector<4x128xf32> to vector<1x32xf32>
    %cst_9 = arith.constant dense<0.000000e+00> : vector<48xf32>
    %28 = vector.multi_reduction <add>, %14, %cst_9 [1] : vector<48x32xf32> to vector<48xf32>
    %29 = vector.shape_cast %28 : vector<48xf32> to vector<48x1xf32>
    %cst_10 = arith.constant 3.200000e+01 : f32
    %30 = vector.broadcast %cst_10 : f32 to vector<48x1xf32>
    %31 = arith.divf %29, %30 : vector<48x1xf32>
    %32 = vector.broadcast %31 : vector<48x1xf32> to vector<48x32xf32>
    %33 = arith.subf %14, %32 : vector<48x32xf32>
    %34 = arith.mulf %33, %33 : vector<48x32xf32>
    %cst_11 = arith.constant dense<0.000000e+00> : vector<48xf32>
    %35 = vector.multi_reduction <add>, %34, %cst_11 [1] : vector<48x32xf32> to vector<48xf32>
    %36 = vector.shape_cast %35 : vector<48xf32> to vector<48x1xf32>
    %cst_12 = arith.constant 3.200000e+01 : f32
    %37 = vector.broadcast %cst_12 : f32 to vector<48x1xf32>
    %38 = arith.divf %36, %37 : vector<48x1xf32>
    %39 = vector.broadcast %31 : vector<48x1xf32> to vector<48x32xf32>
    %40 = arith.subf %14, %39 : vector<48x32xf32>
    %cst_13 = arith.constant 9.99999997E-7 : f32
    %41 = vector.broadcast %cst_13 : f32 to vector<48x1xf32>
    %42 = arith.addf %38, %41 : vector<48x1xf32>
    %43 = math.rsqrt %42 : vector<48x1xf32>
    %44 = vector.broadcast %43 : vector<48x1xf32> to vector<48x32xf32>
    %45 = arith.mulf %40, %44 : vector<48x32xf32>
    %46 = vector.broadcast %20 : vector<1x32xf32> to vector<48x32xf32>
    %47 = arith.mulf %45, %46 : vector<48x32xf32>
    %48 = vector.broadcast %21 : vector<1x32xf32> to vector<48x32xf32>
    %49 = arith.addf %47, %48 : vector<48x32xf32>
    %50 = arith.truncf %49 : vector<48x32xf32> to vector<48x32xbf16>
    %c0_14 = arith.constant 0 : index
    %c0_15 = arith.constant 0 : index
    %c0_16 = arith.constant 0 : index
    %51 = vector.load %arg4[%c0_14, %c0_15, %c0_16] : memref<2x32x96xbf16, #tpu.memory_space<vmem>>, vector<1x32x96xbf16>
    %52 = vector.shape_cast %51 : vector<1x32x96xbf16> to vector<32x96xbf16>
    %cst_17 = arith.constant dense<0.000000e+00> : vector<48x96xf32>
    %53 = tpu.matmul %50, %52, %cst_17 {dimension_numbers = #tpu.dot_dimension_numbers<[1], [0], [0], [1], [0, 0, 1, 1], [], []>} : vector<48x32xbf16>, vector<32x96xbf16>, vector<48x96xf32> -> vector<48x96xf32>
    %54 = vector.broadcast %24 : vector<1x96xf32> to vector<48x96xf32>
    %55 = arith.addf %53, %54 : vector<48x96xf32>
    %56 = arith.truncf %55 : vector<48x96xf32> to vector<48x96xbf16>
    %57 = vector.extract_strided_slice %56 {offsets = [0, 0], sizes = [48, 32], strides = [1, 1]} : vector<48x96xbf16> to vector<48x32xbf16>
    %58 = vector.shape_cast %57 : vector<48x32xbf16> to vector<2x24x32xbf16>
    %59 = vector.extract_strided_slice %56 {offsets = [0, 32], sizes = [48, 32], strides = [1, 1]} : vector<48x96xbf16> to vector<48x32xbf16>
    %60 = vector.shape_cast %59 : vector<48x32xbf16> to vector<2x24x32xbf16>
    %61 = vector.extract_strided_slice %56 {offsets = [0, 64], sizes = [48, 32], strides = [1, 1]} : vector<48x96xbf16> to vector<48x32xbf16>
    %62 = vector.shape_cast %61 : vector<48x32xbf16> to vector<2x24x32xbf16>
    %63 = vector.extract_strided_slice %58 {offsets = [0, 0, 0], sizes = [2, 24, 16], strides = [1, 1, 1]} : vector<2x24x32xbf16> to vector<2x24x16xbf16>
    %64 = vector.extract_strided_slice %58 {offsets = [0, 0, 16], sizes = [2, 24, 16], strides = [1, 1, 1]} : vector<2x24x32xbf16> to vector<2x24x16xbf16>
    %65 = tpu.concatenate %63, %64 in 0 : vector<2x24x16xbf16>, vector<2x24x16xbf16> -> vector<4x24x16xbf16>
    %66 = vector.extract_strided_slice %60 {offsets = [0, 0, 0], sizes = [2, 24, 16], strides = [1, 1, 1]} : vector<2x24x32xbf16> to vector<2x24x16xbf16>
    %67 = vector.extract_strided_slice %60 {offsets = [0, 0, 16], sizes = [2, 24, 16], strides = [1, 1, 1]} : vector<2x24x32xbf16> to vector<2x24x16xbf16>
    %68 = tpu.concatenate %66, %67 in 0 : vector<2x24x16xbf16>, vector<2x24x16xbf16> -> vector<4x24x16xbf16>
    %69 = vector.extract_strided_slice %62 {offsets = [0, 0, 0], sizes = [2, 24, 16], strides = [1, 1, 1]} : vector<2x24x32xbf16> to vector<2x24x16xbf16>
    %70 = vector.extract_strided_slice %62 {offsets = [0, 0, 16], sizes = [2, 24, 16], strides = [1, 1, 1]} : vector<2x24x32xbf16> to vector<2x24x16xbf16>
    %71 = tpu.concatenate %69, %70 in 0 : vector<2x24x16xbf16>, vector<2x24x16xbf16> -> vector<4x24x16xbf16>
    %cst_18 = arith.constant dense<0.000000e+00> : vector<4x24x24xf32>
    %72 = tpu.matmul %65, %68, %cst_18 {dimension_numbers = #tpu.dot_dimension_numbers<[2], [2], [1], [1], [0, 0, 0, 1, 1, 1], [0], [0]>} : vector<4x24x16xbf16>, vector<4x24x16xbf16>, vector<4x24x24xf32> -> vector<4x24x24xf32>
    %cst_19 = arith.constant -1.000000e+30 : f32
    %73 = vector.shape_cast %17 : vector<1x1x24xi1> to vector<1x1x24xi1>
    %74 = vector.broadcast %73 : vector<1x1x24xi1> to vector<4x24x24xi1>
    %75 = vector.broadcast %cst_19 : f32 to vector<4x24x24xf32>
    %76 = arith.select %74, %72, %75 : vector<4x24x24xi1>, vector<4x24x24xf32>
    %cst_20 = arith.constant dense<0xFF800000> : vector<4x24xf32>
    %77 = vector.multi_reduction <maximumf>, %76, %cst_20 [2] : vector<4x24x24xf32> to vector<4x24xf32>
    %78 = vector.shape_cast %77 : vector<4x24xf32> to vector<4x24x1xf32>
    %79 = vector.broadcast %78 : vector<4x24x1xf32> to vector<4x24x24xf32>
    %80 = arith.subf %76, %79 : vector<4x24x24xf32>
    %81 = math.exp %80 : vector<4x24x24xf32>
    %cst_21 = arith.constant dense<0.000000e+00> : vector<4x24xf32>
    %82 = vector.multi_reduction <add>, %81, %cst_21 [2] : vector<4x24x24xf32> to vector<4x24xf32>
    %83 = vector.shape_cast %82 : vector<4x24xf32> to vector<4x24x1xf32>
    %84 = tpu.reciprocal %83 {approx = true} : vector<4x24x1xf32> -> vector<4x24x1xf32>
    %85 = vector.broadcast %84 : vector<4x24x1xf32> to vector<4x24x24xf32>
    %86 = arith.mulf %81, %85 : vector<4x24x24xf32>
    %87 = arith.truncf %86 : vector<4x24x24xf32> to vector<4x24x24xbf16>
    %cst_22 = arith.constant dense<0.000000e+00> : vector<4x24x16xf32>
    %88 = tpu.matmul %87, %71, %cst_22 {dimension_numbers = #tpu.dot_dimension_numbers<[2], [1], [1], [2], [0, 0, 0, 1, 1, 2], [0], [0]>} : vector<4x24x24xbf16>, vector<4x24x16xbf16>, vector<4x24x16xf32> -> vector<4x24x16xf32>
    %89 = vector.extract_strided_slice %88 {offsets = [0, 0, 0], sizes = [2, 24, 16], strides = [1, 1, 1]} : vector<4x24x16xf32> to vector<2x24x16xf32>
    %90 = vector.extract_strided_slice %88 {offsets = [2, 0, 0], sizes = [2, 24, 16], strides = [1, 1, 1]} : vector<4x24x16xf32> to vector<2x24x16xf32>
    %91 = tpu.concatenate %89, %90 in 2 : vector<2x24x16xf32>, vector<2x24x16xf32> -> vector<2x24x32xf32>
    %92 = vector.shape_cast %91 : vector<2x24x32xf32> to vector<48x32xf32>
    %93 = arith.truncf %92 : vector<48x32xf32> to vector<48x32xbf16>
    %c0_23 = arith.constant 0 : index
    %c0_24 = arith.constant 0 : index
    %c0_25 = arith.constant 0 : index
    %94 = vector.load %arg5[%c0_23, %c0_24, %c0_25] : memref<2x32x32xbf16, #tpu.memory_space<vmem>>, vector<1x32x32xbf16>
    %95 = vector.shape_cast %94 : vector<1x32x32xbf16> to vector<32x32xbf16>
    %cst_26 = arith.constant dense<0.000000e+00> : vector<48x32xf32>
    %96 = tpu.matmul %93, %95, %cst_26 {dimension_numbers = #tpu.dot_dimension_numbers<[1], [0], [0], [1], [0, 0, 1, 1], [], []>} : vector<48x32xbf16>, vector<32x32xbf16>, vector<48x32xf32> -> vector<48x32xf32>
    %97 = vector.broadcast %25 : vector<1x32xf32> to vector<48x32xf32>
    %98 = arith.addf %96, %97 : vector<48x32xf32>
    %99 = arith.addf %14, %98 : vector<48x32xf32>
    %cst_27 = arith.constant dense<0.000000e+00> : vector<48xf32>
    %100 = vector.multi_reduction <add>, %99, %cst_27 [1] : vector<48x32xf32> to vector<48xf32>
    %101 = vector.shape_cast %100 : vector<48xf32> to vector<48x1xf32>
    %cst_28 = arith.constant 3.200000e+01 : f32
    %102 = vector.broadcast %cst_28 : f32 to vector<48x1xf32>
    %103 = arith.divf %101, %102 : vector<48x1xf32>
    %104 = vector.broadcast %103 : vector<48x1xf32> to vector<48x32xf32>
    %105 = arith.subf %99, %104 : vector<48x32xf32>
    %106 = arith.mulf %105, %105 : vector<48x32xf32>
    %cst_29 = arith.constant dense<0.000000e+00> : vector<48xf32>
    %107 = vector.multi_reduction <add>, %106, %cst_29 [1] : vector<48x32xf32> to vector<48xf32>
    %108 = vector.shape_cast %107 : vector<48xf32> to vector<48x1xf32>
    %cst_30 = arith.constant 3.200000e+01 : f32
    %109 = vector.broadcast %cst_30 : f32 to vector<48x1xf32>
    %110 = arith.divf %108, %109 : vector<48x1xf32>
    %111 = vector.broadcast %103 : vector<48x1xf32> to vector<48x32xf32>
    %112 = arith.subf %99, %111 : vector<48x32xf32>
    %cst_31 = arith.constant 9.99999997E-7 : f32
    %113 = vector.broadcast %cst_31 : f32 to vector<48x1xf32>
    %114 = arith.addf %110, %113 : vector<48x1xf32>
    %115 = math.rsqrt %114 : vector<48x1xf32>
    %116 = vector.broadcast %115 : vector<48x1xf32> to vector<48x32xf32>
    %117 = arith.mulf %112, %116 : vector<48x32xf32>
    %118 = vector.broadcast %22 : vector<1x32xf32> to vector<48x32xf32>
    %119 = arith.mulf %117, %118 : vector<48x32xf32>
    %120 = vector.broadcast %23 : vector<1x32xf32> to vector<48x32xf32>
    %121 = arith.addf %119, %120 : vector<48x32xf32>
    %122 = arith.truncf %121 : vector<48x32xf32> to vector<48x32xbf16>
    %c0_32 = arith.constant 0 : index
    %c0_33 = arith.constant 0 : index
    %c0_34 = arith.constant 0 : index
    %123 = vector.load %arg6[%c0_32, %c0_33, %c0_34] : memref<2x32x128xbf16, #tpu.memory_space<vmem>>, vector<1x32x128xbf16>
    %124 = vector.shape_cast %123 : vector<1x32x128xbf16> to vector<32x128xbf16>
    %cst_35 = arith.constant dense<0.000000e+00> : vector<48x128xf32>
    %125 = tpu.matmul %122, %124, %cst_35 {dimension_numbers = #tpu.dot_dimension_numbers<[1], [0], [0], [1], [0, 0, 1, 1], [], []>} : vector<48x32xbf16>, vector<32x128xbf16>, vector<48x128xf32> -> vector<48x128xf32>
    %126 = vector.broadcast %26 : vector<1x128xf32> to vector<48x128xf32>
    %127 = arith.addf %125, %126 : vector<48x128xf32>
    %128 = arith.mulf %127, %127 : vector<48x128xf32>
    %129 = arith.mulf %127, %128 : vector<48x128xf32>
    %cst_36 = arith.constant 4.471500e-02 : f32
    %130 = vector.broadcast %cst_36 : f32 to vector<48x128xf32>
    %131 = arith.mulf %130, %129 : vector<48x128xf32>
    %132 = arith.addf %127, %131 : vector<48x128xf32>
    %cst_37 = arith.constant 0.797884583 : f32
    %133 = vector.broadcast %cst_37 : f32 to vector<48x128xf32>
    %134 = arith.mulf %133, %132 : vector<48x128xf32>
    %135 = math.tanh %134 : vector<48x128xf32>
    %cst_38 = arith.constant 1.000000e+00 : f32
    %136 = vector.broadcast %cst_38 : f32 to vector<48x128xf32>
    %137 = arith.addf %136, %135 : vector<48x128xf32>
    %cst_39 = arith.constant 5.000000e-01 : f32
    %138 = vector.broadcast %cst_39 : f32 to vector<48x128xf32>
    %139 = arith.mulf %138, %137 : vector<48x128xf32>
    %140 = arith.mulf %127, %139 : vector<48x128xf32>
    %141 = arith.truncf %140 : vector<48x128xf32> to vector<48x128xbf16>
    %c0_40 = arith.constant 0 : index
    %c0_41 = arith.constant 0 : index
    %c0_42 = arith.constant 0 : index
    %142 = vector.load %arg7[%c0_40, %c0_41, %c0_42] : memref<2x128x32xbf16, #tpu.memory_space<vmem>>, vector<1x128x32xbf16>
    %143 = vector.shape_cast %142 : vector<1x128x32xbf16> to vector<128x32xbf16>
    %cst_43 = arith.constant dense<0.000000e+00> : vector<48x32xf32>
    %144 = tpu.matmul %141, %143, %cst_43 {dimension_numbers = #tpu.dot_dimension_numbers<[1], [0], [0], [1], [0, 0, 1, 1], [], []>} : vector<48x128xbf16>, vector<128x32xbf16>, vector<48x32xf32> -> vector<48x32xf32>
    %145 = vector.broadcast %27 : vector<1x32xf32> to vector<48x32xf32>
    %146 = arith.addf %144, %145 : vector<48x32xf32>
    %147 = arith.addf %99, %146 : vector<48x32xf32>
    %148 = vector.shape_cast %147 : vector<48x32xf32> to vector<2x24x32xf32>
    %149 = vector.extract_strided_slice %148 {offsets = [0, 0, 0], sizes = [2, 16, 32], strides = [1, 1, 1]} : vector<2x24x32xf32> to vector<2x16x32xf32>
    %cst_44 = arith.constant dense<0.000000e+00> : vector<2x16xf32>
    %150 = vector.multi_reduction <add>, %149, %cst_44 [2] : vector<2x16x32xf32> to vector<2x16xf32>
    %151 = vector.shape_cast %150 : vector<2x16xf32> to vector<2x16x1xf32>
    %cst_45 = arith.constant 3.200000e+01 : f32
    %152 = vector.broadcast %cst_45 : f32 to vector<2x16x1xf32>
    %153 = arith.divf %151, %152 : vector<2x16x1xf32>
    %154 = vector.broadcast %153 : vector<2x16x1xf32> to vector<2x16x32xf32>
    %155 = arith.subf %149, %154 : vector<2x16x32xf32>
    %156 = arith.mulf %155, %155 : vector<2x16x32xf32>
    %cst_46 = arith.constant dense<0.000000e+00> : vector<2x16xf32>
    %157 = vector.multi_reduction <add>, %156, %cst_46 [2] : vector<2x16x32xf32> to vector<2x16xf32>
    %158 = vector.shape_cast %157 : vector<2x16xf32> to vector<2x16x1xf32>
    %cst_47 = arith.constant 3.200000e+01 : f32
    %159 = vector.broadcast %cst_47 : f32 to vector<2x16x1xf32>
    %160 = arith.divf %158, %159 : vector<2x16x1xf32>
    %161 = vector.broadcast %153 : vector<2x16x1xf32> to vector<2x16x32xf32>
    %162 = arith.subf %149, %161 : vector<2x16x32xf32>
    %cst_48 = arith.constant 9.99999997E-7 : f32
    %163 = vector.broadcast %cst_48 : f32 to vector<2x16x1xf32>
    %164 = arith.addf %160, %163 : vector<2x16x1xf32>
    %165 = math.rsqrt %164 : vector<2x16x1xf32>
    %166 = vector.broadcast %165 : vector<2x16x1xf32> to vector<2x16x32xf32>
    %167 = arith.mulf %162, %166 : vector<2x16x32xf32>
    %168 = vector.shape_cast %2 : vector<1x32xf32> to vector<1x1x32xf32>
    %169 = vector.broadcast %168 : vector<1x1x32xf32> to vector<2x16x32xf32>
    %170 = arith.mulf %167, %169 : vector<2x16x32xf32>
    %171 = vector.shape_cast %3 : vector<1x32xf32> to vector<1x1x32xf32>
    %172 = vector.broadcast %171 : vector<1x1x32xf32> to vector<2x16x32xf32>
    %173 = arith.addf %170, %172 : vector<2x16x32xf32>
    %c0_49 = arith.constant 0 : index
    %c0_50 = arith.constant 0 : index
    %c0_51 = arith.constant 0 : index
    %c0_52 = arith.constant 0 : index
    %174 = vector.load %arg8[%c0_49, %c0_50, %c0_51, %c0_52] : memref<2x2x16x32xf32, #tpu.memory_space<vmem>>, vector<1x2x16x32xf32>
    %175 = vector.shape_cast %174 : vector<1x2x16x32xf32> to vector<2x16x32xf32>
    %176 = vector.shape_cast %173 : vector<2x16x32xf32> to vector<1x2x16x32xf32>
    tpu.vector_store %arg8[%c0_49, %c0_50, %c0_51, %c0_52], %176 {strides = array<i32>} : memref<2x2x16x32xf32, #tpu.memory_space<vmem>>, vector<1x2x16x32xf32>,
    %c1 = arith.constant 1 : index
    %c0_53 = arith.constant 0 : index
    %c0_54 = arith.constant 0 : index
    %177 = vector.load %arg2[%c1, %c0_53, %c0_54] : memref<2x4x128xf32, #tpu.memory_space<vmem>>, vector<1x4x128xf32>
    %178 = vector.shape_cast %177 : vector<1x4x128xf32> to vector<4x128xf32>
    %179 = vector.extract_strided_slice %178 {offsets = [0, 0], sizes = [1, 32], strides = [1, 1]} : vector<4x128xf32> to vector<1x32xf32>
    %180 = vector.extract_strided_slice %178 {offsets = [0, 32], sizes = [1, 32], strides = [1, 1]} : vector<4x128xf32> to vector<1x32xf32>
    %181 = vector.extract_strided_slice %178 {offsets = [0, 64], sizes = [1, 32], strides = [1, 1]} : vector<4x128xf32> to vector<1x32xf32>
    %182 = vector.extract_strided_slice %178 {offsets = [0, 96], sizes = [1, 32], strides = [1, 1]} : vector<4x128xf32> to vector<1x32xf32>
    %183 = vector.extract_strided_slice %178 {offsets = [1, 0], sizes = [1, 96], strides = [1, 1]} : vector<4x128xf32> to vector<1x96xf32>
    %184 = vector.extract_strided_slice %178 {offsets = [1, 96], sizes = [1, 32], strides = [1, 1]} : vector<4x128xf32> to vector<1x32xf32>
    %185 = vector.extract_strided_slice %178 {offsets = [2, 0], sizes = [1, 128], strides = [1, 1]} : vector<4x128xf32> to vector<1x128xf32>
    %186 = vector.extract_strided_slice %178 {offsets = [3, 0], sizes = [1, 32], strides = [1, 1]} : vector<4x128xf32> to vector<1x32xf32>
    %cst_55 = arith.constant dense<0.000000e+00> : vector<48xf32>
    %187 = vector.multi_reduction <add>, %147, %cst_55 [1] : vector<48x32xf32> to vector<48xf32>
    %188 = vector.shape_cast %187 : vector<48xf32> to vector<48x1xf32>
    %cst_56 = arith.constant 3.200000e+01 : f32
    %189 = vector.broadcast %cst_56 : f32 to vector<48x1xf32>
    %190 = arith.divf %188, %189 : vector<48x1xf32>
    %191 = vector.broadcast %190 : vector<48x1xf32> to vector<48x32xf32>
    %192 = arith.subf %147, %191 : vector<48x32xf32>
    %193 = arith.mulf %192, %192 : vector<48x32xf32>
    %cst_57 = arith.constant dense<0.000000e+00> : vector<48xf32>
    %194 = vector.multi_reduction <add>, %193, %cst_57 [1] : vector<48x32xf32> to vector<48xf32>
    %195 = vector.shape_cast %194 : vector<48xf32> to vector<48x1xf32>
    %cst_58 = arith.constant 3.200000e+01 : f32
    %196 = vector.broadcast %cst_58 : f32 to vector<48x1xf32>
    %197 = arith.divf %195, %196 : vector<48x1xf32>
    %198 = vector.broadcast %190 : vector<48x1xf32> to vector<48x32xf32>
    %199 = arith.subf %147, %198 : vector<48x32xf32>
    %cst_59 = arith.constant 9.99999997E-7 : f32
    %200 = vector.broadcast %cst_59 : f32 to vector<48x1xf32>
    %201 = arith.addf %197, %200 : vector<48x1xf32>
    %202 = math.rsqrt %201 : vector<48x1xf32>
    %203 = vector.broadcast %202 : vector<48x1xf32> to vector<48x32xf32>
    %204 = arith.mulf %199, %203 : vector<48x32xf32>
    %205 = vector.broadcast %179 : vector<1x32xf32> to vector<48x32xf32>
    %206 = arith.mulf %204, %205 : vector<48x32xf32>
    %207 = vector.broadcast %180 : vector<1x32xf32> to vector<48x32xf32>
    %208 = arith.addf %206, %207 : vector<48x32xf32>
    %209 = arith.truncf %208 : vector<48x32xf32> to vector<48x32xbf16>
    %c1_60 = arith.constant 1 : index
    %c0_61 = arith.constant 0 : index
    %c0_62 = arith.constant 0 : index
    %210 = vector.load %arg4[%c1_60, %c0_61, %c0_62] : memref<2x32x96xbf16, #tpu.memory_space<vmem>>, vector<1x32x96xbf16>
    %211 = vector.shape_cast %210 : vector<1x32x96xbf16> to vector<32x96xbf16>
    %cst_63 = arith.constant dense<0.000000e+00> : vector<48x96xf32>
    %212 = tpu.matmul %209, %211, %cst_63 {dimension_numbers = #tpu.dot_dimension_numbers<[1], [0], [0], [1], [0, 0, 1, 1], [], []>} : vector<48x32xbf16>, vector<32x96xbf16>, vector<48x96xf32> -> vector<48x96xf32>
    %213 = vector.broadcast %183 : vector<1x96xf32> to vector<48x96xf32>
    %214 = arith.addf %212, %213 : vector<48x96xf32>
    %215 = arith.truncf %214 : vector<48x96xf32> to vector<48x96xbf16>
    %216 = vector.extract_strided_slice %215 {offsets = [0, 0], sizes = [48, 32], strides = [1, 1]} : vector<48x96xbf16> to vector<48x32xbf16>
    %217 = vector.shape_cast %216 : vector<48x32xbf16> to vector<2x24x32xbf16>
    %218 = vector.extract_strided_slice %215 {offsets = [0, 32], sizes = [48, 32], strides = [1, 1]} : vector<48x96xbf16> to vector<48x32xbf16>
    %219 = vector.shape_cast %218 : vector<48x32xbf16> to vector<2x24x32xbf16>
    %220 = vector.extract_strided_slice %215 {offsets = [0, 64], sizes = [48, 32], strides = [1, 1]} : vector<48x96xbf16> to vector<48x32xbf16>
    %221 = vector.shape_cast %220 : vector<48x32xbf16> to vector<2x24x32xbf16>
    %222 = vector.extract_strided_slice %217 {offsets = [0, 0, 0], sizes = [2, 24, 16], strides = [1, 1, 1]} : vector<2x24x32xbf16> to vector<2x24x16xbf16>
    %223 = vector.extract_strided_slice %217 {offsets = [0, 0, 16], sizes = [2, 24, 16], strides = [1, 1, 1]} : vector<2x24x32xbf16> to vector<2x24x16xbf16>
    %224 = tpu.concatenate %222, %223 in 0 : vector<2x24x16xbf16>, vector<2x24x16xbf16> -> vector<4x24x16xbf16>
    %225 = vector.extract_strided_slice %219 {offsets = [0, 0, 0], sizes = [2, 24, 16], strides = [1, 1, 1]} : vector<2x24x32xbf16> to vector<2x24x16xbf16>
    %226 = vector.extract_strided_slice %219 {offsets = [0, 0, 16], sizes = [2, 24, 16], strides = [1, 1, 1]} : vector<2x24x32xbf16> to vector<2x24x16xbf16>
    %227 = tpu.concatenate %225, %226 in 0 : vector<2x24x16xbf16>, vector<2x24x16xbf16> -> vector<4x24x16xbf16>
    %228 = vector.extract_strided_slice %221 {offsets = [0, 0, 0], sizes = [2, 24, 16], strides = [1, 1, 1]} : vector<2x24x32xbf16> to vector<2x24x16xbf16>
    %229 = vector.extract_strided_slice %221 {offsets = [0, 0, 16], sizes = [2, 24, 16], strides = [1, 1, 1]} : vector<2x24x32xbf16> to vector<2x24x16xbf16>
    %230 = tpu.concatenate %228, %229 in 0 : vector<2x24x16xbf16>, vector<2x24x16xbf16> -> vector<4x24x16xbf16>
    %cst_64 = arith.constant dense<0.000000e+00> : vector<4x24x24xf32>
    %231 = tpu.matmul %224, %227, %cst_64 {dimension_numbers = #tpu.dot_dimension_numbers<[2], [2], [1], [1], [0, 0, 0, 1, 1, 1], [0], [0]>} : vector<4x24x16xbf16>, vector<4x24x16xbf16>, vector<4x24x24xf32> -> vector<4x24x24xf32>
    %cst_65 = arith.constant -1.000000e+30 : f32
    %232 = vector.shape_cast %17 : vector<1x1x24xi1> to vector<1x1x24xi1>
    %233 = vector.broadcast %232 : vector<1x1x24xi1> to vector<4x24x24xi1>
    %234 = vector.broadcast %cst_65 : f32 to vector<4x24x24xf32>
    %235 = arith.select %233, %231, %234 : vector<4x24x24xi1>, vector<4x24x24xf32>
    %cst_66 = arith.constant dense<0xFF800000> : vector<4x24xf32>
    %236 = vector.multi_reduction <maximumf>, %235, %cst_66 [2] : vector<4x24x24xf32> to vector<4x24xf32>
    %237 = vector.shape_cast %236 : vector<4x24xf32> to vector<4x24x1xf32>
    %238 = vector.broadcast %237 : vector<4x24x1xf32> to vector<4x24x24xf32>
    %239 = arith.subf %235, %238 : vector<4x24x24xf32>
    %240 = math.exp %239 : vector<4x24x24xf32>
    %cst_67 = arith.constant dense<0.000000e+00> : vector<4x24xf32>
    %241 = vector.multi_reduction <add>, %240, %cst_67 [2] : vector<4x24x24xf32> to vector<4x24xf32>
    %242 = vector.shape_cast %241 : vector<4x24xf32> to vector<4x24x1xf32>
    %243 = tpu.reciprocal %242 {approx = true} : vector<4x24x1xf32> -> vector<4x24x1xf32>
    %244 = vector.broadcast %243 : vector<4x24x1xf32> to vector<4x24x24xf32>
    %245 = arith.mulf %240, %244 : vector<4x24x24xf32>
    %246 = arith.truncf %245 : vector<4x24x24xf32> to vector<4x24x24xbf16>
    %cst_68 = arith.constant dense<0.000000e+00> : vector<4x24x16xf32>
    %247 = tpu.matmul %246, %230, %cst_68 {dimension_numbers = #tpu.dot_dimension_numbers<[2], [1], [1], [2], [0, 0, 0, 1, 1, 2], [0], [0]>} : vector<4x24x24xbf16>, vector<4x24x16xbf16>, vector<4x24x16xf32> -> vector<4x24x16xf32>
    %248 = vector.extract_strided_slice %247 {offsets = [0, 0, 0], sizes = [2, 24, 16], strides = [1, 1, 1]} : vector<4x24x16xf32> to vector<2x24x16xf32>
    %249 = vector.extract_strided_slice %247 {offsets = [2, 0, 0], sizes = [2, 24, 16], strides = [1, 1, 1]} : vector<4x24x16xf32> to vector<2x24x16xf32>
    %250 = tpu.concatenate %248, %249 in 2 : vector<2x24x16xf32>, vector<2x24x16xf32> -> vector<2x24x32xf32>
    %251 = vector.shape_cast %250 : vector<2x24x32xf32> to vector<48x32xf32>
    %252 = arith.truncf %251 : vector<48x32xf32> to vector<48x32xbf16>
    %c1_69 = arith.constant 1 : index
    %c0_70 = arith.constant 0 : index
    %c0_71 = arith.constant 0 : index
    %253 = vector.load %arg5[%c1_69, %c0_70, %c0_71] : memref<2x32x32xbf16, #tpu.memory_space<vmem>>, vector<1x32x32xbf16>
    %254 = vector.shape_cast %253 : vector<1x32x32xbf16> to vector<32x32xbf16>
    %cst_72 = arith.constant dense<0.000000e+00> : vector<48x32xf32>
    %255 = tpu.matmul %252, %254, %cst_72 {dimension_numbers = #tpu.dot_dimension_numbers<[1], [0], [0], [1], [0, 0, 1, 1], [], []>} : vector<48x32xbf16>, vector<32x32xbf16>, vector<48x32xf32> -> vector<48x32xf32>
    %256 = vector.broadcast %184 : vector<1x32xf32> to vector<48x32xf32>
    %257 = arith.addf %255, %256 : vector<48x32xf32>
    %258 = arith.addf %147, %257 : vector<48x32xf32>
    %cst_73 = arith.constant dense<0.000000e+00> : vector<48xf32>
    %259 = vector.multi_reduction <add>, %258, %cst_73 [1] : vector<48x32xf32> to vector<48xf32>
    %260 = vector.shape_cast %259 : vector<48xf32> to vector<48x1xf32>
    %cst_74 = arith.constant 3.200000e+01 : f32
    %261 = vector.broadcast %cst_74 : f32 to vector<48x1xf32>
    %262 = arith.divf %260, %261 : vector<48x1xf32>
    %263 = vector.broadcast %262 : vector<48x1xf32> to vector<48x32xf32>
    %264 = arith.subf %258, %263 : vector<48x32xf32>
    %265 = arith.mulf %264, %264 : vector<48x32xf32>
    %cst_75 = arith.constant dense<0.000000e+00> : vector<48xf32>
    %266 = vector.multi_reduction <add>, %265, %cst_75 [1] : vector<48x32xf32> to vector<48xf32>
    %267 = vector.shape_cast %266 : vector<48xf32> to vector<48x1xf32>
    %cst_76 = arith.constant 3.200000e+01 : f32
    %268 = vector.broadcast %cst_76 : f32 to vector<48x1xf32>
    %269 = arith.divf %267, %268 : vector<48x1xf32>
    %270 = vector.broadcast %262 : vector<48x1xf32> to vector<48x32xf32>
    %271 = arith.subf %258, %270 : vector<48x32xf32>
    %cst_77 = arith.constant 9.99999997E-7 : f32
    %272 = vector.broadcast %cst_77 : f32 to vector<48x1xf32>
    %273 = arith.addf %269, %272 : vector<48x1xf32>
    %274 = math.rsqrt %273 : vector<48x1xf32>
    %275 = vector.broadcast %274 : vector<48x1xf32> to vector<48x32xf32>
    %276 = arith.mulf %271, %275 : vector<48x32xf32>
    %277 = vector.broadcast %181 : vector<1x32xf32> to vector<48x32xf32>
    %278 = arith.mulf %276, %277 : vector<48x32xf32>
    %279 = vector.broadcast %182 : vector<1x32xf32> to vector<48x32xf32>
    %280 = arith.addf %278, %279 : vector<48x32xf32>
    %281 = arith.truncf %280 : vector<48x32xf32> to vector<48x32xbf16>
    %c1_78 = arith.constant 1 : index
    %c0_79 = arith.constant 0 : index
    %c0_80 = arith.constant 0 : index
    %282 = vector.load %arg6[%c1_78, %c0_79, %c0_80] : memref<2x32x128xbf16, #tpu.memory_space<vmem>>, vector<1x32x128xbf16>
    %283 = vector.shape_cast %282 : vector<1x32x128xbf16> to vector<32x128xbf16>
    %cst_81 = arith.constant dense<0.000000e+00> : vector<48x128xf32>
    %284 = tpu.matmul %281, %283, %cst_81 {dimension_numbers = #tpu.dot_dimension_numbers<[1], [0], [0], [1], [0, 0, 1, 1], [], []>} : vector<48x32xbf16>, vector<32x128xbf16>, vector<48x128xf32> -> vector<48x128xf32>
    %285 = vector.broadcast %185 : vector<1x128xf32> to vector<48x128xf32>
    %286 = arith.addf %284, %285 : vector<48x128xf32>
    %287 = arith.mulf %286, %286 : vector<48x128xf32>
    %288 = arith.mulf %286, %287 : vector<48x128xf32>
    %cst_82 = arith.constant 4.471500e-02 : f32
    %289 = vector.broadcast %cst_82 : f32 to vector<48x128xf32>
    %290 = arith.mulf %289, %288 : vector<48x128xf32>
    %291 = arith.addf %286, %290 : vector<48x128xf32>
    %cst_83 = arith.constant 0.797884583 : f32
    %292 = vector.broadcast %cst_83 : f32 to vector<48x128xf32>
    %293 = arith.mulf %292, %291 : vector<48x128xf32>
    %294 = math.tanh %293 : vector<48x128xf32>
    %cst_84 = arith.constant 1.000000e+00 : f32
    %295 = vector.broadcast %cst_84 : f32 to vector<48x128xf32>
    %296 = arith.addf %295, %294 : vector<48x128xf32>
    %cst_85 = arith.constant 5.000000e-01 : f32
    %297 = vector.broadcast %cst_85 : f32 to vector<48x128xf32>
    %298 = arith.mulf %297, %296 : vector<48x128xf32>
    %299 = arith.mulf %286, %298 : vector<48x128xf32>
    %300 = arith.truncf %299 : vector<48x128xf32> to vector<48x128xbf16>
    %c1_86 = arith.constant 1 : index
    %c0_87 = arith.constant 0 : index
    %c0_88 = arith.constant 0 : index
    %301 = vector.load %arg7[%c1_86, %c0_87, %c0_88] : memref<2x128x32xbf16, #tpu.memory_space<vmem>>, vector<1x128x32xbf16>
    %302 = vector.shape_cast %301 : vector<1x128x32xbf16> to vector<128x32xbf16>
    %cst_89 = arith.constant dense<0.000000e+00> : vector<48x32xf32>
    %303 = tpu.matmul %300, %302, %cst_89 {dimension_numbers = #tpu.dot_dimension_numbers<[1], [0], [0], [1], [0, 0, 1, 1], [], []>} : vector<48x128xbf16>, vector<128x32xbf16>, vector<48x32xf32> -> vector<48x32xf32>
    %304 = vector.broadcast %186 : vector<1x32xf32> to vector<48x32xf32>
    %305 = arith.addf %303, %304 : vector<48x32xf32>
    %306 = arith.addf %258, %305 : vector<48x32xf32>
    %307 = vector.shape_cast %306 : vector<48x32xf32> to vector<2x24x32xf32>
    %308 = vector.extract_strided_slice %307 {offsets = [0, 0, 0], sizes = [2, 16, 32], strides = [1, 1, 1]} : vector<2x24x32xf32> to vector<2x16x32xf32>
    %cst_90 = arith.constant dense<0.000000e+00> : vector<2x16xf32>
    %309 = vector.multi_reduction <add>, %308, %cst_90 [2] : vector<2x16x32xf32> to vector<2x16xf32>
    %310 = vector.shape_cast %309 : vector<2x16xf32> to vector<2x16x1xf32>
    %cst_91 = arith.constant 3.200000e+01 : f32
    %311 = vector.broadcast %cst_91 : f32 to vector<2x16x1xf32>
    %312 = arith.divf %310, %311 : vector<2x16x1xf32>
    %313 = vector.broadcast %312 : vector<2x16x1xf32> to vector<2x16x32xf32>
    %314 = arith.subf %308, %313 : vector<2x16x32xf32>
    %315 = arith.mulf %314, %314 : vector<2x16x32xf32>
    %cst_92 = arith.constant dense<0.000000e+00> : vector<2x16xf32>
    %316 = vector.multi_reduction <add>, %315, %cst_92 [2] : vector<2x16x32xf32> to vector<2x16xf32>
    %317 = vector.shape_cast %316 : vector<2x16xf32> to vector<2x16x1xf32>
    %cst_93 = arith.constant 3.200000e+01 : f32
    %318 = vector.broadcast %cst_93 : f32 to vector<2x16x1xf32>
    %319 = arith.divf %317, %318 : vector<2x16x1xf32>
    %320 = vector.broadcast %312 : vector<2x16x1xf32> to vector<2x16x32xf32>
    %321 = arith.subf %308, %320 : vector<2x16x32xf32>
    %cst_94 = arith.constant 9.99999997E-7 : f32
    %322 = vector.broadcast %cst_94 : f32 to vector<2x16x1xf32>
    %323 = arith.addf %319, %322 : vector<2x16x1xf32>
    %324 = math.rsqrt %323 : vector<2x16x1xf32>
    %325 = vector.broadcast %324 : vector<2x16x1xf32> to vector<2x16x32xf32>
    %326 = arith.mulf %321, %325 : vector<2x16x32xf32>
    %327 = vector.shape_cast %2 : vector<1x32xf32> to vector<1x1x32xf32>
    %328 = vector.broadcast %327 : vector<1x1x32xf32> to vector<2x16x32xf32>
    %329 = arith.mulf %326, %328 : vector<2x16x32xf32>
    %330 = vector.shape_cast %3 : vector<1x32xf32> to vector<1x1x32xf32>
    %331 = vector.broadcast %330 : vector<1x1x32xf32> to vector<2x16x32xf32>
    %332 = arith.addf %329, %331 : vector<2x16x32xf32>
    %c1_95 = arith.constant 1 : index
    %c0_96 = arith.constant 0 : index
    %c0_97 = arith.constant 0 : index
    %c0_98 = arith.constant 0 : index
    %333 = vector.load %arg8[%c1_95, %c0_96, %c0_97, %c0_98] : memref<2x2x16x32xf32, #tpu.memory_space<vmem>>, vector<1x2x16x32xf32>
    %334 = vector.shape_cast %333 : vector<1x2x16x32xf32> to vector<2x16x32xf32>
    %335 = vector.shape_cast %332 : vector<2x16x32xf32> to vector<1x2x16x32xf32>
    tpu.vector_store %arg8[%c1_95, %c0_96, %c0_97, %c0_98], %335 {strides = array<i32>} : memref<2x2x16x32xf32, #tpu.memory_space<vmem>>, vector<1x2x16x32xf32>,
    %cst_99 = arith.constant dense<0.000000e+00> : vector<2x32xf32>
    %336 = vector.multi_reduction <add>, %332, %cst_99 [1] : vector<2x16x32xf32> to vector<2x32xf32>
    %cst_100 = arith.constant 1.600000e+01 : f32
    %337 = vector.broadcast %cst_100 : f32 to vector<2x32xf32>
    %338 = arith.divf %336, %337 : vector<2x32xf32>
    %c0_101 = arith.constant 0 : index
    %c0_102 = arith.constant 0 : index
    %339 = vector.load %arg9[%c0_101, %c0_102] : memref<2x32xf32, #tpu.memory_space<vmem>>, vector<2x32xf32>
    tpu.vector_store %arg9[%c0_101, %c0_102], %338 {strides = array<i32>} : memref<2x32xf32, #tpu.memory_space<vmem>>, vector<2x32xf32>,
    return
  }
}

</mosaic_0001>

<bundles_post_ra>
// kernel: timm_model_forward.1
= control target key start
LH: loop header
LB: loop body
LE: loop exit
PB: predicated region body
PF: predicated region fallthrough
CT: control target
= control target key end

     0   :  { %vm131_vm0 = vcmask 261120   ;;  %vm66_vm1 = vcmask 392192   ;;  %v127_v50 = vlaneseq  ;;  %s3840_s29 = smov 96   ;;  %v3841_v56 = vmov 0.0   ;;  %s3843_s13 = smov 112   ;;  %s4993_s3 = inlined_call_operand.vmem [shape: bf16[48,32], index: 3, kind: input, shape index: {}]   ;;  %s4994_s0 = inlined_call_operand.vmem [shape: f32[32,48], index: 0, kind: input, shape index: {}]   ;;  %s4995_s1 = inlined_call_operand.vmem [shape: f32[26,32], index: 1, kind: input, shape index: {}]   ;;  %s4996_s2 = inlined_call_operand.vmem [shape: f32[2,4,128], index: 2, kind: input, shape index: {}]   ;;  %s4997_s4 = inlined_call_operand.vmem [shape: bf16[2,32,96], index: 4, kind: input, shape index: {}]   ;;  %s4998_s5 = inlined_call_operand.vmem [shape: bf16[2,32,32], index: 5, kind: input, shape index: {}]   ;;  %s4999_s6 = inlined_call_operand.vmem [shape: bf16[2,32,128], index: 6, kind: input, shape index: {}]   ;;  %s5000_s7 = inlined_call_operand.vmem [shape: bf16[2,128,32], index: 7, kind: input, shape index: {}]   ;;  %s5001_s8 = inlined_call_operand.vmem [shape: f32[2,2,16,32], index: 8, kind: output, shape index: {0}]   ;;  %s5002_s9 = inlined_call_operand.vmem [shape: f32[2,32], index: 9, kind: output, shape index: {1}]  }
   0x1   :  { %v3632_v0 = vld [vmem:[%s4993_s3] sm:$0xff]   ;;  %v3633_v1 = vld [vmem:[%s4993_s3 + $0x8] sm:$0xff]   ;;  %v3634_v4 = vld [vmem:[%s4993_s3 + $0x10] sm:$0xff]   ;;  %vm3842_vm2 = vmmov 0   ;;  %vm340_vm3 = vcmask 130048   ;;  %vm618_vm5 = vcmask 195584  }
   0x2   :  { %3281 = vmatprep.subr.bf16.mxu0 %v3632_v0  ;;  %v36_v2 = vld [vmem:[%s4994_s0] sm:$0xff]  ;;  %v37_v3 = vld [vmem:[%s4994_s0 + $0x8] sm:$0xff]  ;;  %v34_v6 = vld [vmem:[%s4995_s1 + $0x10] sm:$0xff]  ;;  %v3966_v51 = vshrl.u32 %v127_v50, 7  ;;  %s3844_s14 = smov 64   ;;  %vm770_vm6 = vcmask 1043456  }
   0x3   :  { %3282 = vmatpush3.bf16.msra.mxu0 %v3632_v0  ;;  %v40_v5 = vpack.c.bf16 %v37_v3, %v36_v2  ;;  %v138_v7 = vsel %vm131_vm0, %v34_v6, 0.0  ;;  %v38_v8 = vld [vmem:[%s4994_s0 + $0x10] sm:$0xff]  ;;  %v39_v9 = vld [vmem:[%s4994_s0 + $0x18] sm:$0xff]  ;;  %v32_v11 = vld [vmem:[%s4995_s1] sm:$0xff]  ;;  %s3845_s19 = smov 16   ;;  %s3846_s20 = smov 32  }
   0x4   :  { %3283 = vmatprep.subr.bf16.mxu0 %v3633_v1  ;;  %139 = vadd.xlane.f32.xlu1 %v138_v7  ;;  %v41_v10 = vpack.c.bf16 %v39_v9, %v38_v8  ;;  %v33_v15 = vld [vmem:[%s4995_s1 + $0x8] sm:$0xff]  ;;  %v3969_v52 = vsub.s32 0, %v3966_v51  ;;  %v3974_v53 = vld [vmem:[%s4996_s2] sm:$0xf]  ;;  %vm2999_vm7 = vcmask 1041409   ;;  %vm3002_vm8 = vcmask 254976  }
   0x5   :  { %3287 = vmatprep.mubr.msk.bf16.mxu0 %vm66_vm1, %v40_v5  ;;  %v3635_v55 = vld [vmem:[%s4997_s4] sm:$0xff]   ;;  %v3636_v57 = vld [vmem:[%s4997_s4 + $0x8] sm:$0xff]  }
   0x6   :  { %v3978_v54 = vrot.slane %v3974_v53, %v3969_v52 }
   0x7   :  { %3284 = vmatpush3.bf16.msra.mxu0 %v3633_v1 }
   0x8   :  { %3285 = vmatprep.subr.bf16.mxu0 %v3634_v4 }
   0xb   :  { %3286 = vmatpush3.bf16.msra.mxu0 %v3634_v4 }
   0xc   :  { %3291 = vmatprep.subr.bf16.mxu0 %v3841_v56 }
   0xe   :  { %3288 = vmatmul.mubr.msk.bf16.vlgmr.msra.gmra.mrb[0].mxu0 %vm66_vm1, %v41_v10 }
   0xf   :  { %3292 = vmatpush3.bf16.msra.mxu0 %v3635_v55  ;;  %3295 = vmatprep.mubr.msk.bf16.mxu0 %vm3842_vm2, %v3841_v56 }
  0x10   :  { %3293 = vmatprep.subr.bf16.mxu0 %v3841_v56 }
  0x13   :  { %3294 = vmatpush3.bf16.msra.mxu0 %v3636_v57 }
  0x91   :  { %v140_v25 = vpop.xlane.xlu1 %139 }
  0x92   :  { %v150_v26 = vmul.f32 0.03125, %v140_v25 }
  0x94   :  { %v3944_v29 = vsub.f32 %v34_v6, %v150_v26 }
  0x96   :  { %v160_v36 = vmul.f32 %v3944_v29, %v3944_v29 }
  0x98   :  { %v169_v42 = vsel %vm131_vm0, %v160_v36, 0.0 }
  0xe1   :  { %v3289_v12 = vpop.f32.mrb[0].mxu0 }
  0xe2   :  { %v3925_v13 = vadd.f32 %v3289_v12, %v32_v11  ;;  %v107_v14 = vpop.f32.mrb[1].mxu0 }
  0xe3   :  { %v3930_v16 = vadd.f32 %v107_v14, %v32_v11  ;;  %v3290_v17 = vpop.f32.mrb[2].mxu0 }
  0xe4   :  { %v110_v18 = vpop.f32.mrb[3].mxu0  ;;  %v141_v19 = vsel %vm131_vm0, %v3925_v13, 0.0  ;;  %v3938_v22 = vadd.f32 %v3290_v17, %v33_v15 }
  0xe5   :  { %v3934_v20 = vadd.f32 %v110_v18, %v33_v15  ;;  %142 = vadd.xlane.f32.xlu1 %v141_v19  ;;  %v132_v21 = vsel %vm131_vm0, %v3930_v16, 0.0 }
  0xe6   :  { %133 = vadd.xlane.f32.xlu0 %v132_v21  ;;  %v144_v24 = vsel %vm131_vm0, %v3938_v22, 0.0 }
  0xe7   :  { %v135_v23 = vsel %vm131_vm0, %v3934_v20, 0.0 }
  0xea   :  { %136 = vadd.xlane.f32.xlu0 %v135_v23 }
  0xee   :  { %145 = vadd.xlane.f32.xlu0 %v144_v24 }
 0x172   :  { %v143_v27 = vpop.xlane.xlu1 %142 }
 0x173   :  { %v134_v28 = vpop.xlane.xlu0 %133  ;;  %v151_v31 = vmul.f32 0.03125, %v143_v27 }
 0x174   :  { %v148_v30 = vmul.f32 0.03125, %v134_v28 }
 0x175   :  { %v3950_v37 = vsub.f32 %v3925_v13, %v151_v31 }
 0x176   :  { %v153_v32 = vsub.f32 %v3930_v16, %v148_v30 }
 0x177   :  { %v137_v33 = vpop.xlane.xlu0 %136  ;;  %v161_v46 = vmul.f32 %v3950_v37, %v3950_v37 }
 0x178   :  { %v149_v34 = vmul.f32 0.03125, %v137_v33  ;;  %v158_v35 = vmul.f32 %v153_v32, %v153_v32 }
 0x179   :  { %v172_v48 = vsel %vm131_vm0, %v161_v46, 0.0 }
 0x17a   :  { %v154_v38 = vsub.f32 %v3934_v20, %v149_v34  ;;  %v163_v39 = vsel %vm131_vm0, %v158_v35, 0.0 }
 0x17b   :  { %164 = vadd.xlane.f32.xlu1 %v163_v39  ;;  %v146_v40 = vpop.xlane.xlu0 %145 }
 0x17c   :  { %v152_v41 = vmul.f32 0.03125, %v146_v40  ;;  %v159_v43 = vmul.f32 %v154_v38, %v154_v38 }
 0x17e   :  { %v3956_v44 = vsub.f32 %v3938_v22, %v152_v41  ;;  %v166_v45 = vsel %vm131_vm0, %v159_v43, 0.0 }
 0x17f   :  { %170 = vadd.xlane.f32.xlu1 %v169_v42  ;;  %167 = vadd.xlane.f32.xlu0 %v166_v45 }
 0x180   :  { %v162_v47 = vmul.f32 %v3956_v44, %v3956_v44 }
 0x182   :  { %v175_v49 = vsel %vm131_vm0, %v162_v47, 0.0 }
 0x183   :  { %173 = vadd.xlane.f32.xlu0 %v172_v48  ;;  %176 = vadd.xlane.f32.xlu1 %v175_v49 }
 0x199   :  { %208 = vrot.lane.b32.xlu0 %v3978_v54, %s3840_s29 }
 0x208   :  { %v165_v58 = vpop.xlane.xlu1 %164 }
 0x209   :  { %v178_v59 = vmul.f32 0.03125, %v165_v58 }
 0x20b   :  { %v183_v60 = vadd.f32 1e-06, %v178_v59 }
 0x20c   :  { %v171_v61 = vpop.xlane.xlu1 %170  ;;  %v168_v62 = vpop.xlane.xlu0 %167 }
 0x20d   :  { %3663 = vrsqrt.f32 %v183_v60  ;;  %v180_v63 = vmul.f32 0.03125, %v171_v61  ;;  %v179_v0 = vmul.f32 0.03125, %v168_v62 }
 0x20f   :  { %v184_v1 = vadd.f32 1e-06, %v179_v0  ;;  %v185_v2 = vadd.f32 1e-06, %v180_v63 }
 0x210   :  { %v177_v3 = vpop.xlane.xlu1 %176  ;;  %v174_v4 = vpop.xlane.xlu0 %173 }
 0x211   :  { %v181_v5 = vmul.f32 0.03125, %v174_v4  ;;  %3665 = vrsqrt.f32 %v184_v1  ;;  %v182_v6 = vmul.f32 0.03125, %v177_v3 }
 0x212   :  { %3667 = vrsqrt.f32 %v185_v2 }
 0x213   :  { %v186_v7 = vadd.f32 1e-06, %v181_v5  ;;  %v187_v8 = vadd.f32 1e-06, %v182_v6 }
 0x214   :  { %v209_v17 = vpop.permute.xlu0 %208 }
 0x215   :  { %3669 = vrsqrt.f32 %v186_v7 }
 0x216   :  { %3671 = vrsqrt.f32 %v187_v8 }
 0x217   :  { %v3664_v9 = vpop.eup %3663 }
 0x218   :  { %v193_v10 = vmul.f32 %v3664_v9, %v153_v32 }
 0x21a   :  { %v202_v14 = vmul.f32 %v3978_v54, %v193_v10 }
 0x21b   :  { %v3666_v11 = vpop.eup %3665 }
 0x21c   :  { %v194_v12 = vmul.f32 %v3666_v11, %v154_v38  ;;  %v3668_v15 = vpop.eup %3667  ;;  %v211_v21 = vadd.f32 %v209_v17, %v202_v14 }
 0x21d   :  { %v195_v24 = vmul.f32 %v3668_v15, %v3944_v29 }
 0x21e   :  { %v203_v18 = vmul.f32 %v3978_v54, %v194_v12 }
 0x21f   :  { %v3670_v19 = vpop.eup %3669  ;;  %v204_v30 = vmul.f32 %v3978_v54, %v195_v24 }
 0x220   :  { %v212_v23 = vadd.f32 %v209_v17, %v203_v18  ;;  %v196_v25 = vmul.f32 %v3670_v19, %v3950_v37  ;;  %v3672_v28 = vpop.eup %3671  ;;  %v4008_v37 = vsub.s32 1, %v3966_v51 }
 0x221   :  { %v197_v32 = vmul.f32 %v3672_v28, %v3956_v44  ;;  %v213_v33 = vadd.f32 %v209_v17, %v204_v30 }
 0x222   :  { %v216_v26 = vpack.c.bf16 %v212_v23, %v211_v21  ;;  %v205_v27 = vmul.f32 %v3978_v54, %v196_v25  ;;  %v4012_v38 = vrot.slane %v3974_v53, %v4008_v37 }
 0x223   :  { %v206_v29 = vmul.f32 %v3978_v54, %v197_v32 }
 0x224   :  { %3296 = vmatmul.mubr.msk.bf16.vlgmr.msra.gmra.mrb[4].mxu0 %vm131_vm0, %v216_v26  ;;  %v214_v31 = vadd.f32 %v209_v17, %v205_v27 }
 0x225   :  { %3299 = vmatprep.mubr.msk.bf16.mxu0 %vm3842_vm2, %v3841_v56  ;;  %v215_v35 = vadd.f32 %v209_v17, %v206_v29 }
 0x226   :  { %v217_v34 = vpack.c.bf16 %v214_v31, %v213_v33 }
 0x227   :  { %v218_v36 = vpack.c.bf16 %v213_v33, %v215_v35 }
 0x22c   :  { %3300 = vmatmul.mubr.msk.bf16.gmra.mrb[8].mxu0 %vm131_vm0, %v217_v34 }
 0x22d   :  { %3303 = vmatprep.mubr.msk.bf16.mxu0 %vm3842_vm2, %v3841_v56 }
 0x234   :  { %3304 = vmatmul.mubr.msk.bf16.gmra.mrb[12].mxu0 %vm131_vm0, %v218_v36 }
 0x2f7   :  { %v282_v39 = vpop.f32.mrb[4].mxu0 }
 0x2f8   :  { %v283_v40 = vadd.f32 %v282_v39, %v4012_v38  ;;  %v3297_v41 = vpop.f32.mrb[5].mxu0 }
 0x2f9   :  { %v285_v42 = vpop.f32.mrb[6].mxu0 }
 0x2fa   :  { %v3148_v43 = vpack.c.bf16 %v283_v40, %v283_v40  ;;  %v286_v44 = vadd.f32 %v285_v42, %v4012_v38  ;;  %v3298_v45 = vpop.f32.mrb[7].mxu0  ;;  %v4093_v42 = vand.u32 127, %v127_v50 }
 0x2fc   :  { %v4016_v46 = vpack.c.bf16 %v286_v44, %v283_v40  ;;  %323 = vrot.lane.b32.xlu1 %v3148_v43, %s3843_s13  ;;  %v3149_v47 = vpack.c.bf16 %v286_v44, %v286_v44  ;;  %vm129_vm4 = vcmp.lt.s32.totalorder %v4093_v42, 17 }
 0x2fe   :  { %3311 = vmatprep.mubr.msk.bf16.mxu0 %vm340_vm3, %v4016_v46 }
 0x2ff   :  { %v290_v48 = vpop.f32.mrb[8].mxu0 }
 0x300   :  { %v291_v49 = vadd.f32 %v290_v48, %v4012_v38  ;;  %325 = vrot.lane.b32.xlu1 %v3149_v47, %s3843_s13  ;;  %v3301_v53 = vpop.f32.mrb[9].mxu0 }
 0x301   :  { %v293_v55 = vpop.f32.mrb[10].mxu0 }
 0x302   :  { %v4023_v57 = vpack.c.bf16 %v291_v49, %v291_v49  ;;  %v294_v58 = vadd.f32 %v293_v55, %v4012_v38  ;;  %v3302_v59 = vpop.f32.mrb[11].mxu0 }
 0x304   :  { %v306_v60 = vpack.c.bf16 %v294_v58, %v291_v49  ;;  %v3151_v61 = vpack.c.bf16 %v294_v58, %v294_v58  ;;  %327 = vrot.lane.b32.xlu1 %v4023_v57, %s3843_s13 }
 0x306   :  { %329 = vrot.lane.b32.xlu0 %v3151_v61, %s3843_s13  ;;  %v314_v7 = vunpack.c.h.b16 %v306_v60 }
 0x307   :  { %v298_v62 = vpop.f32.mrb[12].mxu0 }
 0x308   :  { %v299_v63 = vadd.f32 %v298_v62, %v4012_v38  ;;  %v3305_v0 = vpop.f32.mrb[13].mxu0 }
 0x309   :  { %v301_v1 = vpop.f32.mrb[14].mxu0 }
 0x30a   :  { %v3152_v2 = vpack.c.bf16 %v299_v63, %v299_v63  ;;  %v302_v3 = vadd.f32 %v301_v1, %v4012_v38  ;;  %v3306_v4 = vpop.f32.mrb[15].mxu0 }
 0x30c   :  { %v307_v5 = vpack.c.bf16 %v302_v3, %v299_v63  ;;  %v4031_v6 = vpack.c.bf16 %v302_v3, %v302_v3  ;;  %331 = vrot.lane.b32.xlu1 %v3152_v2, %s3843_s13 }
 0x30e   :  { %v315_v8 = vunpack.c.l.b16 %v307_v5  ;;  %333 = vrot.lane.b32.xlu0 %v4031_v6, %s3843_s13 }
 0x310   :  { %336 = vrot.lane.b32.xlu1 %v4016_v46, %s3840_s29  ;;  %v4038_v9 = vpack.c.b16 %v315_v8, %v314_v7 }
 0x312   :  { %338 = vrot.lane.b32.xlu0 %v4023_v57, %s3840_s29  ;;  %3319 = vmatprep.mubr.msk.bf16.mxu1 %vm340_vm3, %v4038_v9 }
 0x314   :  { %402 = vrot.lane.b32.xlu1 %v4038_v9, %s3840_s29 }
 0x318   :  { %404 = vrot.lane.b32.xlu1 %v4031_v6, %s3840_s29 }
 0x36e   :  { %v324_v10 = vpop.permute.xlu1 %323 }
 0x372   :  { %v326_v11 = vpop.permute.xlu1 %325 }
 0x373   :  { %v4048_v12 = vcombine.low %v324_v10, %v326_v11 }
 0x375   :  { %471 = vrot.lane.b32.xlu0 %v4048_v12, %s3840_s29 }
 0x376   :  { %v328_v14 = vpop.permute.xlu1 %327 }
 0x377   :  { %v4052_v15 = vcombine.low %v328_v14, %v328_v14 }
 0x378   :  { %v330_v17 = vpop.permute.xlu0 %329 }
 0x379   :  { %473 = vrot.lane.b32.xlu0 %v4052_v15, %s3840_s29 }
 0x37e   :  { %v332_v18 = vpop.permute.xlu1 %331 }
 0x37f   :  { %v4056_v19 = vcombine.low %v330_v17, %v332_v18 }
 0x380   :  { %v334_v21 = vpop.permute.xlu0 %333 }
 0x381   :  { %v4058_v23 = vcombine.low %v334_v21, %v334_v21  ;;  %540 = vrot.lane.b32.xlu1 %v4056_v19, %s3840_s29 }
 0x382   :  { %v337_v24 = vpop.permute.xlu1 %336 }
 0x383   :  { %3571 = vmatprep.subr.msk.bf16.mxu0 %vm340_vm3, %v337_v24  ;;  %542 = vrot.lane.b32.xlu0 %v4058_v23, %s3840_s29  ;;  %v348_v25 = vsel %vm340_vm3, %v337_v24, 0 }
 0x384   :  { %3308 = vmatpush3.bf16.xpose.msra.mxu0 %v348_v25  ;;  %v339_v26 = vpop.permute.xlu0 %338 }
 0x385   :  { %3572 = vmatprep.subr.msk.bf16.mxu0 %vm340_vm3, %v339_v26  ;;  %v351_v31 = vsel %vm340_vm3, %v339_v26, 0 }
 0x386   :  { %v403_v27 = vpop.permute.xlu1 %402 }
 0x387   :  { %3573 = vmatprep.subr.msk.bf16.mxu1 %vm340_vm3, %v403_v27  ;;  %v413_v28 = vsel %vm340_vm3, %v403_v27, 0 }
 0x388   :  { %3316 = vmatpush3.bf16.xpose.msra.mxu1 %v413_v28 }
 0x38a   :  { %v405_v30 = vpop.permute.xlu1 %404 }
 0x38b   :  { %3574 = vmatprep.subr.msk.bf16.mxu1 %vm340_vm3, %v405_v30  ;;  %v416_v32 = vsel %vm340_vm3, %v405_v30, 0 }
 0x38c   :  { %3310 = vmatpush3.bf16.xpose.msra.mxu0 %v351_v31 }
 0x390   :  { %3318 = vmatpush3.bf16.xpose.msra.mxu1 %v416_v32 }
 0x393   :  { %3312 = vmatmul.mubr.msk.bf16.vlgmr.msra.gmra.mrb[16].mxu0 %vm340_vm3, %v4023_v57 }
 0x394   :  { %3327 = vmatprep.mubr.msk.bf16.mxu0 %vm340_vm3, %v4048_v12 }
 0x397   :  { %3320 = vmatmul.mubr.msk.bf16.vlgmr.msra.gmra.mrb[0].mxu1 %vm340_vm3, %v4031_v6 }
 0x398   :  { %3335 = vmatprep.mubr.msk.bf16.mxu1 %vm340_vm3, %v4056_v19 }
 0x3e7   :  { %v472_v33 = vpop.permute.xlu0 %471 }
 0x3e8   :  { %3575 = vmatprep.subr.msk.bf16.mxu0 %vm340_vm3, %v472_v33  ;;  %v482_v34 = vsel %vm340_vm3, %v472_v33, 0 }
 0x3e9   :  { %3324 = vmatpush3.bf16.xpose.msra.mxu0 %v482_v34 }
 0x3eb   :  { %v474_v29 = vpop.permute.xlu0 %473 }
 0x3ec   :  { %3576 = vmatprep.subr.msk.bf16.mxu0 %vm340_vm3, %v474_v29  ;;  %v485_v35 = vsel %vm340_vm3, %v474_v29, 0 }
 0x3f1   :  { %3326 = vmatpush3.bf16.xpose.msra.mxu0 %v485_v35 }
 0x3f3   :  { %v541_v36 = vpop.permute.xlu1 %540 }
 0x3f4   :  { %3577 = vmatprep.subr.msk.bf16.mxu1 %vm340_vm3, %v541_v36  ;;  %v551_v39 = vsel %vm340_vm3, %v541_v36, 0 }
 0x3f5   :  { %v543_v40 = vpop.permute.xlu0 %542  ;;  %3332 = vmatpush3.bf16.xpose.msra.mxu1 %v551_v39 }
 0x3f6   :  { %3578 = vmatprep.subr.msk.bf16.mxu1 %vm340_vm3, %v543_v40  ;;  %v554_v41 = vsel %vm340_vm3, %v543_v40, 0 }
 0x3f8   :  { %3328 = vmatmul.mubr.msk.bf16.vlgmr.msra.gmra.mrb[20].mxu0 %vm340_vm3, %v4052_v15 }
 0x3fd   :  { %3334 = vmatpush3.bf16.xpose.msra.mxu1 %v554_v41 }
 0x404   :  { %3336 = vmatmul.mubr.msk.bf16.vlgmr.msra.gmra.mrb[4].mxu1 %vm340_vm3, %v4058_v23 }
 0x466   :  { %v3313_v43 = vpop.f32.mrb[16].mxu0 }
 0x467   :  { %v4098_v44 = vsel %vm129_vm4, %v3313_v43, -1e+30  ;;  %v387_v45 = vpop.f32.mrb[17].mxu0 }
 0x468   :  { %v4102_v47 = vsel %vm129_vm4, %v387_v45, -1e+30  ;;  %v3314_v48 = vpop.f32.mrb[18].mxu0  ;;  %v625_v49 = vsel %vm618_vm5, %v4098_v44, -inf }
 0x469   :  { %626 = vmax.xlane.f32.xlu0 %v625_v49  ;;  %v390_v50 = vpop.f32.mrb[19].mxu0  ;;  %v619_v53 = vsel %vm618_vm5, %v4102_v47, -inf }
 0x46a   :  { %v607_v55 = vsel %vm129_vm4, %v390_v50, -1e+30  ;;  %v3321_v58 = vpop.f32.mrb[0].mxu1  ;;  %620 = vmax.xlane.f32.xlu1 %v619_v53 }
 0x46b   :  { %v452_v59 = vpop.f32.mrb[1].mxu1  ;;  %v622_v60 = vsel %vm618_vm5, %v607_v55, -inf  ;;  %v611_v1 = vsel %vm129_vm4, %v3321_v58, -1e+30 }
 0x46c   :  { %v4113_v61 = vsel %vm129_vm4, %v452_v59, -1e+30  ;;  %v3322_v62 = vpop.f32.mrb[2].mxu1  ;;  %v634_v2 = vsel %vm618_vm5, %v611_v1, -inf }
 0x46d   :  { %v455_v63 = vpop.f32.mrb[3].mxu1  ;;  %623 = vmax.xlane.f32.xlu0 %v622_v60  ;;  %v628_v0 = vsel %vm618_vm5, %v4113_v61, -inf }
 0x46e   :  { %629 = vmax.xlane.f32.xlu1 %v628_v0  ;;  %v4140_v21 = vsel %vm129_vm4, %v455_v63, -1e+30 }
 0x46f   :  { %v631_v24 = vsel %vm618_vm5, %v4140_v21, -inf }
 0x472   :  { %635 = vmax.xlane.f32.xlu1 %v634_v2 }
 0x4cb   :  { %v3329_v3 = vpop.f32.mrb[20].mxu0 }
 0x4cc   :  { %v4122_v4 = vsel %vm129_vm4, %v3329_v3, -1e+30  ;;  %v521_v5 = vpop.f32.mrb[21].mxu0 }
 0x4cd   :  { %v3330_v7 = vpop.f32.mrb[22].mxu0  ;;  %v643_v8 = vsel %vm618_vm5, %v4122_v4, -inf  ;;  %v4128_v10 = vsel %vm129_vm4, %v521_v5, -1e+30 }
 0x4ce   :  { %644 = vmax.xlane.f32.xlu0 %v643_v8  ;;  %v524_v11 = vpop.f32.mrb[23].mxu0  ;;  %v637_v18 = vsel %vm618_vm5, %v4128_v10, -inf }
 0x4cf   :  { %v4132_v14 = vsel %vm129_vm4, %v524_v11, -1e+30 }
 0x4d0   :  { %v640_v17 = vsel %vm618_vm5, %v4132_v14, -inf }
 0x4d1   :  { %641 = vmax.xlane.f32.xlu1 %v640_v17 }
 0x4d2   :  { %638 = vmax.xlane.f32.xlu0 %v637_v18 }
 0x4d6   :  { %632 = vmax.xlane.f32.xlu0 %v631_v24 }
 0x4d7   :  { %v3337_v25 = vpop.f32.mrb[4].mxu1 }
 0x4d8   :  { %v590_v26 = vpop.f32.mrb[5].mxu1  ;;  %v4152_v32 = vsel %vm129_vm4, %v3337_v25, -1e+30 }
 0x4d9   :  { %v4146_v27 = vsel %vm129_vm4, %v590_v26, -1e+30  ;;  %v3338_v28 = vpop.f32.mrb[6].mxu1  ;;  %v652_v33 = vsel %vm618_vm5, %v4152_v32, -inf }
 0x4da   :  { %v593_v30 = vpop.f32.mrb[7].mxu1  ;;  %v646_v31 = vsel %vm618_vm5, %v4146_v27, -inf }
 0x4db   :  { %647 = vmax.xlane.f32.xlu0 %v646_v31  ;;  %v4166_v36 = vsel %vm129_vm4, %v593_v30, -1e+30 }
 0x4df   :  { %653 = vmax.xlane.f32.xlu0 %v652_v33 }
 0x4e2   :  { %759 = vrot.lane.b32.xlu1 %v4016_v46, %s3844_s14  ;;  %v649_v46 = vsel %vm618_vm5, %v4166_v36, -inf }
 0x4e6   :  { %884 = vrot.lane.b32.xlu1 %v4048_v12, %s3844_s14 }
 0x4f5   :  { %761 = vrot.lane.b32.xlu0 %v4023_v57, %s3844_s14 }
 0x4f6   :  { %v627_v34 = vpop.xlane.xlu0 %626 }
 0x4f7   :  { %v657_v41 = vsub.f32 %v4098_v44, %v627_v34 }
 0x4f9   :  { %824 = vrot.lane.b32.xlu0 %v4031_v6, %s3844_s14  ;;  %v621_v6 = vpop.xlane.xlu1 %620  ;;  %v671_v43 = vmul.f32 1.442695, %v657_v41 }
 0x4fa   :  { %v624_v29 = vpop.xlane.xlu0 %623  ;;  %v655_v45 = vsub.f32 %v4102_v47, %v621_v6 }
 0x4fb   :  { %v656_v35 = vsub.f32 %v607_v55, %v624_v29 }
 0x4fc   :  { %v667_v49 = vmul.f32 1.442695, %v655_v45 }
 0x4fd   :  { %v669_v39 = vmul.f32 1.442695, %v656_v35  ;;  %v630_v40 = vpop.xlane.xlu1 %629 }
 0x4fe   :  { %v658_v53 = vsub.f32 %v4113_v61, %v630_v40 }
 0x4ff   :  { %3673 = vpow2.f32 %v669_v39 }
 0x500   :  { %3675 = vpow2.f32 %v671_v43  ;;  %v673_v58 = vmul.f32 1.442695, %v658_v53 }
 0x501   :  { %v636_v48 = vpop.xlane.xlu1 %635  ;;  %3677 = vpow2.f32 %v667_v49 }
 0x502   :  { %v660_v50 = vsub.f32 %v611_v1, %v636_v48 }
 0x504   :  { %v677_v55 = vmul.f32 1.442695, %v660_v50 }
 0x506   :  { %3679 = vpow2.f32 %v677_v55 }
 0x507   :  { %3681 = vpow2.f32 %v673_v58 }
 0x509   :  { %v4170_v12 = vpop.eup %3673 }
 0x50a   :  { %650 = vmax.xlane.f32.xlu1 %v649_v46  ;;  %v694_v57 = vsel %vm618_vm5, %v4170_v12, 0.0 }
 0x518   :  { %695 = vadd.xlane.f32.xlu0 %v694_v57 }
 0x51b   :  { %822 = vrot.lane.b32.xlu1 %v4038_v9, %s3844_s14  ;;  %v4181_v9 = vpop.eup %3675 }
 0x51c   :  { %v4185_v44 = vpop.eup %3677 }
 0x51d   :  { %v691_v47 = vsel %vm618_vm5, %v4185_v44, 0.0  ;;  %v4189_v59 = vpop.eup %3679 }
 0x51e   :  { %v706_v60 = vsel %vm618_vm5, %v4189_v59, 0.0  ;;  %v4193_v61 = vpop.eup %3681 }
 0x51f   :  { %886 = vrot.lane.b32.xlu1 %v4052_v15, %s3844_s14  ;;  %v697_v15 = vsel %vm618_vm5, %v4181_v9, 0.0  ;;  %v700_v62 = vsel %vm618_vm5, %v4193_v61, 0.0 }
 0x543   :  { %698 = vadd.xlane.f32.xlu1 %v697_v15 }
 0x547   :  { %692 = vadd.xlane.f32.xlu1 %v691_v47 }
 0x54b   :  { %707 = vadd.xlane.f32.xlu1 %v706_v60 }
 0x54f   :  { %701 = vadd.xlane.f32.xlu1 %v700_v62 }
 0x55b   :  { %v645_v63 = vpop.xlane.xlu0 %644 }
 0x55c   :  { %v663_v5 = vsub.f32 %v4122_v4, %v645_v63 }
 0x55e   :  { %v642_v0 = vpop.xlane.xlu1 %641  ;;  %v683_v17 = vmul.f32 1.442695, %v663_v5 }
 0x55f   :  { %v662_v1 = vsub.f32 %v4132_v14, %v642_v0  ;;  %v639_v2 = vpop.xlane.xlu0 %638 }
 0x560   :  { %v661_v18 = vsub.f32 %v4128_v10, %v639_v2 }
 0x561   :  { %v681_v3 = vmul.f32 1.442695, %v662_v1 }
 0x562   :  { %v760_v7 = vpop.permute.xlu1 %759  ;;  %v679_v26 = vmul.f32 1.442695, %v661_v18 }
 0x563   :  { %3683 = vpow2.f32 %v681_v3  ;;  %v633_v8 = vpop.xlane.xlu0 %632  ;;  %3339 = vmatprep.subr.bf16.mxu0 %v760_v7 }
 0x564   :  { %v659_v11 = vsub.f32 %v4140_v21, %v633_v8  ;;  %3340 = vmatpush3.bf16.msra.mxu0 %v760_v7 }
 0x566   :  { %v675_v24 = vmul.f32 1.442695, %v659_v11  ;;  %v885_v29 = vpop.permute.xlu1 %884 }
 0x568   :  { %3685 = vpow2.f32 %v675_v24  ;;  %v648_v25 = vpop.xlane.xlu0 %647 }
 0x569   :  { %3687 = vpow2.f32 %v683_v17  ;;  %v664_v30 = vsub.f32 %v4146_v27, %v648_v25 }
 0x56a   :  { %3689 = vpow2.f32 %v679_v26 }
 0x56b   :  { %v685_v35 = vmul.f32 1.442695, %v664_v30 }
 0x56c   :  { %v654_v14 = vpop.xlane.xlu0 %653 }
 0x56d   :  { %v4201_v28 = vpop.eup %3683  ;;  %v666_v4 = vsub.f32 %v4152_v32, %v654_v14 }
 0x56e   :  { %v712_v21 = vsel %vm618_vm5, %v4201_v28, 0.0 }
 0x56f   :  { %v689_v31 = vmul.f32 1.442695, %v666_v4  ;;  %713 = vadd.xlane.f32.xlu1 %v712_v21 }
 0x570   :  { %v762_v10 = vpop.permute.xlu0 %761 }
 0x571   :  { %3579 = vmatprep.subr.msk.bf16.mxu0 %vm770_vm6, %v762_v10  ;;  %v772_v33 = vsel %vm770_vm6, %v762_v10, 0  ;;  %3691 = vpow2.f32 %v689_v31 }
 0x572   :  { %v4209_v34 = vpop.eup %3685  ;;  %3342 = vmatpush3.bf16.msra.mxu0 %v772_v33  ;;  %3693 = vpow2.f32 %v685_v35 }
 0x573   :  { %3355 = vmatprep.subr.bf16.mxu0 %v885_v29  ;;  %v703_v27 = vsel %vm618_vm5, %v4209_v34, 0.0  ;;  %v4213_v32 = vpop.eup %3687 }
 0x574   :  { %704 = vadd.xlane.f32.xlu0 %v703_v27  ;;  %v715_v39 = vsel %vm618_vm5, %v4213_v32, 0.0  ;;  %v4217_v46 = vpop.eup %3689  ;;  %v825_v53 = vpop.permute.xlu0 %824 }
 0x575   :  { %v709_v57 = vsel %vm618_vm5, %v4217_v46, 0.0  ;;  %v834_v55 = vsel %vm770_vm6, %v825_v53, 0 }
 0x578   :  { %716 = vadd.xlane.f32.xlu0 %v715_v39 }
 0x57b   :  { %v4221_v6 = vpop.eup %3691 }
 0x57c   :  { %710 = vadd.xlane.f32.xlu0 %v709_v57  ;;  %v724_v40 = vsel %vm618_vm5, %v4221_v6, 0.0  ;;  %v4225_v41 = vpop.eup %3693 }
 0x57d   :  { %v718_v43 = vsel %vm618_vm5, %v4225_v41, 0.0 }
 0x580   :  { %725 = vadd.xlane.f32.xlu0 %v724_v40 }
 0x584   :  { %719 = vadd.xlane.f32.xlu0 %v718_v43 }
 0x597   :  { %v651_v45 = vpop.xlane.xlu1 %650 }
 0x598   :  { %v665_v48 = vsub.f32 %v4166_v36, %v651_v45 }
 0x59a   :  { %v687_v49 = vmul.f32 1.442695, %v665_v48  ;;  %948 = vrot.lane.b32.xlu0 %v4058_v23, %s3844_s14 }
 0x59b   :  { %v823_v50 = vpop.permute.xlu1 %822 }
 0x59c   :  { %3695 = vpow2.f32 %v687_v49  ;;  %3347 = vmatprep.subr.bf16.mxu1 %v823_v50 }
 0x59d   :  { %3348 = vmatpush3.bf16.msra.mxu1 %v823_v50 }
 0x59e   :  { %3580 = vmatprep.subr.msk.bf16.mxu1 %vm770_vm6, %v825_v53 }
 0x59f   :  { %v887_v23 = vpop.permute.xlu1 %886 }
 0x5a1   :  { %3350 = vmatpush3.bf16.msra.mxu1 %v834_v55 }
 0x5a5   :  { %v696_v36 = vpop.xlane.xlu0 %695 }
 0x5a6   :  { %v4234_v58 = vpop.eup %3695 }
 0x5a7   :  { %v721_v15 = vsel %vm618_vm5, %v4234_v58, 0.0 }
 0x5a8   :  { %722 = vadd.xlane.f32.xlu1 %v721_v15  ;;  %v3637_v15 = vld [vmem:[%s4998_s5] sm:$0xff]  }
 0x5b9   :  { %946 = vrot.lane.b32.xlu1 %v4056_v19, %s3844_s14  ;;  %v896_v19 = vsel %vm770_vm6, %v887_v23, 0 }
 0x5d0   :  { %v699_v47 = vpop.xlane.xlu1 %698 }
 0x5d1   :  { %3697 = vrcp.f32 %v699_v47 }
 0x5d2   :  { %3699 = vrcp.f32 %v696_v36 }
 0x5d4   :  { %v693_v60 = vpop.xlane.xlu1 %692 }
 0x5d5   :  { %3701 = vrcp.f32 %v693_v60 }
 0x5d8   :  { %v708_v8 = vpop.xlane.xlu1 %707 }
 0x5d9   :  { %3703 = vrcp.f32 %v708_v8 }
 0x5db   :  { %v3698_v62 = vpop.eup %3697 }
 0x5dc   :  { %v3700_v63 = vpop.eup %3699  ;;  %v741_v1 = vmul.f32 %v3698_v62, %v4181_v9  ;;  %v702_v9 = vpop.xlane.xlu1 %701  ;;  %v3638_v62 = vld [vmem:[%s4998_s5 + $0x8] sm:$0xff]  }
 0x5dd   :  { %v740_v3 = vmul.f32 %v3700_v63, %v4170_v12  ;;  %3705 = vrcp.f32 %v702_v9 }
 0x5de   :  { %v752_v7 = vpack.c.bf16 %v741_v1, %v741_v1 }
 0x5df   :  { %v3702_v0 = vpop.eup %3701 }
 0x5e0   :  { %v739_v2 = vmul.f32 %v3702_v0, %v4185_v44 }
 0x5e2   :  { %v751_v5 = vpack.c.bf16 %v740_v3, %v739_v2 }
 0x5e3   :  { %v3704_v17 = vpop.eup %3703 }
 0x5e4   :  { %3343 = vmatprep.mubr.msk.bf16.mxu0 %vm618_vm5, %v751_v5  ;;  %v744_v26 = vmul.f32 %v3704_v17, %v4189_v59 }
 0x5e5   :  { %3344 = vmatmul.mubr.msk.bf16.vlgmr.msra.gmra.mrb[24].mxu0 %vm618_vm5, %v752_v7 }
 0x5e6   :  { %3356 = vmatpush3.bf16.msra.mxu0 %v885_v29  ;;  %v754_v21 = vpack.c.bf16 %v744_v26, %v744_v26 }
 0x5e7   :  { %3581 = vmatprep.subr.msk.bf16.mxu0 %vm770_vm6, %v887_v23  ;;  %v3706_v24 = vpop.eup %3705 }
 0x5e8   :  { %v742_v14 = vmul.f32 %v3706_v24, %v4193_v61 }
 0x5ea   :  { %3358 = vmatpush3.bf16.msra.mxu0 %v896_v19 }
 0x5eb   :  { %3371 = vmatprep.subr.bf16.mxu0 %v3841_v56 }
 0x5fc   :  { %v714_v12 = vpop.xlane.xlu1 %713 }
 0x601   :  { %v705_v44 = vpop.xlane.xlu0 %704 }
 0x602   :  { %3707 = vrcp.f32 %v705_v44 }
 0x605   :  { %v717_v11 = vpop.xlane.xlu0 %716 }
 0x606   :  { %3709 = vrcp.f32 %v717_v11 }
 0x607   :  { %3711 = vrcp.f32 %v714_v12 }
 0x609   :  { %v711_v18 = vpop.xlane.xlu0 %710 }
 0x60a   :  { %3713 = vrcp.f32 %v711_v18 }
 0x60c   :  { %v3708_v25 = vpop.eup %3707 }
 0x60d   :  { %v743_v4 = vmul.f32 %v3708_v25, %v4209_v34  ;;  %v726_v61 = vpop.xlane.xlu0 %725 }
 0x60e   :  { %3715 = vrcp.f32 %v726_v61 }
 0x60f   :  { %v753_v30 = vpack.c.bf16 %v743_v4, %v742_v14 }
 0x610   :  { %v3710_v31 = vpop.eup %3709 }
 0x611   :  { %3351 = vmatprep.mubr.msk.bf16.mxu1 %vm618_vm5, %v753_v30  ;;  %v3712_v10 = vpop.eup %3711  ;;  %v747_v29 = vmul.f32 %v3710_v31, %v4213_v32  ;;  %v720_v34 = vpop.xlane.xlu0 %719 }
 0x612   :  { %3352 = vmatmul.mubr.msk.bf16.vlgmr.msra.gmra.mrb[8].mxu1 %vm618_vm5, %v754_v21  ;;  %v746_v27 = vmul.f32 %v3712_v10, %v4201_v28  ;;  %3717 = vrcp.f32 %v720_v34 }
 0x613   :  { %v756_v39 = vpack.c.bf16 %v747_v29, %v747_v29 }
 0x614   :  { %v3714_v33 = vpop.eup %3713 }
 0x615   :  { %v745_v35 = vmul.f32 %v3714_v33, %v4217_v46  ;;  %v949_v46 = vpop.permute.xlu0 %948 }
 0x616   :  { %v958_v43 = vsel %vm770_vm6, %v949_v46, 0 }
 0x617   :  { %v755_v59 = vpack.c.bf16 %v746_v27, %v745_v35 }
 0x618   :  { %v3716_v28 = vpop.eup %3715 }
 0x619   :  { %3359 = vmatprep.mubr.msk.bf16.mxu0 %vm618_vm5, %v755_v59  ;;  %v750_v48 = vmul.f32 %v3716_v28, %v4221_v6 }
 0x61a   :  { %3360 = vmatmul.mubr.msk.bf16.vlgmr.msra.gmra.mrb[28].mxu0 %vm618_vm5, %v756_v39 }
 0x61b   :  { %3375 = vmatprep.mubr.msk.bf16.mxu0 %vm3842_vm2, %v3841_v56  ;;  %v758_v55 = vpack.c.bf16 %v750_v48, %v750_v48  ;;  %3372 = vmatpush3.bf16.msra.mxu0 %v3637_v15 }
 0x61c   :  { %v3718_v40 = vpop.eup %3717  ;;  %3373 = vmatprep.subr.bf16.mxu0 %v3841_v56 }
 0x61d   :  { %v748_v49 = vmul.f32 %v3718_v40, %v4225_v41 }
 0x61f   :  { %3374 = vmatpush3.bf16.msra.mxu0 %v3638_v62 }
 0x620   :  { %3403 = vmatprep.subr.bf16.mxu0 %v3841_v56 }
 0x635   :  { %v723_v57 = vpop.xlane.xlu1 %722 }
 0x636   :  { %3719 = vrcp.f32 %v723_v57 }
 0x639   :  { %v947_v32 = vpop.permute.xlu1 %946 }
 0x63a   :  { %3363 = vmatprep.subr.bf16.mxu1 %v947_v32 }
 0x63b   :  { %3364 = vmatpush3.bf16.msra.mxu1 %v947_v32 }
 0x63c   :  { %3582 = vmatprep.subr.msk.bf16.mxu1 %vm770_vm6, %v949_v46 }
 0x63f   :  { %3366 = vmatpush3.bf16.msra.mxu1 %v958_v43 }
 0x640   :  { %v3720_v45 = vpop.eup %3719  ;;  %3387 = vmatprep.subr.bf16.mxu1 %v3841_v56 }
 0x641   :  { %v749_v50 = vmul.f32 %v3720_v45, %v4234_v58 }
 0x643   :  { %v757_v53 = vpack.c.bf16 %v749_v50, %v748_v49 }
 0x645   :  { %3367 = vmatprep.mubr.msk.bf16.mxu1 %vm618_vm5, %v757_v53 }
 0x646   :  { %3368 = vmatmul.mubr.msk.bf16.vlgmr.msra.gmra.mrb[12].mxu1 %vm618_vm5, %v758_v55 }
 0x647   :  { %3391 = vmatprep.mubr.msk.bf16.mxu1 %vm3842_vm2, %v3841_v56 }
 0x6b8   :  { %v3345_v6 = vpop.f32.mrb[24].mxu0 }
 0x6b9   :  { %v808_v41 = vpop.f32.mrb[25].mxu0 }
 0x6ba   :  { %v3346_v23 = vpop.f32.mrb[26].mxu0 }
 0x6bb   :  { %v811_v58 = vpop.f32.mrb[27].mxu0 }
 0x6e5   :  { %v3353_v36 = vpop.f32.mrb[8].mxu1 }
 0x6e6   :  { %v870_v47 = vpop.f32.mrb[9].mxu1 }
 0x6e7   :  { %v3354_v60 = vpop.f32.mrb[10].mxu1 }
 0x6e8   :  { %v873_v63 = vpop.f32.mrb[11].mxu1 }
 0x6ed   :  { %v3361_v0 = vpop.f32.mrb[28].mxu0 }
 0x6ee   :  { %v932_v1 = vpop.f32.mrb[29].mxu0 }
 0x6ef   :  { %v3362_v2 = vpop.f32.mrb[30].mxu0 }
 0x6f0   :  { %v935_v3 = vpop.f32.mrb[31].mxu0 }
 0x6f1   :  { %v3602_v5 = vpack.i.bf16 %v935_v3, %v932_v1 }
 0x6f3   :  { %3603 = vrot.lane.b32.xlu1 %v3602_v5, %s3845_s19 }
 0x719   :  { %v3369_v7 = vpop.f32.mrb[12].mxu1 }
 0x71a   :  { %v994_v19 = vpop.f32.mrb[13].mxu1 }
 0x71b   :  { %v3607_v8 = vpack.i.bf16 %v994_v19, %v3361_v0  ;;  %v3370_v9 = vpop.f32.mrb[14].mxu1 }
 0x71c   :  { %v997_v44 = vpop.f32.mrb[15].mxu1 }
 0x71d   :  { %v3612_v12 = vpack.i.bf16 %v3369_v7, %v997_v44  ;;  %3608 = vrot.lane.b32.xlu0 %v3607_v8, %s3845_s19 }
 0x71f   :  { %3613 = vrot.lane.b32.xlu1 %v3612_v12, %s3845_s19 }
 0x721   :  { %1058 = vrot.lane.b32.xlu0 %v4012_v38, %s3846_s20 }
 0x765   :  { %v3604_v11 = vpop.permute.xlu1 %3603 }
 0x766   :  { %v3606_v17 = vunpack.i.h.bf16 %v3604_v11  ;;  %v3605_v18 = vunpack.i.l.bf16 %v3604_v11 }
 0x768   :  { %v1033_v24 = vsel %vm340_vm3, %v811_v58, %v3606_v17  ;;  %v1032_v25 = vsel %vm340_vm3, %v808_v41, %v3605_v18 }
 0x769   :  { %v1038_v26 = vpack.c.bf16 %v1033_v24, %v1032_v25 }
 0x76b   :  { %3376 = vmatmul.mubr.msk.bf16.vlgmr.msra.gmra.mrb[32].mxu0 %vm131_vm0, %v1038_v26 }
 0x76c   :  { %3379 = vmatprep.mubr.msk.bf16.mxu0 %vm3842_vm2, %v3841_v56 }
 0x78f   :  { %v3609_v14 = vpop.permute.xlu0 %3608 }
 0x790   :  { %v3611_v4 = vunpack.i.h.bf16 %v3609_v14  ;;  %v3610_v30 = vunpack.i.l.bf16 %v3609_v14 }
 0x791   :  { %v3614_v21 = vpop.permute.xlu1 %3613 }
 0x792   :  { %v1035_v31 = vsel %vm340_vm3, %v870_v47, %v3611_v4  ;;  %v1034_v38 = vsel %vm340_vm3, %v3345_v6, %v3610_v30  ;;  %v3616_v10 = vunpack.i.h.bf16 %v3614_v21  ;;  %v3615_v33 = vunpack.i.l.bf16 %v3614_v21 }
 0x793   :  { %v1039_v29 = vpack.c.bf16 %v1035_v31, %v1034_v38  ;;  %v1059_v39 = vpop.permute.xlu0 %1058 }
 0x794   :  { %v1037_v35 = vsel %vm340_vm3, %v3353_v36, %v3616_v10  ;;  %v1036_v27 = vsel %vm340_vm3, %v873_v63, %v3615_v33 }
 0x795   :  { %3380 = vmatmul.mubr.msk.bf16.gmra.mrb[36].mxu0 %vm131_vm0, %v1039_v29  ;;  %v1040_v59 = vpack.c.bf16 %v1037_v35, %v1036_v27 }
 0x796   :  { %3383 = vmatprep.mubr.msk.bf16.mxu0 %vm3842_vm2, %v3841_v56 }
 0x79d   :  { %3384 = vmatmul.mubr.msk.bf16.gmra.mrb[40].mxu0 %vm131_vm0, %v1040_v59 }
 0x79e   :  { %3419 = vmatprep.mubr.msk.bf16.mxu0 %vm3842_vm2, %v3841_v56 }
 0x83e   :  { %v1104_v61 = vpop.f32.mrb[32].mxu0 }
 0x83f   :  { %v1105_v34 = vadd.f32 %v1104_v61, %v1059_v39  ;;  %v3377_v57 = vpop.f32.mrb[33].mxu0 }
 0x840   :  { %v1107_v32 = vpop.f32.mrb[34].mxu0 }
 0x841   :  { %v4299_v46 = vadd.f32 %v1105_v34, %v3930_v16  ;;  %v1108_v28 = vadd.f32 %v1107_v32, %v1059_v39  ;;  %v3378_v40 = vpop.f32.mrb[35].mxu0  ;;  %v3837_v16 = vld [vmem:[%s4995_s1 + $0x10] sm:$0xff]  ;;  %v3639_v32 = vld [vmem:[%s4999_s6] sm:$0xff]  }
 0x842   :  { %3388 = vmatpush3.bf16.msra.mxu1 %v3639_v32  ;;  %v3645_v32 = vld [vmem:[%s5000_s7 + $0x20] sm:$0xff]  }
 0x843   :  { %v4302_v43 = vadd.f32 %v1108_v28, %v3934_v20  ;;  %v1133_v45 = vsel %vm131_vm0, %v4299_v46, 0.0  ;;  %3389 = vmatprep.subr.bf16.mxu1 %v3841_v56  ;;  %v3640_v28 = vld [vmem:[%s4999_s6 + $0x8] sm:$0xff]  }
 0x844   :  { %1134 = vadd.xlane.f32.xlu1 %v1133_v45 }
 0x845   :  { %v1136_v48 = vsel %vm131_vm0, %v4302_v43, 0.0 }
 0x846   :  { %1137 = vadd.xlane.f32.xlu0 %v1136_v48  ;;  %3390 = vmatpush3.bf16.msra.mxu1 %v3640_v28  ;;  %v3646_v28 = vld [vmem:[%s5000_s7 + $0x28] sm:$0xff]  }
 0x847   :  { %3431 = vmatprep.subr.bf16.mxu1 %v3841_v56 }
 0x868   :  { %v1112_v49 = vpop.f32.mrb[36].mxu0 }
 0x869   :  { %v1113_v50 = vadd.f32 %v1112_v49, %v1059_v39  ;;  %v3381_v53 = vpop.f32.mrb[37].mxu0 }
 0x86a   :  { %v1115_v55 = vpop.f32.mrb[38].mxu0 }
 0x86b   :  { %v4311_v15 = vadd.f32 %v3837_v16, %v1113_v50  ;;  %v1116_v20 = vadd.f32 %v1115_v55, %v1059_v39  ;;  %v3382_v6 = vpop.f32.mrb[39].mxu0 }
 0x86d   :  { %v4314_v41 = vadd.f32 %v1116_v20, %v3925_v13  ;;  %v1139_v23 = vsel %vm131_vm0, %v4311_v15, 0.0 }
 0x86e   :  { %1140 = vadd.xlane.f32.xlu0 %v1139_v23 }
 0x86f   :  { %v1142_v60 = vsel %vm131_vm0, %v4314_v41, 0.0 }
 0x870   :  { %v1120_v58 = vpop.f32.mrb[40].mxu0 }
 0x871   :  { %v1121_v36 = vadd.f32 %v1120_v58, %v1059_v39  ;;  %v3385_v47 = vpop.f32.mrb[41].mxu0 }
 0x872   :  { %1143 = vadd.xlane.f32.xlu0 %v1142_v60  ;;  %v1123_v62 = vpop.f32.mrb[42].mxu0 }
 0x873   :  { %v4321_v63 = vadd.f32 %v1121_v36, %v3938_v22  ;;  %v1124_v0 = vadd.f32 %v1123_v62, %v1059_v39  ;;  %v3386_v1 = vpop.f32.mrb[43].mxu0 }
 0x875   :  { %v4323_v2 = vadd.f32 %v3837_v16, %v1124_v0  ;;  %v1145_v13 = vsel %vm131_vm0, %v4321_v63, 0.0 }
 0x876   :  { %1146 = vadd.xlane.f32.xlu1 %v1145_v13 }
 0x877   :  { %v1148_v3 = vsel %vm131_vm0, %v4323_v2, 0.0 }
 0x878   :  { %1149 = vadd.xlane.f32.xlu0 %v1148_v3 }
 0x8d1   :  { %v1135_v5 = vpop.xlane.xlu1 %1134 }
 0x8d2   :  { %v1151_v7 = vmul.f32 0.03125, %v1135_v5 }
 0x8d3   :  { %v1138_v19 = vpop.xlane.xlu0 %1137 }
 0x8d4   :  { %v4330_v8 = vsub.f32 %v4299_v46, %v1151_v7  ;;  %v1152_v22 = vmul.f32 0.03125, %v1138_v19 }
 0x8d6   :  { %v1158_v9 = vsub.f32 %v4302_v43, %v1152_v22  ;;  %v1163_v44 = vmul.f32 %v4330_v8, %v4330_v8 }
 0x8d8   :  { %v1169_v12 = vsel %vm131_vm0, %v1163_v44, 0.0  ;;  %v1164_v11 = vmul.f32 %v1158_v9, %v1158_v9 }
 0x8d9   :  { %1170 = vadd.xlane.f32.xlu1 %v1169_v12 }
 0x8da   :  { %v1172_v17 = vsel %vm131_vm0, %v1164_v11, 0.0 }
 0x8db   :  { %1173 = vadd.xlane.f32.xlu0 %v1172_v17 }
 0x8fb   :  { %v1141_v18 = vpop.xlane.xlu0 %1140 }
 0x8fc   :  { %v1153_v24 = vmul.f32 0.03125, %v1141_v18 }
 0x8fe   :  { %v4338_v25 = vsub.f32 %v4311_v15, %v1153_v24 }
 0x8ff   :  { %v1144_v26 = vpop.xlane.xlu0 %1143 }
 0x900   :  { %v1154_v14 = vmul.f32 0.03125, %v1144_v26  ;;  %v1165_v4 = vmul.f32 %v4338_v25, %v4338_v25 }
 0x902   :  { %v4343_v30 = vsub.f32 %v4314_v41, %v1154_v14  ;;  %v1175_v21 = vsel %vm131_vm0, %v1165_v4, 0.0 }
 0x903   :  { %1176 = vadd.xlane.f32.xlu1 %v1175_v21  ;;  %v1147_v31 = vpop.xlane.xlu1 %1146 }
 0x904   :  { %v1155_v38 = vmul.f32 0.03125, %v1147_v31  ;;  %v1166_v10 = vmul.f32 %v4343_v30, %v4343_v30 }
 0x905   :  { %v1150_v33 = vpop.xlane.xlu0 %1149 }
 0x906   :  { %v4349_v29 = vsub.f32 %v4321_v63, %v1155_v38  ;;  %v1156_v35 = vmul.f32 0.03125, %v1150_v33  ;;  %v1178_v27 = vsel %vm131_vm0, %v1166_v10, 0.0 }
 0x907   :  { %1179 = vadd.xlane.f32.xlu0 %v1178_v27 }
 0x908   :  { %v4353_v59 = vsub.f32 %v4323_v2, %v1156_v35  ;;  %v1167_v39 = vmul.f32 %v4349_v29, %v4349_v29 }
 0x90a   :  { %v1181_v61 = vsel %vm131_vm0, %v1167_v39, 0.0  ;;  %v1168_v34 = vmul.f32 %v4353_v59, %v4353_v59 }
 0x90b   :  { %1182 = vadd.xlane.f32.xlu1 %v1181_v61 }
 0x90c   :  { %v1184_v57 = vsel %vm131_vm0, %v1168_v34, 0.0  ;;  %v3643_v34 = vld [vmem:[%s5000_s7 + $0x10] sm:$0xff]  }
 0x90d   :  { %1185 = vadd.xlane.f32.xlu0 %v1184_v57  ;;  %v3644_v57 = vld [vmem:[%s5000_s7 + $0x18] sm:$0xff]  }
 0x91c   :  { %1211 = vrot.lane.b32.xlu1 %v3978_v54, %s3844_s14 }
 0x923   :  { %1220 = vrot.lane.b32.xlu0 %v3978_v54, %s3846_s20 }
 0x966   :  { %v1171_v40 = vpop.xlane.xlu1 %1170 }
 0x967   :  { %v1187_v48 = vmul.f32 0.03125, %v1171_v40  ;;  %v3647_v40 = vld [vmem:[%s5000_s7 + $0x30] sm:$0xff]  }
 0x968   :  { %v1174_v45 = vpop.xlane.xlu0 %1173 }
 0x969   :  { %v1188_v49 = vmul.f32 0.03125, %v1174_v45  ;;  %v1193_v50 = vadd.f32 1e-06, %v1187_v48  ;;  %v3648_v45 = vld [vmem:[%s5000_s7 + $0x38] sm:$0xff]   ;;  %v1238_v48 = vsub.s32 2, %v3966_v51 }
 0x96b   :  { %v1194_v53 = vadd.f32 1e-06, %v1188_v49  ;;  %3721 = vrsqrt.f32 %v1193_v50  ;;  %v4422_v49 = vld [vmem:[%s4996_s2] sm:$0xf] }
 0x96c   :  { %v1239_v50 = vrot.slane %v4422_v49, %v1238_v48 }
 0x96d   :  { %3723 = vrsqrt.f32 %v1194_v53 }
 0x975   :  { %v3722_v58 = vpop.eup %3721 }
 0x976   :  { %v1205_v0 = vmul.f32 %v3722_v58, %v4330_v8 }
 0x977   :  { %v3724_v47 = vpop.eup %3723 }
 0x978   :  { %v1206_v1 = vmul.f32 %v3724_v47, %v1158_v9 }
 0x990   :  { %v1177_v55 = vpop.xlane.xlu1 %1176 }
 0x991   :  { %v1189_v16 = vmul.f32 0.03125, %v1177_v55 }
 0x993   :  { %v1195_v20 = vadd.f32 1e-06, %v1189_v16 }
 0x994   :  { %v1180_v6 = vpop.xlane.xlu0 %1179 }
 0x995   :  { %3725 = vrsqrt.f32 %v1195_v20  ;;  %v1190_v23 = vmul.f32 0.03125, %v1180_v6 }
 0x997   :  { %v1196_v36 = vadd.f32 1e-06, %v1190_v23 }
 0x998   :  { %v1183_v60 = vpop.xlane.xlu1 %1182 }
 0x999   :  { %3727 = vrsqrt.f32 %v1196_v36  ;;  %v1191_v54 = vmul.f32 0.03125, %v1183_v60 }
 0x99a   :  { %v1186_v62 = vpop.xlane.xlu0 %1185 }
 0x99b   :  { %v1197_v13 = vadd.f32 1e-06, %v1191_v54  ;;  %v1192_v3 = vmul.f32 0.03125, %v1186_v62 }
 0x99c   :  { %v1212_v5 = vpop.permute.xlu1 %1211 }
 0x99d   :  { %3729 = vrsqrt.f32 %v1197_v13  ;;  %v1198_v7 = vadd.f32 1e-06, %v1192_v3  ;;  %v1214_v19 = vmul.f32 %v1212_v5, %v1205_v0  ;;  %v1215_v22 = vmul.f32 %v1212_v5, %v1206_v1 }
 0x99e   :  { %v1221_v44 = vpop.permute.xlu0 %1220 }
 0x99f   :  { %v3726_v12 = vpop.eup %3725  ;;  %3731 = vrsqrt.f32 %v1198_v7  ;;  %v1223_v11 = vadd.f32 %v1221_v44, %v1214_v19  ;;  %v1224_v17 = vadd.f32 %v1221_v44, %v1215_v22 }
 0x9a0   :  { %v1207_v18 = vmul.f32 %v3726_v12, %v4338_v25 }
 0x9a1   :  { %v1229_v24 = vpack.c.bf16 %v1224_v17, %v1223_v11 }
 0x9a2   :  { %v1216_v9 = vmul.f32 %v1212_v5, %v1207_v18 }
 0x9a3   :  { %v3728_v26 = vpop.eup %3727  ;;  %3392 = vmatmul.mubr.msk.bf16.vlgmr.msra.gmra.mrb[16].mxu1 %vm131_vm0, %v1229_v24 }
 0x9a4   :  { %v1208_v8 = vmul.f32 %v3728_v26, %v4343_v30  ;;  %3395 = vmatprep.mubr.msk.bf16.mxu1 %vm3842_vm2, %v3841_v56  ;;  %v1225_v31 = vadd.f32 %v1221_v44, %v1216_v9 }
 0x9a6   :  { %v1217_v14 = vmul.f32 %v1212_v5, %v1208_v8 }
 0x9a7   :  { %v3730_v4 = vpop.eup %3729 }
 0x9a8   :  { %v1209_v21 = vmul.f32 %v3730_v4, %v4349_v29  ;;  %v1226_v38 = vadd.f32 %v1221_v44, %v1217_v14  ;;  %v3641_v29 = vld [vmem:[%s5000_s7] sm:$0xff]  }
 0x9a9   :  { %v3732_v10 = vpop.eup %3731  ;;  %3404 = vmatpush3.bf16.msra.mxu0 %v3641_v29 }
 0x9aa   :  { %v1210_v33 = vmul.f32 %v3732_v10, %v4353_v59  ;;  %v1230_v25 = vpack.c.bf16 %v1226_v38, %v1225_v31  ;;  %v1218_v35 = vmul.f32 %v1212_v5, %v1209_v21  ;;  %3405 = vmatprep.subr.bf16.mxu0 %v3841_v56  ;;  %v3642_v59 = vld [vmem:[%s5000_s7 + $0x8] sm:$0xff]  }
 0x9ac   :  { %3396 = vmatmul.mubr.msk.bf16.gmra.mrb[20].mxu1 %vm131_vm0, %v1230_v25  ;;  %v1219_v27 = vmul.f32 %v1212_v5, %v1210_v33  ;;  %v1227_v39 = vadd.f32 %v1221_v44, %v1218_v35 }
 0x9ad   :  { %3399 = vmatprep.mubr.msk.bf16.mxu1 %vm3842_vm2, %v3841_v56  ;;  %3406 = vmatpush3.bf16.msra.mxu0 %v3642_v59 }
 0x9ae   :  { %v1228_v30 = vadd.f32 %v1221_v44, %v1219_v27  ;;  %3407 = vmatprep.subr.bf16.mxu0 %v3841_v56 }
 0x9b0   :  { %v1231_v61 = vpack.c.bf16 %v1228_v30, %v1227_v39 }
 0x9b1   :  { %3408 = vmatpush3.bf16.msra.mxu0 %v3643_v34 }
 0x9b2   :  { %3409 = vmatprep.subr.bf16.mxu0 %v3841_v56 }
 0x9b4   :  { %3400 = vmatmul.mubr.msk.bf16.gmra.mrb[24].mxu1 %vm131_vm0, %v1231_v61 }
 0x9b5   :  { %3435 = vmatprep.mubr.msk.bf16.mxu1 %vm3842_vm2, %v3841_v56  ;;  %3410 = vmatpush3.bf16.msra.mxu0 %v3644_v57 }
 0x9b6   :  { %3411 = vmatprep.subr.bf16.mxu0 %v3841_v56 }
 0x9b9   :  { %3412 = vmatpush3.bf16.msra.mxu0 %v3645_v32 }
 0x9ba   :  { %3413 = vmatprep.subr.bf16.mxu0 %v3841_v56 }
 0x9bd   :  { %3414 = vmatpush3.bf16.msra.mxu0 %v3646_v28 }
 0x9be   :  { %3415 = vmatprep.subr.bf16.mxu0 %v3841_v56 }
 0x9c1   :  { %3416 = vmatpush3.bf16.msra.mxu0 %v3647_v40 }
 0x9c2   :  { %3417 = vmatprep.subr.bf16.mxu0 %v3841_v56 }
 0x9c5   :  { %3418 = vmatpush3.bf16.msra.mxu0 %v3648_v45 }
 0xa76   :  { %v1295_v53 = vpop.f32.mrb[16].mxu1 }
 0xa77   :  { %v1296_v55 = vadd.f32 %v1295_v53, %v1239_v50  ;;  %v3393_v16 = vpop.f32.mrb[17].mxu1 }
 0xa78   :  { %v1298_v20 = vpop.f32.mrb[18].mxu1 }
 0xa79   :  { %v1318_v6 = vmul.f32 %v1296_v55, %v1296_v55  ;;  %v1299_v23 = vadd.f32 %v1298_v20, %v1239_v50  ;;  %v3394_v58 = vpop.f32.mrb[19].mxu1 }
 0xa7b   :  { %v1324_v36 = vmul.f32 %v1318_v6, %v1296_v55  ;;  %v1319_v47 = vmul.f32 %v1299_v23, %v1299_v23 }
 0xa7d   :  { %v1330_v60 = vmul.f32 0.044715, %v1324_v36  ;;  %v1325_v54 = vmul.f32 %v1319_v47, %v1299_v23 }
 0xa7f   :  { %v1336_v62 = vadd.f32 %v1330_v60, %v1296_v55  ;;  %v1331_v0 = vmul.f32 0.044715, %v1325_v54  ;;  %v1303_v1 = vpop.f32.mrb[20].mxu1 }
 0xa80   :  { %v1304_v13 = vadd.f32 %v1303_v1, %v1239_v50  ;;  %v3397_v3 = vpop.f32.mrb[21].mxu1 }
 0xa81   :  { %v1342_v5 = vmul.f32 0.7978846, %v1336_v62  ;;  %v1337_v7 = vadd.f32 %v1331_v0, %v1299_v23  ;;  %v1306_v19 = vpop.f32.mrb[22].mxu1 }
 0xa82   :  { %v1320_v22 = vmul.f32 %v1304_v13, %v1304_v13  ;;  %v1307_v44 = vadd.f32 %v1306_v19, %v1239_v50  ;;  %v3398_v12 = vpop.f32.mrb[23].mxu1 }
 0xa83   :  { %3733 = vtanh.f32 %v1342_v5  ;;  %v1343_v11 = vmul.f32 0.7978846, %v1337_v7 }
 0xa84   :  { %v1326_v17 = vmul.f32 %v1320_v22, %v1304_v13  ;;  %v1321_v18 = vmul.f32 %v1307_v44, %v1307_v44 }
 0xa85   :  { %3735 = vtanh.f32 %v1343_v11 }
 0xa86   :  { %v1332_v24 = vmul.f32 0.044715, %v1326_v17  ;;  %v1327_v26 = vmul.f32 %v1321_v18, %v1307_v44 }
 0xa87   :  { %v1311_v8 = vpop.f32.mrb[24].mxu1 }
 0xa88   :  { %v1338_v9 = vadd.f32 %v1332_v24, %v1304_v13  ;;  %v1333_v14 = vmul.f32 0.044715, %v1327_v26  ;;  %v1312_v4 = vadd.f32 %v1311_v8, %v1239_v50  ;;  %v3401_v21 = vpop.f32.mrb[25].mxu1  ;;  %v1393_v26 = vsub.s32 3, %v3966_v51 }
 0xa89   :  { %v1314_v31 = vpop.f32.mrb[26].mxu1 }
 0xa8a   :  { %v1344_v38 = vmul.f32 0.7978846, %v1338_v9  ;;  %v1339_v10 = vadd.f32 %v1333_v14, %v1307_v44  ;;  %v1322_v33 = vmul.f32 %v1312_v4, %v1312_v4  ;;  %v1315_v25 = vadd.f32 %v1314_v31, %v1239_v50  ;;  %v3402_v35 = vpop.f32.mrb[27].mxu1 }
 0xa8c   :  { %3737 = vtanh.f32 %v1344_v38  ;;  %v1345_v27 = vmul.f32 0.7978846, %v1339_v10  ;;  %v1328_v30 = vmul.f32 %v1322_v33, %v1312_v4  ;;  %v1323_v39 = vmul.f32 %v1315_v25, %v1315_v25 }
 0xa8d   :  { %v3734_v61 = vpop.eup %3733 }
 0xa8e   :  { %v1354_v29 = vadd.f32 1.0, %v3734_v61  ;;  %3739 = vtanh.f32 %v1345_v27  ;;  %v1334_v59 = vmul.f32 0.044715, %v1328_v30  ;;  %v1329_v34 = vmul.f32 %v1323_v39, %v1315_v25 }
 0xa8f   :  { %v3736_v57 = vpop.eup %3735 }
 0xa90   :  { %v1360_v32 = vmul.f32 0.5, %v1354_v29  ;;  %v1355_v28 = vadd.f32 1.0, %v3736_v57  ;;  %v1340_v40 = vadd.f32 %v1334_v59, %v1312_v4  ;;  %v1335_v45 = vmul.f32 0.044715, %v1329_v34 }
 0xa92   :  { %v1361_v53 = vmul.f32 0.5, %v1355_v28  ;;  %v1346_v16 = vmul.f32 0.7978846, %v1340_v40  ;;  %v1341_v20 = vadd.f32 %v1335_v45, %v1315_v25  ;;  %v1366_v6 = vmul.f32 %v1360_v32, %v1296_v55 }
 0xa94   :  { %v1367_v50 = vmul.f32 %v1361_v53, %v1299_v23  ;;  %3741 = vtanh.f32 %v1346_v16  ;;  %v1347_v58 = vmul.f32 0.7978846, %v1341_v20 }
 0xa96   :  { %v3738_v36 = vpop.eup %3737  ;;  %v1372_v47 = vpack.c.bf16 %v1367_v50, %v1366_v6  ;;  %3743 = vtanh.f32 %v1347_v58 }
 0xa97   :  { %v1356_v60 = vadd.f32 1.0, %v3738_v36 }
 0xa98   :  { %v3740_v54 = vpop.eup %3739  ;;  %3420 = vmatmul.mubr.bf16.vlgmr.msra.gmra.mrb[44].mxu0 %v1372_v47 }
 0xa99   :  { %3423 = vmatprep.mubr.msk.bf16.mxu0 %vm3842_vm2, %v3841_v56  ;;  %v1357_v62 = vadd.f32 1.0, %v3740_v54  ;;  %v1362_v0 = vmul.f32 0.5, %v1356_v60 }
 0xa9b   :  { %v1363_v1 = vmul.f32 0.5, %v1357_v62  ;;  %v1368_v3 = vmul.f32 %v1362_v0, %v1304_v13  ;;  %v1394_v13 = vrot.slane %v4422_v49, %v1393_v26 }
 0xa9d   :  { %v1369_v5 = vmul.f32 %v1363_v1, %v1307_v44 }
 0xa9e   :  { %v3742_v7 = vpop.eup %3741 }
 0xa9f   :  { %v1373_v19 = vpack.c.bf16 %v1369_v5, %v1368_v3  ;;  %v1358_v55 = vadd.f32 1.0, %v3742_v7 }
 0xaa0   :  { %v3744_v23 = vpop.eup %3743 }
 0xaa1   :  { %3424 = vmatmul.mubr.bf16.gmra.mrb[48].mxu0 %v1373_v19  ;;  %v1359_v22 = vadd.f32 1.0, %v3744_v23  ;;  %v1364_v12 = vmul.f32 0.5, %v1358_v55 }
 0xaa2   :  { %3427 = vmatprep.mubr.msk.bf16.mxu0 %vm3842_vm2, %v3841_v56 }
 0xaa3   :  { %v1365_v11 = vmul.f32 0.5, %v1359_v22  ;;  %v1370_v17 = vmul.f32 %v1364_v12, %v1312_v4 }
 0xaa5   :  { %v1371_v18 = vmul.f32 %v1365_v11, %v1315_v25 }
 0xaa7   :  { %v1374_v24 = vpack.c.bf16 %v1371_v18, %v1370_v17 }
 0xaa9   :  { %3428 = vmatmul.mubr.bf16.gmra.mrb[52].mxu0 %v1374_v24 }
 0xb6b   :  { %v1477_v44 = vpop.f32.mrb[44].mxu0 }
 0xb6c   :  { %v1478_v8 = vadd.f32 %v1477_v44, %v1394_v13  ;;  %v3421_v9 = vpop.f32.mrb[45].mxu0 }
 0xb6d   :  { %v1480_v14 = vpop.f32.mrb[46].mxu0 }
 0xb6e   :  { %v4436_v21 = vadd.f32 %v1478_v8, %v4299_v46  ;;  %v1481_v31 = vadd.f32 %v1480_v14, %v1394_v13  ;;  %v3422_v38 = vpop.f32.mrb[47].mxu0  ;;  %v4500_v14 = vld [vmem:[%s4996_s2 + $0x4] sm:$0xf] }
 0xb6f   :  { %v3649_v38 = vld [vmem:[%s4997_s4 + $0x10] sm:$0xff]  }
 0xb70   :  { %v4439_v4 = vadd.f32 %v1481_v31, %v4302_v43  ;;  %v1506_v10 = vsel %vm131_vm0, %v4436_v21, 0.0  ;;  %v4504_v31 = vrot.slane %v4500_v14, %v3969_v52  ;;  %3432 = vmatpush3.bf16.msra.mxu1 %v3649_v38 }
 0xb71   :  { %1507 = vadd.xlane.f32.xlu1 %v1506_v10  ;;  %3433 = vmatprep.subr.bf16.mxu1 %v3841_v56  ;;  %v3650_v10 = vld [vmem:[%s4997_s4 + $0x18] sm:$0xff]  }
 0xb72   :  { %v1509_v33 = vsel %vm131_vm0, %v4439_v4, 0.0 }
 0xb73   :  { %1510 = vadd.xlane.f32.xlu0 %v1509_v33 }
 0xb74   :  { %v1485_v49 = vpop.f32.mrb[48].mxu0  ;;  %3434 = vmatpush3.bf16.msra.mxu1 %v3650_v10 }
 0xb75   :  { %v1486_v25 = vadd.f32 %v1485_v49, %v1394_v13  ;;  %v3425_v35 = vpop.f32.mrb[49].mxu0 }
 0xb76   :  { %v1488_v27 = vpop.f32.mrb[50].mxu0 }
 0xb77   :  { %v4446_v46 = vadd.f32 %v1486_v25, %v4311_v15  ;;  %v1489_v30 = vadd.f32 %v1488_v27, %v1394_v13  ;;  %v3426_v39 = vpop.f32.mrb[51].mxu0 }
 0xb79   :  { %v4449_v43 = vadd.f32 %v1489_v30, %v4314_v41  ;;  %v1580_v61 = vsel %vm131_vm0, %v4446_v46, 0.0 }
 0xb7a   :  { %1581 = vadd.xlane.f32.xlu0 %v1580_v61 }
 0xb7b   :  { %v1512_v29 = vsel %vm131_vm0, %v4449_v43, 0.0 }
 0xb7c   :  { %1513 = vadd.xlane.f32.xlu1 %v1512_v29  ;;  %v1493_v59 = vpop.f32.mrb[52].mxu0  ;;  %v35_v29 = vld [vmem:[%s4995_s1 + $0x18] sm:$0x3] }
 0xb7d   :  { %v1494_v34 = vadd.f32 %v1493_v59, %v1394_v13  ;;  %v3429_v57 = vpop.f32.mrb[53].mxu0 }
 0xb7e   :  { %v1496_v32 = vpop.f32.mrb[54].mxu0 }
 0xb7f   :  { %v4456_v15 = vadd.f32 %v1494_v34, %v4321_v63  ;;  %v1497_v28 = vadd.f32 %v1496_v32, %v1394_v13  ;;  %v3430_v40 = vpop.f32.mrb[55].mxu0  ;;  %v4519_v32 = vrot.slane %v35_v29, %v3969_v52 }
 0xb81   :  { %v4459_v41 = vadd.f32 %v1497_v28, %v4323_v2  ;;  %v1515_v45 = vsel %vm131_vm0, %v4456_v15, 0.0 }
 0xb82   :  { %1516 = vadd.xlane.f32.xlu1 %v1515_v45  ;;  %v4522_v45 = vrot.slane %v35_v29, %v4008_v37 }
 0xb83   :  { %v1583_v53 = vsel %vm131_vm0, %v4459_v41, 0.0 }
 0xb84   :  { %1584 = vadd.xlane.f32.xlu0 %v1583_v53 }
 0xbfe   :  { %v1508_v16 = vpop.xlane.xlu1 %1507 }
 0xbff   :  { %v1518_v20 = vmul.f32 0.03125, %v1508_v16 }
 0xc00   :  { %v1511_v6 = vpop.xlane.xlu0 %1510 }
 0xc01   :  { %v1522_v50 = vsub.f32 %v4436_v21, %v1518_v20  ;;  %v1519_v63 = vmul.f32 0.03125, %v1511_v6 }
 0xc03   :  { %v4467_v58 = vsub.f32 %v4439_v4, %v1519_v63  ;;  %v1526_v36 = vmul.f32 %v1522_v50, %v1522_v50 }
 0xc05   :  { %v1530_v2 = vsel %vm131_vm0, %v1526_v36, 0.0  ;;  %v1527_v47 = vmul.f32 %v4467_v58, %v4467_v58 }
 0xc06   :  { %1531 = vadd.xlane.f32.xlu1 %v1530_v2 }
 0xc07   :  { %v1582_v60 = vpop.xlane.xlu0 %1581  ;;  %v1533_v54 = vsel %vm131_vm0, %v1527_v47, 0.0 }
 0xc08   :  { %v1586_v62 = vmul.f32 0.03125, %v1582_v60  ;;  %1534 = vadd.xlane.f32.xlu0 %v1533_v54 }
 0xc09   :  { %v1514_v0 = vpop.xlane.xlu1 %1513 }
 0xc0a   :  { %v4474_v1 = vsub.f32 %v4446_v46, %v1586_v62  ;;  %v1520_v3 = vmul.f32 0.03125, %v1514_v0 }
 0xc0c   :  { %v4477_v5 = vsub.f32 %v4449_v43, %v1520_v3  ;;  %v1590_v7 = vmul.f32 %v4474_v1, %v4474_v1 }
 0xc0e   :  { %v1592_v19 = vsel %vm131_vm0, %v1590_v7, 0.0  ;;  %v1528_v55 = vmul.f32 %v4477_v5, %v4477_v5 }
 0xc0f   :  { %v1517_v23 = vpop.xlane.xlu1 %1516  ;;  %1593 = vadd.xlane.f32.xlu0 %v1592_v19 }
 0xc10   :  { %v1521_v22 = vmul.f32 0.03125, %v1517_v23  ;;  %v1536_v12 = vsel %vm131_vm0, %v1528_v55, 0.0 }
 0xc11   :  { %1537 = vadd.xlane.f32.xlu1 %v1536_v12  ;;  %v1585_v11 = vpop.xlane.xlu0 %1584 }
 0xc12   :  { %v4486_v17 = vsub.f32 %v4456_v15, %v1521_v22  ;;  %v1587_v18 = vmul.f32 0.03125, %v1585_v11 }
 0xc14   :  { %v4489_v24 = vsub.f32 %v4459_v41, %v1587_v18  ;;  %v1529_v13 = vmul.f32 %v4486_v17, %v4486_v17 }
 0xc16   :  { %v1539_v44 = vsel %vm131_vm0, %v1529_v13, 0.0  ;;  %v1591_v8 = vmul.f32 %v4489_v24, %v4489_v24 }
 0xc17   :  { %1540 = vadd.xlane.f32.xlu1 %v1539_v44 }
 0xc18   :  { %v1595_v9 = vsel %vm131_vm0, %v1591_v8, 0.0 }
 0xc19   :  { %1596 = vadd.xlane.f32.xlu0 %v1595_v9 }
 0xc28   :  { %1617 = vrot.lane.b32.xlu1 %v4504_v31, %s3840_s29 }
 0xc93   :  { %v1532_v33 = vpop.xlane.xlu1 %1531 }
 0xc94   :  { %v1542_v49 = vmul.f32 0.03125, %v1532_v33 }
 0xc95   :  { %v1535_v25 = vpop.xlane.xlu0 %1534 }
 0xc96   :  { %v1546_v35 = vadd.f32 1e-06, %v1542_v49  ;;  %v1543_v27 = vmul.f32 0.03125, %v1535_v25 }
 0xc98   :  { %3745 = vrsqrt.f32 %v1546_v35  ;;  %v1547_v30 = vadd.f32 1e-06, %v1543_v27 }
 0xc9a   :  { %3747 = vrsqrt.f32 %v1547_v30 }
 0xc9c   :  { %v1594_v39 = vpop.xlane.xlu0 %1593 }
 0xc9d   :  { %v1598_v61 = vmul.f32 0.03125, %v1594_v39 }
 0xc9e   :  { %v1538_v59 = vpop.xlane.xlu1 %1537 }
 0xc9f   :  { %v1600_v34 = vadd.f32 1e-06, %v1598_v61  ;;  %v1544_v57 = vmul.f32 0.03125, %v1538_v59 }
 0xca1   :  { %3749 = vrsqrt.f32 %v1600_v34  ;;  %v1548_v28 = vadd.f32 1e-06, %v1544_v57 }
 0xca2   :  { %v3746_v40 = vpop.eup %3745 }
 0xca3   :  { %v1554_v53 = vmul.f32 %v3746_v40, %v1522_v50  ;;  %3751 = vrsqrt.f32 %v1548_v28 }
 0xca4   :  { %v3748_v16 = vpop.eup %3747  ;;  %v1541_v20 = vpop.xlane.xlu1 %1540 }
 0xca5   :  { %v1562_v6 = vmul.f32 %v4519_v32, %v1554_v53  ;;  %v1555_v63 = vmul.f32 %v3748_v16, %v4467_v58  ;;  %v1545_v36 = vmul.f32 0.03125, %v1541_v20  ;;  %v1610_v47 = vmul.f32 %v4504_v31, %v1554_v53 }
 0xca6   :  { %v1597_v2 = vpop.xlane.xlu0 %1596 }
 0xca7   :  { %v1570_v52 = vadd.f32 %v4522_v45, %v1562_v6  ;;  %v1563_v60 = vmul.f32 %v4519_v32, %v1555_v63  ;;  %v1549_v54 = vadd.f32 1e-06, %v1545_v36  ;;  %v1599_v62 = vmul.f32 0.03125, %v1597_v2 }
 0xca8   :  { %v1618_v0 = vpop.permute.xlu1 %1617  ;;  %v1611_v50 = vmul.f32 %v4504_v31, %v1555_v63 }
 0xca9   :  { %1574 = vst.msk [vmem:[%s5001_s8] sm:$0xff] %vm131_vm0, %v1570_v52  ;;  %v1571_v58 = vadd.f32 %v4522_v45, %v1563_v60  ;;  %3753 = vrsqrt.f32 %v1549_v54  ;;  %v1601_v3 = vadd.f32 1e-06, %v1599_v62  ;;  %v1620_v7 = vadd.f32 %v1618_v0, %v1610_v47 }
 0xcaa   :  { %v1621_v19 = vadd.f32 %v1618_v0, %v1611_v50 }
 0xcab   :  { %v3750_v55 = vpop.eup %3749  ;;  %1575 = vst.msk [vmem:[%s5001_s8 + $0x8] sm:$0xff] %vm131_vm0, %v1571_v58  ;;  %3755 = vrsqrt.f32 %v1601_v3 }
 0xcac   :  { %v1604_v23 = vmul.f32 %v3750_v55, %v4474_v1  ;;  %v1626_v22 = vpack.c.bf16 %v1621_v19, %v1620_v7 }
 0xcad   :  { %v3752_v12 = vpop.eup %3751 }
 0xcae   :  { %v1556_v11 = vmul.f32 %v3752_v12, %v4477_v5  ;;  %3436 = vmatmul.mubr.msk.bf16.vlgmr.msra.gmra.mrb[28].mxu1 %vm131_vm0, %v1626_v22  ;;  %v1612_v18 = vmul.f32 %v4504_v31, %v1604_v23 }
 0xcaf   :  { %3439 = vmatprep.mubr.msk.bf16.mxu1 %vm3842_vm2, %v3841_v56 }
 0xcb0   :  { %v1564_v13 = vmul.f32 %v4519_v32, %v1556_v11  ;;  %v1613_v44 = vmul.f32 %v4504_v31, %v1556_v11  ;;  %v1622_v9 = vadd.f32 %v1618_v0, %v1612_v18 }
 0xcb2   :  { %v1572_v8 = vadd.f32 %v4522_v45, %v1564_v13  ;;  %v1623_v38 = vadd.f32 %v1618_v0, %v1613_v44 }
 0xcb3   :  { %v3754_v1 = vpop.eup %3753 }
 0xcb4   :  { %1576 = vst.msk [vmem:[%s5001_s8 + $0x10] sm:$0xff] %vm131_vm0, %v1572_v8  ;;  %v1557_v5 = vmul.f32 %v3754_v1, %v4486_v17  ;;  %v1627_v10 = vpack.c.bf16 %v1623_v38, %v1622_v9 }
 0xcb5   :  { %v3756_v33 = vpop.eup %3755 }
 0xcb6   :  { %v1565_v49 = vmul.f32 %v4519_v32, %v1557_v5  ;;  %v1605_v25 = vmul.f32 %v3756_v33, %v4489_v24  ;;  %3440 = vmatmul.mubr.msk.bf16.gmra.mrb[32].mxu1 %vm131_vm0, %v1627_v10  ;;  %v1614_v35 = vmul.f32 %v4504_v31, %v1557_v5  ;;  %v4568_v24 = vrot.slane %v4500_v14, %v4008_v37 }
 0xcb7   :  { %3443 = vmatprep.mubr.msk.bf16.mxu1 %vm3842_vm2, %v3841_v56 }
 0xcb8   :  { %v1573_v27 = vadd.f32 %v4522_v45, %v1565_v49  ;;  %v1615_v30 = vmul.f32 %v4504_v31, %v1605_v25  ;;  %v1624_v17 = vadd.f32 %v1618_v0, %v1614_v35 }
 0xcba   :  { %1577 = vst.msk [vmem:[%s5001_s8 + $0x18] sm:$0xff] %vm131_vm0, %v1573_v27  ;;  %v1625_v39 = vadd.f32 %v1618_v0, %v1615_v30 }
 0xcbc   :  { %v1628_v61 = vpack.c.bf16 %v1625_v39, %v1624_v17 }
 0xcbe   :  { %3444 = vmatmul.mubr.msk.bf16.gmra.mrb[36].mxu1 %vm131_vm0, %v1628_v61 }
 0xd81   :  { %v1693_v29 = vpop.f32.mrb[28].mxu1 }
 0xd82   :  { %v1694_v59 = vadd.f32 %v1693_v29, %v4568_v24  ;;  %v3437_v34 = vpop.f32.mrb[29].mxu1 }
 0xd83   :  { %v1696_v57 = vpop.f32.mrb[30].mxu1 }
 0xd84   :  { %v3154_v28 = vpack.c.bf16 %v1694_v59, %v1694_v59  ;;  %v1697_v40 = vadd.f32 %v1696_v57, %v4568_v24  ;;  %v3438_v53 = vpop.f32.mrb[31].mxu1 }
 0xd86   :  { %v4572_v16 = vpack.c.bf16 %v1697_v40, %v1694_v59  ;;  %v3155_v20 = vpack.c.bf16 %v1697_v40, %v1697_v40  ;;  %1734 = vrot.lane.b32.xlu0 %v3154_v28, %s3843_s13 }
 0xd88   :  { %1736 = vrot.lane.b32.xlu1 %v3155_v20, %s3843_s13  ;;  %3451 = vmatprep.mubr.msk.bf16.mxu1 %vm340_vm3, %v4572_v16 }
 0xd89   :  { %v1701_v37 = vpop.f32.mrb[32].mxu1 }
 0xd8a   :  { %v1702_v14 = vadd.f32 %v1701_v37, %v4568_v24  ;;  %v3441_v6 = vpop.f32.mrb[33].mxu1 }
 0xd8b   :  { %v1704_v63 = vpop.f32.mrb[34].mxu1 }
 0xd8c   :  { %v4579_v36 = vpack.c.bf16 %v1702_v14, %v1702_v14  ;;  %v1705_v2 = vadd.f32 %v1704_v63, %v4568_v24  ;;  %v3442_v47 = vpop.f32.mrb[35].mxu1 }
 0xd8e   :  { %v1717_v52 = vpack.c.bf16 %v1705_v2, %v1702_v14  ;;  %1738 = vrot.lane.b32.xlu1 %v4579_v36, %s3843_s13  ;;  %v3157_v60 = vpack.c.bf16 %v1705_v2, %v1705_v2 }
 0xd90   :  { %v1725_v23 = vunpack.c.h.b16 %v1717_v52 }
 0xd91   :  { %v1709_v54 = vpop.f32.mrb[36].mxu1 }
 0xd92   :  { %v1710_v62 = vadd.f32 %v1709_v54, %v4568_v24  ;;  %1740 = vrot.lane.b32.xlu1 %v3157_v60, %s3843_s13  ;;  %v3445_v0 = vpop.f32.mrb[37].mxu1 }
 0xd93   :  { %v1712_v50 = vpop.f32.mrb[38].mxu1 }
 0xd94   :  { %v3158_v58 = vpack.c.bf16 %v1710_v62, %v1710_v62  ;;  %v1713_v3 = vadd.f32 %v1712_v50, %v4568_v24  ;;  %v3446_v7 = vpop.f32.mrb[39].mxu1 }
 0xd96   :  { %v1718_v19 = vpack.c.bf16 %v1713_v3, %v1710_v62  ;;  %v4587_v55 = vpack.c.bf16 %v1713_v3, %v1713_v3  ;;  %1742 = vrot.lane.b32.xlu0 %v3158_v58, %s3843_s13 }
 0xd98   :  { %v1726_v22 = vunpack.c.l.b16 %v1718_v19  ;;  %1744 = vrot.lane.b32.xlu1 %v4587_v55, %s3843_s13 }
 0xd9a   :  { %v4592_v12 = vpack.c.b16 %v1726_v22, %v1725_v23  ;;  %1747 = vrot.lane.b32.xlu0 %v4572_v16, %s3840_s29 }
 0xd9c   :  { %1749 = vrot.lane.b32.xlu1 %v4579_v36, %s3840_s29  ;;  %3459 = vmatprep.mubr.msk.bf16.mxu0 %vm340_vm3, %v4592_v12 }
 0xd9e   :  { %1812 = vrot.lane.b32.xlu0 %v4592_v12, %s3840_s29 }
 0xda2   :  { %1814 = vrot.lane.b32.xlu0 %v4587_v55, %s3840_s29 }
 0xdf8   :  { %v1735_v11 = vpop.permute.xlu0 %1734 }
 0xdfa   :  { %v1737_v18 = vpop.permute.xlu1 %1736 }
 0xdfb   :  { %v4604_v13 = vcombine.low %v1735_v11, %v1737_v18 }
 0xdfd   :  { %1881 = vrot.lane.b32.xlu1 %v4604_v13, %s3840_s29 }
 0xe00   :  { %v1739_v44 = vpop.permute.xlu1 %1738 }
 0xe01   :  { %v4608_v8 = vcombine.low %v1739_v44, %v1739_v44 }
 0xe03   :  { %1883 = vrot.lane.b32.xlu1 %v4608_v8, %s3840_s29 }
 0xe04   :  { %v1741_v9 = vpop.permute.xlu1 %1740 }
 0xe08   :  { %v1743_v38 = vpop.permute.xlu0 %1742 }
 0xe09   :  { %v4612_v1 = vcombine.low %v1741_v9, %v1743_v38 }
 0xe0a   :  { %v1745_v5 = vpop.permute.xlu1 %1744 }
 0xe0b   :  { %v4614_v10 = vcombine.low %v1745_v5, %v1745_v5  ;;  %1950 = vrot.lane.b32.xlu0 %v4612_v1, %s3840_s29 }
 0xe0c   :  { %v1748_v33 = vpop.permute.xlu0 %1747 }
 0xe0d   :  { %v1758_v49 = vsel %vm340_vm3, %v1748_v33, 0  ;;  %1952 = vrot.lane.b32.xlu1 %v4614_v10, %s3840_s29  ;;  %3583 = vmatprep.subr.msk.bf16.mxu1 %vm340_vm3, %v1748_v33 }
 0xe0e   :  { %v1750_v25 = vpop.permute.xlu1 %1749  ;;  %3448 = vmatpush3.bf16.xpose.msra.mxu1 %v1758_v49 }
 0xe0f   :  { %3584 = vmatprep.subr.msk.bf16.mxu1 %vm340_vm3, %v1750_v25  ;;  %v1761_v17 = vsel %vm340_vm3, %v1750_v25, 0 }
 0xe10   :  { %v1813_v35 = vpop.permute.xlu0 %1812 }
 0xe11   :  { %v1823_v27 = vsel %vm340_vm3, %v1813_v35, 0  ;;  %3585 = vmatprep.subr.msk.bf16.mxu0 %vm340_vm3, %v1813_v35 }
 0xe12   :  { %3456 = vmatpush3.bf16.xpose.msra.mxu0 %v1823_v27 }
 0xe14   :  { %v1815_v30 = vpop.permute.xlu0 %1814 }
 0xe15   :  { %3586 = vmatprep.subr.msk.bf16.mxu0 %vm340_vm3, %v1815_v30  ;;  %v1826_v39 = vsel %vm340_vm3, %v1815_v30, 0 }
 0xe16   :  { %3450 = vmatpush3.bf16.xpose.msra.mxu1 %v1761_v17 }
 0xe1a   :  { %3458 = vmatpush3.bf16.xpose.msra.mxu0 %v1826_v39 }
 0xe1d   :  { %3452 = vmatmul.mubr.msk.bf16.vlgmr.msra.gmra.mrb[40].mxu1 %vm340_vm3, %v4579_v36 }
 0xe1e   :  { %3467 = vmatprep.mubr.msk.bf16.mxu1 %vm340_vm3, %v4604_v13 }
 0xe21   :  { %3460 = vmatmul.mubr.msk.bf16.vlgmr.msra.gmra.mrb[56].mxu0 %vm340_vm3, %v4587_v55 }
 0xe22   :  { %3475 = vmatprep.mubr.msk.bf16.mxu0 %vm340_vm3, %v4612_v1 }
 0xe6f   :  { %v1882_v61 = vpop.permute.xlu1 %1881 }
 0xe70   :  { %v1892_v29 = vsel %vm340_vm3, %v1882_v61, 0  ;;  %3587 = vmatprep.subr.msk.bf16.mxu1 %vm340_vm3, %v1882_v61 }
 0xe71   :  { %3464 = vmatpush3.bf16.xpose.msra.mxu1 %v1892_v29 }
 0xe75   :  { %v1884_v59 = vpop.permute.xlu1 %1883 }
 0xe76   :  { %v1895_v34 = vsel %vm340_vm3, %v1884_v59, 0  ;;  %3588 = vmatprep.subr.msk.bf16.mxu1 %vm340_vm3, %v1884_v59 }
 0xe79   :  { %3466 = vmatpush3.bf16.xpose.msra.mxu1 %v1895_v34 }
 0xe7d   :  { %v1951_v57 = vpop.permute.xlu0 %1950 }
 0xe7e   :  { %v1961_v28 = vsel %vm340_vm3, %v1951_v57, 0  ;;  %3589 = vmatprep.subr.msk.bf16.mxu0 %vm340_vm3, %v1951_v57 }
 0xe7f   :  { %v1953_v40 = vpop.permute.xlu1 %1952  ;;  %3472 = vmatpush3.bf16.xpose.msra.mxu0 %v1961_v28 }
 0xe80   :  { %3468 = vmatmul.mubr.msk.bf16.vlgmr.msra.gmra.mrb[44].mxu1 %vm340_vm3, %v4608_v8  ;;  %3590 = vmatprep.subr.msk.bf16.mxu0 %vm340_vm3, %v1953_v40  ;;  %v1964_v53 = vsel %vm340_vm3, %v1953_v40, 0 }
 0xe87   :  { %3474 = vmatpush3.bf16.xpose.msra.mxu0 %v1964_v53 }
 0xe8e   :  { %3476 = vmatmul.mubr.msk.bf16.vlgmr.msra.gmra.mrb[60].mxu0 %vm340_vm3, %v4614_v10 }
 0xef0   :  { %v3453_v20 = vpop.f32.mrb[40].mxu1 }
 0xef1   :  { %v2016_v37 = vsel %vm129_vm4, %v3453_v20, -1e+30  ;;  %v1797_v14 = vpop.f32.mrb[41].mxu1 }
 0xef2   :  { %v2032_v6 = vsel %vm618_vm5, %v2016_v37, -inf  ;;  %v3454_v63 = vpop.f32.mrb[42].mxu1  ;;  %v2014_v2 = vsel %vm129_vm4, %v1797_v14, -1e+30 }
 0xef3   :  { %2033 = vmax.xlane.f32.xlu0 %v2032_v6  ;;  %v1800_v47 = vpop.f32.mrb[43].mxu1  ;;  %v2026_v0 = vsel %vm618_vm5, %v2014_v2, -inf }
 0xef4   :  { %v2015_v52 = vsel %vm129_vm4, %v1800_v47, -1e+30  ;;  %v3461_v60 = vpop.f32.mrb[56].mxu0 }
 0xef5   :  { %v2029_v54 = vsel %vm618_vm5, %v2015_v52, -inf  ;;  %v1862_v62 = vpop.f32.mrb[57].mxu0  ;;  %v4686_v35 = vsel %vm129_vm4, %v3461_v60, -1e+30 }
 0xef6   :  { %2030 = vmax.xlane.f32.xlu1 %v2029_v54  ;;  %v3462_v50 = vpop.f32.mrb[58].mxu0  ;;  %v4659_v58 = vsel %vm129_vm4, %v1862_v62, -1e+30  ;;  %v2041_v27 = vsel %vm618_vm5, %v4686_v35, -inf }
 0xef7   :  { %2027 = vmax.xlane.f32.xlu0 %v2026_v0  ;;  %v1865_v3 = vpop.f32.mrb[59].mxu0  ;;  %v2035_v23 = vsel %vm618_vm5, %v4659_v58, -inf }
 0xef8   :  { %v2018_v7 = vsel %vm129_vm4, %v1865_v3, -1e+30 }
 0xef9   :  { %v2038_v19 = vsel %vm618_vm5, %v2018_v7, -inf }
 0xefa   :  { %2039 = vmax.xlane.f32.xlu1 %v2038_v19 }
 0xefb   :  { %2036 = vmax.xlane.f32.xlu0 %v2035_v23 }
 0xf53   :  { %v3469_v22 = vpop.f32.mrb[44].mxu1 }
 0xf54   :  { %v4668_v11 = vsel %vm129_vm4, %v3469_v22, -1e+30  ;;  %v1931_v18 = vpop.f32.mrb[45].mxu1 }
 0xf55   :  { %v2050_v44 = vsel %vm618_vm5, %v4668_v11, -inf  ;;  %v4674_v9 = vsel %vm129_vm4, %v1931_v18, -1e+30  ;;  %v3470_v38 = vpop.f32.mrb[46].mxu1 }
 0xf56   :  { %v2044_v5 = vsel %vm618_vm5, %v4674_v9, -inf  ;;  %v1934_v33 = vpop.f32.mrb[47].mxu1  ;;  %2051 = vmax.xlane.f32.xlu1 %v2050_v44 }
 0xf57   :  { %v4680_v49 = vsel %vm129_vm4, %v1934_v33, -1e+30  ;;  %2045 = vmax.xlane.f32.xlu0 %v2044_v5 }
 0xf58   :  { %v2047_v25 = vsel %vm618_vm5, %v4680_v49, -inf }
 0xf5b   :  { %2048 = vmax.xlane.f32.xlu0 %v2047_v25 }
 0xf5f   :  { %2042 = vmax.xlane.f32.xlu0 %v2041_v27 }
 0xf61   :  { %v3477_v30 = vpop.f32.mrb[60].mxu0 }
 0xf62   :  { %v2000_v17 = vpop.f32.mrb[61].mxu0  ;;  %v4698_v34 = vsel %vm129_vm4, %v3477_v30, -1e+30 }
 0xf63   :  { %v4692_v39 = vsel %vm129_vm4, %v2000_v17, -1e+30  ;;  %v3478_v61 = vpop.f32.mrb[62].mxu0  ;;  %v2059_v40 = vsel %vm618_vm5, %v4698_v34, -inf }
 0xf64   :  { %v2053_v29 = vsel %vm618_vm5, %v4692_v39, -inf  ;;  %v2003_v59 = vpop.f32.mrb[63].mxu0 }
 0xf65   :  { %v4702_v57 = vsel %vm129_vm4, %v2003_v59, -1e+30  ;;  %2054 = vmax.xlane.f32.xlu1 %v2053_v29 }
 0xf66   :  { %v2056_v28 = vsel %vm618_vm5, %v4702_v57, -inf }
 0xf67   :  { %2057 = vmax.xlane.f32.xlu0 %v2056_v28 }
 0xf69   :  { %2060 = vmax.xlane.f32.xlu1 %v2059_v40 }
 0xf7a   :  { %2168 = vrot.lane.b32.xlu1 %v4579_v36, %s3844_s14 }
 0xf7d   :  { %2166 = vrot.lane.b32.xlu0 %v4572_v16, %s3844_s14 }
 0xf7e   :  { %2290 = vrot.lane.b32.xlu1 %v4604_v13, %s3844_s14 }
 0xf80   :  { %v2034_v42 = vpop.xlane.xlu0 %2033 }
 0xf81   :  { %2292 = vrot.lane.b32.xlu0 %v4608_v8, %s3844_s14  ;;  %v2064_v53 = vsub.f32 %v2016_v37, %v2034_v42 }
 0xf82   :  { %2228 = vrot.lane.b32.xlu1 %v4592_v12, %s3844_s14 }
 0xf83   :  { %v2078_v14 = vmul.f32 1.442695, %v2064_v53  ;;  %v2031_v6 = vpop.xlane.xlu1 %2030 }
 0xf84   :  { %v2028_v20 = vpop.xlane.xlu0 %2027  ;;  %v2063_v63 = vsub.f32 %v2015_v52, %v2031_v6 }
 0xf85   :  { %v2062_v36 = vsub.f32 %v2014_v2, %v2028_v20  ;;  %3757 = vpow2.f32 %v2078_v14 }
 0xf86   :  { %2230 = vrot.lane.b32.xlu1 %v4587_v55, %s3844_s14  ;;  %v2076_v13 = vmul.f32 1.442695, %v2063_v63 }
 0xf87   :  { %v2074_v16 = vmul.f32 1.442695, %v2062_v36  ;;  %v2040_v47 = vpop.xlane.xlu1 %2039 }
 0xf88   :  { %v2066_v60 = vsub.f32 %v2018_v7, %v2040_v47  ;;  %v2037_v50 = vpop.xlane.xlu0 %2036 }
 0xf89   :  { %3759 = vpow2.f32 %v2074_v16  ;;  %v2065_v38 = vsub.f32 %v4659_v58, %v2037_v50 }
 0xf8a   :  { %3761 = vpow2.f32 %v2076_v13  ;;  %v2082_v12 = vmul.f32 1.442695, %v2066_v60 }
 0xf8b   :  { %v2080_v25 = vmul.f32 1.442695, %v2065_v38 }
 0xf8c   :  { %3763 = vpow2.f32 %v2082_v12 }
 0xf8f   :  { %v4720_v8 = vpop.eup %3757 }
 0xf90   :  { %v2104_v54 = vsel %vm618_vm5, %v4720_v8, 0.0 }
 0xf93   :  { %v4724_v55 = vpop.eup %3759 }
 0xf94   :  { %v2098_v37 = vsel %vm618_vm5, %v4724_v55, 0.0  ;;  %v4728_v2 = vpop.eup %3761 }
 0xf95   :  { %v2101_v52 = vsel %vm618_vm5, %v4728_v2, 0.0 }
 0xf96   :  { %v4732_v62 = vpop.eup %3763 }
 0xf97   :  { %v2110_v0 = vsel %vm618_vm5, %v4732_v62, 0.0 }
 0xfa0   :  { %2105 = vadd.xlane.f32.xlu0 %v2104_v54 }
 0xfa4   :  { %2099 = vadd.xlane.f32.xlu0 %v2098_v37 }
 0xfaa   :  { %2102 = vadd.xlane.f32.xlu1 %v2101_v52 }
 0xfae   :  { %2111 = vadd.xlane.f32.xlu1 %v2110_v0 }
 0xfe3   :  { %v2052_v3 = vpop.xlane.xlu1 %2051 }
 0xfe4   :  { %v2070_v7 = vsub.f32 %v4668_v11, %v2052_v3  ;;  %v2046_v19 = vpop.xlane.xlu0 %2045 }
 0xfe5   :  { %v2068_v23 = vsub.f32 %v4674_v9, %v2046_v19 }
 0xfe6   :  { %v2090_v22 = vmul.f32 1.442695, %v2070_v7 }
 0xfe7   :  { %v2086_v18 = vmul.f32 1.442695, %v2068_v23 }
 0xfe8   :  { %3765 = vpow2.f32 %v2090_v22  ;;  %v2049_v44 = vpop.xlane.xlu0 %2048 }
 0xfe9   :  { %3767 = vpow2.f32 %v2086_v18  ;;  %v2069_v27 = vsub.f32 %v4680_v49, %v2049_v44 }
 0xfeb   :  { %v2088_v9 = vmul.f32 1.442695, %v2069_v27 }
 0xfec   :  { %v2043_v5 = vpop.xlane.xlu0 %2042 }
 0xfed   :  { %v2067_v33 = vsub.f32 %v4686_v35, %v2043_v5 }
 0xfef   :  { %v2084_v30 = vmul.f32 1.442695, %v2067_v33 }
 0xff1   :  { %3769 = vpow2.f32 %v2084_v30 }
 0xff2   :  { %v4741_v17 = vpop.eup %3765  ;;  %v2055_v11 = vpop.xlane.xlu1 %2054  ;;  %3771 = vpow2.f32 %v2080_v25 }
 0xff3   :  { %v2122_v61 = vsel %vm618_vm5, %v4741_v17, 0.0  ;;  %v4745_v29 = vpop.eup %3767  ;;  %v2071_v59 = vsub.f32 %v4692_v39, %v2055_v11  ;;  %3773 = vpow2.f32 %v2088_v9 }
 0xff4   :  { %2123 = vadd.xlane.f32.xlu1 %v2122_v61  ;;  %v2058_v58 = vpop.xlane.xlu0 %2057  ;;  %v2116_v42 = vsel %vm618_vm5, %v4745_v29, 0.0 }
 0xff5   :  { %v2072_v35 = vsub.f32 %v4702_v57, %v2058_v58  ;;  %v2092_v20 = vmul.f32 1.442695, %v2071_v59 }
 0xff6   :  { %v2061_v28 = vpop.xlane.xlu1 %2060 }
 0xff7   :  { %v2094_v49 = vmul.f32 1.442695, %v2072_v35  ;;  %v2073_v40 = vsub.f32 %v4698_v34, %v2061_v28 }
 0xff8   :  { %2117 = vadd.xlane.f32.xlu1 %v2116_v42  ;;  %v2167_v53 = vpop.permute.xlu0 %2166 }
 0xff9   :  { %v2096_v14 = vmul.f32 1.442695, %v2073_v40  ;;  %3479 = vmatprep.subr.bf16.mxu1 %v2167_v53  ;;  %3775 = vpow2.f32 %v2094_v49 }
 0xffa   :  { %v2169_v36 = vpop.permute.xlu1 %2168  ;;  %3480 = vmatpush3.bf16.msra.mxu1 %v2167_v53 }
 0xffb   :  { %v4752_v6 = vpop.eup %3769  ;;  %3777 = vpow2.f32 %v2096_v14  ;;  %3591 = vmatprep.subr.msk.bf16.mxu1 %vm770_vm6, %v2169_v36  ;;  %v2178_v57 = vsel %vm770_vm6, %v2169_v36, 0 }
 0xffc   :  { %v2113_v39 = vsel %vm618_vm5, %v4752_v6, 0.0  ;;  %v4757_v34 = vpop.eup %3771  ;;  %3779 = vpow2.f32 %v2092_v20  ;;  %v2293_v19 = vpop.permute.xlu0 %2292 }
 0xffd   :  { %2114 = vadd.xlane.f32.xlu0 %v2113_v39  ;;  %v2107_v63 = vsel %vm618_vm5, %v4757_v34, 0.0  ;;  %v4762_v47 = vpop.eup %3773 }
 0xffe   :  { %v2291_v16 = vpop.permute.xlu1 %2290  ;;  %3482 = vmatpush3.bf16.msra.mxu1 %v2178_v57  ;;  %v2119_v12 = vsel %vm618_vm5, %v4762_v47, 0.0 }
 0xfff   :  { %3495 = vmatprep.subr.bf16.mxu1 %v2291_v16 }
0x1001   :  { %2108 = vadd.xlane.f32.xlu0 %v2107_v63 }
0x1002   :  { %v2229_v13 = vpop.permute.xlu1 %2228 }
0x1003   :  { %3487 = vmatprep.subr.bf16.mxu0 %v2229_v13  ;;  %v4764_v60 = vpop.eup %3775 }
0x1004   :  { %3488 = vmatpush3.bf16.msra.mxu0 %v2229_v13  ;;  %v2128_v3 = vsel %vm618_vm5, %v4764_v60, 0.0 }
0x1005   :  { %v4768_v54 = vpop.eup %3777  ;;  %2120 = vadd.xlane.f32.xlu0 %v2119_v12 }
0x1006   :  { %v2231_v37 = vpop.permute.xlu1 %2230  ;;  %v2131_v52 = vsel %vm618_vm5, %v4768_v54, 0.0  ;;  %v4772_v0 = vpop.eup %3779 }
0x1007   :  { %v2240_v50 = vsel %vm770_vm6, %v2231_v37, 0  ;;  %2132 = vadd.xlane.f32.xlu1 %v2131_v52  ;;  %3592 = vmatprep.subr.msk.bf16.mxu0 %vm770_vm6, %v2231_v37  ;;  %v2125_v7 = vsel %vm618_vm5, %v4772_v0, 0.0 }
0x1008   :  { %3490 = vmatpush3.bf16.msra.mxu0 %v2240_v50 }
0x1009   :  { %2129 = vadd.xlane.f32.xlu0 %v2128_v3 }
0x100b   :  { %2126 = vadd.xlane.f32.xlu1 %v2125_v7 }
0x101c   :  { %2354 = vrot.lane.b32.xlu1 %v4614_v10, %s3844_s14 }
0x101f   :  { %2352 = vrot.lane.b32.xlu0 %v4612_v1, %s3844_s14  ;;  %v2302_v1 = vsel %vm770_vm6, %v2293_v19, 0 }
0x102d   :  { %v2106_v23 = vpop.xlane.xlu0 %2105 }
0x102e   :  { %3781 = vrcp.f32 %v2106_v23 }
0x1031   :  { %v2100_v22 = vpop.xlane.xlu0 %2099 }
0x1032   :  { %3783 = vrcp.f32 %v2100_v22 }
0x1037   :  { %v2103_v18 = vpop.xlane.xlu1 %2102 }
0x1038   :  { %3785 = vrcp.f32 %v2103_v18  ;;  %v3782_v44 = vpop.eup %3781 }
0x1039   :  { %v2148_v33 = vmul.f32 %v3782_v44, %v4720_v8  ;;  %v3652_v44 = vld [vmem:[%s4998_s5 + $0x18] sm:$0xff]  }
0x103b   :  { %v2159_v30 = vpack.c.bf16 %v2148_v33, %v2148_v33  ;;  %v2112_v11 = vpop.xlane.xlu1 %2111 }
0x103c   :  { %v3784_v38 = vpop.eup %3783 }
0x103d   :  { %v2146_v25 = vmul.f32 %v3784_v38, %v4724_v55 }
0x1042   :  { %v3786_v5 = vpop.eup %3785 }
0x1043   :  { %v2147_v27 = vmul.f32 %v3786_v5, %v4728_v2 }
0x1045   :  { %v2158_v10 = vpack.c.bf16 %v2147_v27, %v2146_v25 }
0x1047   :  { %3483 = vmatprep.mubr.msk.bf16.mxu1 %vm618_vm5, %v2158_v10 }
0x1048   :  { %3484 = vmatmul.mubr.msk.bf16.vlgmr.msra.gmra.mrb[48].mxu1 %vm618_vm5, %v2159_v30 }
0x1049   :  { %3496 = vmatpush3.bf16.msra.mxu1 %v2291_v16 }
0x104a   :  { %3593 = vmatprep.subr.msk.bf16.mxu1 %vm770_vm6, %v2293_v19 }
0x104d   :  { %3498 = vmatpush3.bf16.msra.mxu1 %v2302_v1 }
0x104e   :  { %3511 = vmatprep.subr.bf16.mxu1 %v3841_v56 }
0x1081   :  { %v2124_v8 = vpop.xlane.xlu1 %2123 }
0x1085   :  { %v2118_v55 = vpop.xlane.xlu1 %2117 }
0x108a   :  { %v2115_v9 = vpop.xlane.xlu0 %2114 }
0x108b   :  { %3787 = vrcp.f32 %v2115_v9 }
0x108c   :  { %3789 = vrcp.f32 %v2112_v11 }
0x108e   :  { %v2109_v2 = vpop.xlane.xlu0 %2108 }
0x108f   :  { %3791 = vrcp.f32 %v2109_v2 }
0x1090   :  { %3793 = vrcp.f32 %v2124_v8 }
0x1091   :  { %3795 = vrcp.f32 %v2118_v55 }
0x1092   :  { %v2121_v61 = vpop.xlane.xlu0 %2120 }
0x1093   :  { %3797 = vrcp.f32 %v2121_v61 }
0x1094   :  { %v2133_v58 = vpop.xlane.xlu1 %2132 }
0x1095   :  { %v3788_v59 = vpop.eup %3787  ;;  %3799 = vrcp.f32 %v2133_v58 }
0x1096   :  { %v2130_v35 = vpop.xlane.xlu0 %2129  ;;  %v3790_v28 = vpop.eup %3789  ;;  %v2151_v42 = vmul.f32 %v3788_v59, %v4752_v6 }
0x1097   :  { %3801 = vrcp.f32 %v2130_v35  ;;  %v2150_v36 = vmul.f32 %v3790_v28, %v4732_v62 }
0x1098   :  { %v2127_v49 = vpop.xlane.xlu1 %2126  ;;  %v2161_v13 = vpack.c.bf16 %v2151_v42, %v2151_v42 }
0x1099   :  { %v3792_v40 = vpop.eup %3791  ;;  %3803 = vrcp.f32 %v2127_v49 }
0x109a   :  { %v3794_v53 = vpop.eup %3793  ;;  %v2353_v20 = vpop.permute.xlu0 %2352  ;;  %v2149_v14 = vmul.f32 %v3792_v40, %v4757_v34 }
0x109b   :  { %v3796_v39 = vpop.eup %3795  ;;  %3503 = vmatprep.subr.bf16.mxu0 %v2353_v20  ;;  %v2154_v63 = vmul.f32 %v3794_v53, %v4741_v17 }
0x109c   :  { %v2160_v57 = vpack.c.bf16 %v2150_v36, %v2149_v14  ;;  %v2152_v12 = vmul.f32 %v3796_v39, %v4745_v29  ;;  %v2355_v52 = vpop.permute.xlu1 %2354 }
0x109d   :  { %v3798_v16 = vpop.eup %3797  ;;  %v2163_v50 = vpack.c.bf16 %v2154_v63, %v2154_v63  ;;  %v2364_v7 = vsel %vm770_vm6, %v2355_v52, 0 }
0x109e   :  { %3491 = vmatprep.mubr.msk.bf16.mxu0 %vm618_vm5, %v2160_v57  ;;  %v2153_v6 = vmul.f32 %v3798_v16, %v4762_v47 }
0x109f   :  { %3492 = vmatmul.mubr.msk.bf16.vlgmr.msra.gmra.mrb[64].mxu0 %vm618_vm5, %v2161_v13  ;;  %v3800_v37 = vpop.eup %3799 }
0x10a0   :  { %3504 = vmatpush3.bf16.msra.mxu0 %v2353_v20  ;;  %v2162_v34 = vpack.c.bf16 %v2153_v6, %v2152_v12  ;;  %v2157_v3 = vmul.f32 %v3800_v37, %v4768_v54  ;;  %v3651_v54 = vld [vmem:[%s4998_s5 + $0x10] sm:$0xff]  }
0x10a1   :  { %v3802_v62 = vpop.eup %3801  ;;  %3594 = vmatprep.subr.msk.bf16.mxu0 %vm770_vm6, %v2355_v52 }
0x10a2   :  { %3499 = vmatprep.mubr.msk.bf16.mxu1 %vm618_vm5, %v2162_v34  ;;  %v2156_v47 = vmul.f32 %v3802_v62, %v4764_v60  ;;  %v2165_v23 = vpack.c.bf16 %v2157_v3, %v2157_v3 }
0x10a3   :  { %v3804_v17 = vpop.eup %3803  ;;  %3500 = vmatmul.mubr.msk.bf16.vlgmr.msra.gmra.mrb[52].mxu1 %vm618_vm5, %v2163_v50 }
0x10a4   :  { %3506 = vmatpush3.bf16.msra.mxu0 %v2364_v7  ;;  %v2155_v29 = vmul.f32 %v3804_v17, %v4772_v0  ;;  %3515 = vmatprep.mubr.msk.bf16.mxu1 %vm3842_vm2, %v3841_v56 }
0x10a5   :  { %3527 = vmatprep.subr.bf16.mxu0 %v3841_v56  ;;  %3512 = vmatpush3.bf16.msra.mxu1 %v3651_v54 }
0x10a6   :  { %v2164_v19 = vpack.c.bf16 %v2156_v47, %v2155_v29  ;;  %3513 = vmatprep.subr.bf16.mxu1 %v3841_v56 }
0x10a8   :  { %3507 = vmatprep.mubr.msk.bf16.mxu0 %vm618_vm5, %v2164_v19 }
0x10a9   :  { %3508 = vmatmul.mubr.msk.bf16.vlgmr.msra.gmra.mrb[68].mxu0 %vm618_vm5, %v2165_v23  ;;  %3514 = vmatpush3.bf16.msra.mxu1 %v3652_v44 }
0x10aa   :  { %3531 = vmatprep.mubr.msk.bf16.mxu0 %vm3842_vm2, %v3841_v56  ;;  %3543 = vmatprep.subr.bf16.mxu1 %v3841_v56 }
0x111b   :  { %v3485_v60 = vpop.f32.mrb[48].mxu1 }
0x111c   :  { %v2214_v0 = vpop.f32.mrb[49].mxu1 }
0x111d   :  { %v3486_v22 = vpop.f32.mrb[50].mxu1 }
0x111e   :  { %v2217_v18 = vpop.f32.mrb[51].mxu1 }
0x1172   :  { %v3493_v38 = vpop.f32.mrb[64].mxu0 }
0x1173   :  { %v2276_v5 = vpop.f32.mrb[65].mxu0 }
0x1174   :  { %v3494_v33 = vpop.f32.mrb[66].mxu0 }
0x1175   :  { %v2279_v25 = vpop.f32.mrb[67].mxu0 }
0x1176   :  { %v3501_v27 = vpop.f32.mrb[52].mxu1 }
0x1177   :  { %v2338_v10 = vpop.f32.mrb[53].mxu1 }
0x1178   :  { %v3502_v30 = vpop.f32.mrb[54].mxu1 }
0x1179   :  { %v2341_v1 = vpop.f32.mrb[55].mxu1 }
0x117a   :  { %v3617_v11 = vpack.i.bf16 %v2341_v1, %v2338_v10 }
0x117c   :  { %3618 = vrot.lane.b32.xlu0 %v3617_v11, %s3845_s19  ;;  %v3509_v8 = vpop.f32.mrb[68].mxu0 }
0x117d   :  { %v2400_v9 = vpop.f32.mrb[69].mxu0 }
0x117e   :  { %v3622_v55 = vpack.i.bf16 %v2400_v9, %v3501_v27  ;;  %v3510_v2 = vpop.f32.mrb[70].mxu0 }
0x117f   :  { %v2403_v61 = vpop.f32.mrb[71].mxu0 }
0x1180   :  { %v3627_v58 = vpack.i.bf16 %v3509_v8, %v2403_v61  ;;  %3623 = vrot.lane.b32.xlu1 %v3622_v55, %s3845_s19 }
0x1182   :  { %3628 = vrot.lane.b32.xlu0 %v3627_v58, %s3845_s19 }
0x1184   :  { %2465 = vrot.lane.b32.xlu1 %v4568_v24, %s3846_s20 }
0x11ee   :  { %v3619_v59 = vpop.permute.xlu0 %3618 }
0x11ef   :  { %v3621_v35 = vunpack.i.h.bf16 %v3619_v59  ;;  %v3620_v28 = vunpack.i.l.bf16 %v3619_v59 }
0x11f1   :  { %v2439_v49 = vsel %vm340_vm3, %v2217_v18, %v3621_v35  ;;  %v2438_v40 = vsel %vm340_vm3, %v2214_v0, %v3620_v28 }
0x11f2   :  { %v2444_v42 = vpack.c.bf16 %v2439_v49, %v2438_v40  ;;  %v3624_v53 = vpop.permute.xlu1 %3623 }
0x11f3   :  { %v3626_v20 = vunpack.i.h.bf16 %v3624_v53  ;;  %v3625_v14 = vunpack.i.l.bf16 %v3624_v53 }
0x11f4   :  { %3516 = vmatmul.mubr.msk.bf16.vlgmr.msra.gmra.mrb[56].mxu1 %vm131_vm0, %v2444_v42  ;;  %v3629_v36 = vpop.permute.xlu0 %3628 }
0x11f5   :  { %v2441_v39 = vsel %vm340_vm3, %v2276_v5, %v3626_v20  ;;  %v2440_v57 = vsel %vm340_vm3, %v3485_v60, %v3625_v14  ;;  %v3631_v16 = vunpack.i.h.bf16 %v3629_v36  ;;  %v3630_v24 = vunpack.i.l.bf16 %v3629_v36  ;;  %3519 = vmatprep.mubr.msk.bf16.mxu1 %vm3842_vm2, %v3841_v56 }
0x11f6   :  { %v2445_v63 = vpack.c.bf16 %v2441_v39, %v2440_v57  ;;  %v2466_v37 = vpop.permute.xlu1 %2465 }
0x11f7   :  { %v2443_v13 = vsel %vm340_vm3, %v3493_v38, %v3631_v16  ;;  %v2442_v12 = vsel %vm340_vm3, %v2279_v25, %v3630_v24 }
0x11f8   :  { %v2446_v6 = vpack.c.bf16 %v2443_v13, %v2442_v12 }
0x11fc   :  { %3520 = vmatmul.mubr.msk.bf16.gmra.mrb[60].mxu1 %vm131_vm0, %v2445_v63 }
0x11fd   :  { %3523 = vmatprep.mubr.msk.bf16.mxu1 %vm3842_vm2, %v3841_v56 }
0x1204   :  { %3524 = vmatmul.mubr.msk.bf16.gmra.mrb[64].mxu1 %vm131_vm0, %v2446_v6 }
0x1205   :  { %3559 = vmatprep.mubr.msk.bf16.mxu1 %vm3842_vm2, %v3841_v56 }
0x12c7   :  { %v2511_v52 = vpop.f32.mrb[56].mxu1 }
0x12c8   :  { %v2512_v34 = vadd.f32 %v2511_v52, %v2466_v37  ;;  %v3517_v62 = vpop.f32.mrb[57].mxu1 }
0x12c9   :  { %v2514_v50 = vpop.f32.mrb[58].mxu1 }
0x12ca   :  { %v4843_v17 = vadd.f32 %v2512_v34, %v4436_v21  ;;  %v2515_v3 = vadd.f32 %v2514_v50, %v2466_v37  ;;  %v3518_v7 = vpop.f32.mrb[59].mxu1  ;;  %v3653_v50 = vld [vmem:[%s4999_s6 + $0x10] sm:$0xff]  }
0x12cb   :  { %3528 = vmatpush3.bf16.msra.mxu0 %v3653_v50  ;;  %v3660_v50 = vld [vmem:[%s5000_s7 + $0x68] sm:$0xff]  }
0x12cc   :  { %v4846_v29 = vadd.f32 %v2515_v3, %v4439_v4  ;;  %v2540_v47 = vsel %vm131_vm0, %v4843_v17, 0.0  ;;  %3529 = vmatprep.subr.bf16.mxu0 %v3841_v56  ;;  %v3654_v3 = vld [vmem:[%s4999_s6 + $0x18] sm:$0xff]  }
0x12cd   :  { %2541 = vadd.xlane.f32.xlu0 %v2540_v47 }
0x12ce   :  { %v2543_v19 = vsel %vm131_vm0, %v4846_v29, 0.0 }
0x12cf   :  { %2544 = vadd.xlane.f32.xlu1 %v2543_v19  ;;  %v2519_v23 = vpop.f32.mrb[60].mxu1  ;;  %3530 = vmatpush3.bf16.msra.mxu0 %v3654_v3  ;;  %v3661_v3 = vld [vmem:[%s5000_s7 + $0x70] sm:$0xff]  }
0x12d0   :  { %v2520_v54 = vadd.f32 %v2519_v23, %v2466_v37  ;;  %v3521_v60 = vpop.f32.mrb[61].mxu1 }
0x12d1   :  { %v2522_v0 = vpop.f32.mrb[62].mxu1 }
0x12d2   :  { %v2536_v21 = vadd.f32 %v2520_v54, %v4446_v46  ;;  %v2523_v22 = vadd.f32 %v2522_v0, %v2466_v37  ;;  %v3522_v18 = vpop.f32.mrb[63].mxu1 }
0x12d4   :  { %v4854_v44 = vadd.f32 %v2523_v22, %v4449_v43  ;;  %v2546_v4 = vsel %vm131_vm0, %v2536_v21, 0.0 }
0x12d5   :  { %2547 = vadd.xlane.f32.xlu0 %v2546_v4 }
0x12d6   :  { %v2549_v25 = vsel %vm131_vm0, %v4854_v44, 0.0 }
0x12d7   :  { %v2527_v38 = vpop.f32.mrb[64].mxu1 }
0x12d8   :  { %v2528_v5 = vadd.f32 %v2527_v38, %v2466_v37  ;;  %v3525_v33 = vpop.f32.mrb[65].mxu1 }
0x12d9   :  { %2550 = vadd.xlane.f32.xlu0 %v2549_v25  ;;  %v2530_v27 = vpop.f32.mrb[66].mxu1 }
0x12da   :  { %v4860_v10 = vadd.f32 %v2528_v5, %v4456_v15  ;;  %v2531_v46 = vadd.f32 %v2530_v27, %v2466_v37  ;;  %v3526_v30 = vpop.f32.mrb[67].mxu1 }
0x12dc   :  { %v2539_v1 = vadd.f32 %v2531_v46, %v4459_v41  ;;  %v2552_v43 = vsel %vm131_vm0, %v4860_v10, 0.0 }
0x12dd   :  { %2553 = vadd.xlane.f32.xlu0 %v2552_v43 }
0x12de   :  { %v2555_v11 = vsel %vm131_vm0, %v2539_v1, 0.0 }
0x12df   :  { %2556 = vadd.xlane.f32.xlu1 %v2555_v11 }
0x135a   :  { %v2542_v8 = vpop.xlane.xlu0 %2541 }
0x135b   :  { %v2558_v9 = vmul.f32 0.03125, %v2542_v8 }
0x135c   :  { %v2545_v55 = vpop.xlane.xlu1 %2544 }
0x135d   :  { %v2564_v2 = vsub.f32 %v4843_v17, %v2558_v9  ;;  %v2559_v61 = vmul.f32 0.03125, %v2545_v55 }
0x135f   :  { %v2565_v15 = vsub.f32 %v4846_v29, %v2559_v61  ;;  %v2570_v58 = vmul.f32 %v2564_v2, %v2564_v2 }
0x1361   :  { %v2576_v59 = vsel %vm131_vm0, %v2570_v58, 0.0  ;;  %v2571_v35 = vmul.f32 %v2565_v15, %v2565_v15 }
0x1362   :  { %v2548_v41 = vpop.xlane.xlu0 %2547  ;;  %2577 = vadd.xlane.f32.xlu0 %v2576_v59 }
0x1363   :  { %v2560_v28 = vmul.f32 0.03125, %v2548_v41  ;;  %v2579_v49 = vsel %vm131_vm0, %v2571_v35, 0.0 }
0x1364   :  { %2580 = vadd.xlane.f32.xlu1 %v2579_v49 }
0x1365   :  { %v4870_v40 = vsub.f32 %v2536_v21, %v2560_v28 }
0x1366   :  { %v2551_v42 = vpop.xlane.xlu0 %2550 }
0x1367   :  { %v2561_v53 = vmul.f32 0.03125, %v2551_v42  ;;  %v2572_v20 = vmul.f32 %v4870_v40, %v4870_v40 }
0x1369   :  { %v4875_v14 = vsub.f32 %v4854_v44, %v2561_v53  ;;  %v2582_v36 = vsel %vm131_vm0, %v2572_v20, 0.0 }
0x136a   :  { %2583 = vadd.xlane.f32.xlu0 %v2582_v36  ;;  %v2554_v39 = vpop.xlane.xlu0 %2553 }
0x136b   :  { %v2562_v57 = vmul.f32 0.03125, %v2554_v39  ;;  %v2573_v16 = vmul.f32 %v4875_v14, %v4875_v14 }
0x136c   :  { %v2557_v24 = vpop.xlane.xlu1 %2556 }
0x136d   :  { %v2568_v63 = vsub.f32 %v4860_v10, %v2562_v57  ;;  %v2563_v13 = vmul.f32 0.03125, %v2557_v24  ;;  %v2585_v12 = vsel %vm131_vm0, %v2573_v16, 0.0 }
0x136e   :  { %2586 = vadd.xlane.f32.xlu1 %v2585_v12 }
0x136f   :  { %v2569_v6 = vsub.f32 %v2539_v1, %v2563_v13  ;;  %v2574_v37 = vmul.f32 %v2568_v63, %v2568_v63 }
0x1371   :  { %v2588_v52 = vsel %vm131_vm0, %v2574_v37, 0.0  ;;  %v2575_v34 = vmul.f32 %v2569_v6, %v2569_v6 }
0x1372   :  { %2589 = vadd.xlane.f32.xlu0 %v2588_v52  ;;  %v3657_v52 = vld [vmem:[%s5000_s7 + $0x50] sm:$0xff]  }
0x1373   :  { %v2591_v62 = vsel %vm131_vm0, %v2575_v34, 0.0  ;;  %v3658_v34 = vld [vmem:[%s5000_s7 + $0x58] sm:$0xff]  }
0x1374   :  { %2592 = vadd.xlane.f32.xlu1 %v2591_v62  ;;  %v3659_v62 = vld [vmem:[%s5000_s7 + $0x60] sm:$0xff]  }
0x1385   :  { %2627 = vrot.lane.b32.xlu1 %v4504_v31, %s3846_s20 }
0x1388   :  { %2618 = vrot.lane.b32.xlu0 %v4504_v31, %s3844_s14 }
0x13ef   :  { %v2578_v7 = vpop.xlane.xlu0 %2577 }
0x13f0   :  { %v2594_v47 = vmul.f32 0.03125, %v2578_v7  ;;  %v3662_v7 = vld [vmem:[%s5000_s7 + $0x78] sm:$0xff]  }
0x13f1   :  { %v2581_v19 = vpop.xlane.xlu1 %2580 }
0x13f2   :  { %v2600_v23 = vadd.f32 1e-06, %v2594_v47  ;;  %v2595_v54 = vmul.f32 0.03125, %v2581_v19  ;;  %v4938_v47 = vld [vmem:[%s4996_s2 + $0x4] sm:$0xf] }
0x13f3   :  { %v2647_v19 = vrot.slane %v4938_v47, %v1238_v48 }
0x13f4   :  { %v2601_v60 = vadd.f32 1e-06, %v2595_v54  ;;  %3805 = vrsqrt.f32 %v2600_v23 }
0x13f6   :  { %3807 = vrsqrt.f32 %v2601_v60 }
0x13f7   :  { %v2584_v0 = vpop.xlane.xlu0 %2583 }
0x13f8   :  { %v2596_v21 = vmul.f32 0.03125, %v2584_v0 }
0x13fa   :  { %v2602_v22 = vadd.f32 1e-06, %v2596_v21 }
0x13fb   :  { %v2587_v18 = vpop.xlane.xlu1 %2586 }
0x13fc   :  { %3809 = vrsqrt.f32 %v2602_v22  ;;  %v2597_v4 = vmul.f32 0.03125, %v2587_v18 }
0x13fe   :  { %v2603_v38 = vadd.f32 1e-06, %v2597_v4  ;;  %v3806_v5 = vpop.eup %3805 }
0x13ff   :  { %v2590_v33 = vpop.xlane.xlu0 %2589  ;;  %v2612_v30 = vmul.f32 %v3806_v5, %v2564_v2 }
0x1400   :  { %v3808_v25 = vpop.eup %3807  ;;  %3811 = vrsqrt.f32 %v2603_v38  ;;  %v2598_v31 = vmul.f32 0.03125, %v2590_v33 }
0x1401   :  { %v2613_v27 = vmul.f32 %v3808_v25, %v2565_v15  ;;  %v2593_v46 = vpop.xlane.xlu1 %2592 }
0x1402   :  { %v2604_v1 = vadd.f32 1e-06, %v2598_v31  ;;  %v2599_v43 = vmul.f32 0.03125, %v2593_v46 }
0x1403   :  { %v2619_v11 = vpop.permute.xlu0 %2618 }
0x1404   :  { %3813 = vrsqrt.f32 %v2604_v1  ;;  %v2605_v8 = vadd.f32 1e-06, %v2599_v43  ;;  %v2621_v9 = vmul.f32 %v2619_v11, %v2612_v30  ;;  %v2622_v55 = vmul.f32 %v2619_v11, %v2613_v27 }
0x1405   :  { %v2628_v61 = vpop.permute.xlu1 %2627 }
0x1406   :  { %v3810_v58 = vpop.eup %3809  ;;  %3815 = vrsqrt.f32 %v2605_v8  ;;  %v2630_v59 = vadd.f32 %v2628_v61, %v2621_v9  ;;  %v2631_v35 = vadd.f32 %v2628_v61, %v2622_v55 }
0x1407   :  { %v2614_v41 = vmul.f32 %v3810_v58, %v4870_v40 }
0x1408   :  { %v2636_v28 = vpack.c.bf16 %v2631_v35, %v2630_v59 }
0x1409   :  { %v2623_v15 = vmul.f32 %v2619_v11, %v2614_v41 }
0x140a   :  { %v3812_v49 = vpop.eup %3811  ;;  %3532 = vmatmul.mubr.msk.bf16.vlgmr.msra.gmra.mrb[72].mxu0 %vm131_vm0, %v2636_v28 }
0x140b   :  { %v2615_v2 = vmul.f32 %v3812_v49, %v4875_v14  ;;  %3535 = vmatprep.mubr.msk.bf16.mxu0 %vm3842_vm2, %v3841_v56  ;;  %v2632_v36 = vadd.f32 %v2628_v61, %v2623_v15 }
0x140d   :  { %v2624_v42 = vmul.f32 %v2619_v11, %v2615_v2 }
0x140e   :  { %v3814_v53 = vpop.eup %3813 }
0x140f   :  { %v2616_v20 = vmul.f32 %v3814_v53, %v2568_v63  ;;  %v2633_v39 = vadd.f32 %v2628_v61, %v2624_v42  ;;  %v3655_v63 = vld [vmem:[%s5000_s7 + $0x40] sm:$0xff]  }
0x1410   :  { %v3816_v57 = vpop.eup %3815  ;;  %3544 = vmatpush3.bf16.msra.mxu1 %v3655_v63 }
0x1411   :  { %v2617_v16 = vmul.f32 %v3816_v57, %v2569_v6  ;;  %v2637_v24 = vpack.c.bf16 %v2633_v39, %v2632_v36  ;;  %v2625_v40 = vmul.f32 %v2619_v11, %v2616_v20  ;;  %3545 = vmatprep.subr.bf16.mxu1 %v3841_v56  ;;  %v3656_v6 = vld [vmem:[%s5000_s7 + $0x48] sm:$0xff]  }
0x1413   :  { %3536 = vmatmul.mubr.msk.bf16.gmra.mrb[76].mxu0 %vm131_vm0, %v2637_v24  ;;  %v2626_v13 = vmul.f32 %v2619_v11, %v2617_v16  ;;  %v2634_v12 = vadd.f32 %v2628_v61, %v2625_v40 }
0x1414   :  { %3539 = vmatprep.mubr.msk.bf16.mxu0 %vm3842_vm2, %v3841_v56  ;;  %3546 = vmatpush3.bf16.msra.mxu1 %v3656_v6 }
0x1415   :  { %v2635_v14 = vadd.f32 %v2628_v61, %v2626_v13  ;;  %3547 = vmatprep.subr.bf16.mxu1 %v3841_v56 }
0x1417   :  { %v2638_v37 = vpack.c.bf16 %v2635_v14, %v2634_v12 }
0x1418   :  { %3548 = vmatpush3.bf16.msra.mxu1 %v3657_v52 }
0x1419   :  { %3549 = vmatprep.subr.bf16.mxu1 %v3841_v56 }
0x141b   :  { %3540 = vmatmul.mubr.msk.bf16.gmra.mrb[80].mxu0 %vm131_vm0, %v2638_v37 }
0x141c   :  { %3550 = vmatpush3.bf16.msra.mxu1 %v3658_v34 }
0x141d   :  { %3551 = vmatprep.subr.bf16.mxu1 %v3841_v56 }
0x1420   :  { %3552 = vmatpush3.bf16.msra.mxu1 %v3659_v62 }
0x1421   :  { %3553 = vmatprep.subr.bf16.mxu1 %v3841_v56 }
0x1424   :  { %3554 = vmatpush3.bf16.msra.mxu1 %v3660_v50 }
0x1425   :  { %3555 = vmatprep.subr.bf16.mxu1 %v3841_v56 }
0x1428   :  { %3556 = vmatpush3.bf16.msra.mxu1 %v3661_v3 }
0x1429   :  { %3557 = vmatprep.subr.bf16.mxu1 %v3841_v56 }
0x142c   :  { %3558 = vmatpush3.bf16.msra.mxu1 %v3662_v7 }
0x14dd   :  { %v2703_v23 = vpop.f32.mrb[72].mxu0 }
0x14de   :  { %v2704_v54 = vadd.f32 %v2703_v23, %v2647_v19  ;;  %v3533_v60 = vpop.f32.mrb[73].mxu0 }
0x14df   :  { %v2706_v0 = vpop.f32.mrb[74].mxu0 }
0x14e0   :  { %v2726_v21 = vmul.f32 %v2704_v54, %v2704_v54  ;;  %v2707_v22 = vadd.f32 %v2706_v0, %v2647_v19  ;;  %v3534_v18 = vpop.f32.mrb[75].mxu0 }
0x14e2   :  { %v2732_v4 = vmul.f32 %v2726_v21, %v2704_v54  ;;  %v2727_v38 = vmul.f32 %v2707_v22, %v2707_v22 }
0x14e4   :  { %v2738_v5 = vmul.f32 0.044715, %v2732_v4  ;;  %v2733_v33 = vmul.f32 %v2727_v38, %v2707_v22 }
0x14e6   :  { %v2744_v25 = vadd.f32 %v2738_v5, %v2704_v54  ;;  %v2739_v31 = vmul.f32 0.044715, %v2733_v33  ;;  %v2711_v27 = vpop.f32.mrb[76].mxu0 }
0x14e7   :  { %v2712_v46 = vadd.f32 %v2711_v27, %v2647_v19  ;;  %v3537_v30 = vpop.f32.mrb[77].mxu0 }
0x14e8   :  { %v2750_v1 = vmul.f32 0.7978846, %v2744_v25  ;;  %v2745_v43 = vadd.f32 %v2739_v31, %v2707_v22  ;;  %v2714_v11 = vpop.f32.mrb[78].mxu0 }
0x14e9   :  { %v2728_v48 = vmul.f32 %v2712_v46, %v2712_v46  ;;  %v2715_v8 = vadd.f32 %v2714_v11, %v2647_v19  ;;  %v3538_v9 = vpop.f32.mrb[79].mxu0 }
0x14ea   :  { %3817 = vtanh.f32 %v2750_v1  ;;  %v2751_v55 = vmul.f32 0.7978846, %v2745_v43 }
0x14eb   :  { %v2734_v61 = vmul.f32 %v2728_v48, %v2712_v46  ;;  %v2729_v58 = vmul.f32 %v2715_v8, %v2715_v8 }
0x14ec   :  { %3819 = vtanh.f32 %v2751_v55 }
0x14ed   :  { %v2740_v59 = vmul.f32 0.044715, %v2734_v61  ;;  %v2735_v35 = vmul.f32 %v2729_v58, %v2715_v8 }
0x14ee   :  { %v2719_v41 = vpop.f32.mrb[80].mxu0 }
0x14ef   :  { %v2746_v28 = vadd.f32 %v2740_v59, %v2712_v46  ;;  %v2741_v49 = vmul.f32 0.044715, %v2735_v35  ;;  %v2720_v2 = vadd.f32 %v2719_v41, %v2647_v19  ;;  %v3541_v15 = vpop.f32.mrb[81].mxu0 }
0x14f0   :  { %v2722_v42 = vpop.f32.mrb[82].mxu0 }
0x14f1   :  { %v2752_v53 = vmul.f32 0.7978846, %v2746_v28  ;;  %v2747_v20 = vadd.f32 %v2741_v49, %v2715_v8  ;;  %v2730_v36 = vmul.f32 %v2720_v2, %v2720_v2  ;;  %v2723_v39 = vadd.f32 %v2722_v42, %v2647_v19  ;;  %v3542_v57 = vpop.f32.mrb[83].mxu0 }
0x14f3   :  { %3821 = vtanh.f32 %v2752_v53  ;;  %v2753_v16 = vmul.f32 0.7978846, %v2747_v20  ;;  %v2736_v24 = vmul.f32 %v2730_v36, %v2720_v2  ;;  %v2731_v40 = vmul.f32 %v2723_v39, %v2723_v39 }
0x14f4   :  { %v3818_v13 = vpop.eup %3817 }
0x14f5   :  { %v2762_v14 = vadd.f32 1.0, %v3818_v13  ;;  %3823 = vtanh.f32 %v2753_v16  ;;  %v2742_v12 = vmul.f32 0.044715, %v2736_v24  ;;  %v2737_v37 = vmul.f32 %v2731_v40, %v2723_v39 }
0x14f6   :  { %v3820_v63 = vpop.eup %3819 }
0x14f7   :  { %v2768_v6 = vmul.f32 0.5, %v2762_v14  ;;  %v2763_v52 = vadd.f32 1.0, %v3820_v63  ;;  %v2748_v34 = vadd.f32 %v2742_v12, %v2720_v2  ;;  %v2743_v62 = vmul.f32 0.044715, %v2737_v37 }
0x14f9   :  { %v2769_v50 = vmul.f32 0.5, %v2763_v52  ;;  %v2754_v3 = vmul.f32 0.7978846, %v2748_v34  ;;  %v2749_v7 = vadd.f32 %v2743_v62, %v2723_v39  ;;  %v2774_v23 = vmul.f32 %v2768_v6, %v2704_v54 }
0x14fb   :  { %v2775_v19 = vmul.f32 %v2769_v50, %v2707_v22  ;;  %3825 = vtanh.f32 %v2754_v3  ;;  %v2755_v60 = vmul.f32 0.7978846, %v2749_v7 }
0x14fd   :  { %v3822_v0 = vpop.eup %3821  ;;  %v2780_v21 = vpack.c.bf16 %v2775_v19, %v2774_v23  ;;  %3827 = vtanh.f32 %v2755_v60 }
0x14fe   :  { %v2764_v18 = vadd.f32 1.0, %v3822_v0 }
0x14ff   :  { %v3824_v4 = vpop.eup %3823  ;;  %3560 = vmatmul.mubr.bf16.vlgmr.msra.gmra.mrb[68].mxu1 %v2780_v21 }
0x1500   :  { %3563 = vmatprep.mubr.msk.bf16.mxu1 %vm3842_vm2, %v3841_v56  ;;  %v2765_v38 = vadd.f32 1.0, %v3824_v4  ;;  %v2770_v5 = vmul.f32 0.5, %v2764_v18 }
0x1502   :  { %v2771_v33 = vmul.f32 0.5, %v2765_v38  ;;  %v2776_v25 = vmul.f32 %v2770_v5, %v2712_v46  ;;  %v2803_v46 = vrot.slane %v4938_v47, %v1393_v26 }
0x1504   :  { %v2777_v31 = vmul.f32 %v2771_v33, %v2715_v8 }
0x1505   :  { %v3826_v27 = vpop.eup %3825 }
0x1506   :  { %v2781_v30 = vpack.c.bf16 %v2777_v31, %v2776_v25  ;;  %v2766_v54 = vadd.f32 1.0, %v3826_v27 }
0x1507   :  { %v3828_v22 = vpop.eup %3827 }
0x1508   :  { %3564 = vmatmul.mubr.bf16.gmra.mrb[72].mxu1 %v2781_v30  ;;  %v2767_v1 = vadd.f32 1.0, %v3828_v22  ;;  %v2772_v43 = vmul.f32 0.5, %v2766_v54 }
0x1509   :  { %3567 = vmatprep.mubr.msk.bf16.mxu1 %vm3842_vm2, %v3841_v56 }
0x150a   :  { %v2773_v11 = vmul.f32 0.5, %v2767_v1  ;;  %v2778_v48 = vmul.f32 %v2772_v43, %v2720_v2 }
0x150c   :  { %v2779_v9 = vmul.f32 %v2773_v11, %v2723_v39 }
0x150e   :  { %v2782_v55 = vpack.c.bf16 %v2779_v9, %v2778_v48 }
0x1510   :  { %3568 = vmatmul.mubr.bf16.gmra.mrb[76].mxu1 %v2782_v55 }
0x15d2   :  { %v2886_v8 = vpop.f32.mrb[68].mxu1 }
0x15d3   :  { %v2887_v61 = vadd.f32 %v2886_v8, %v2803_v46  ;;  %v3561_v58 = vpop.f32.mrb[69].mxu1 }
0x15d4   :  { %v2889_v59 = vpop.f32.mrb[70].mxu1 }
0x15d5   :  { %v2907_v35 = vadd.f32 %v2887_v61, %v4843_v17  ;;  %v2890_v41 = vadd.f32 %v2889_v59, %v2803_v46  ;;  %v3562_v28 = vpop.f32.mrb[71].mxu1 }
0x15d7   :  { %v2908_v49 = vadd.f32 %v2890_v41, %v4846_v29  ;;  %v2911_v56 = vsel %vm131_vm0, %v2907_v35, 0.0 }
0x15d8   :  { %2912 = vadd.xlane.f32.xlu1 %v2911_v56 }
0x15d9   :  { %v2914_v2 = vsel %vm131_vm0, %v2908_v49, 0.0 }
0x15da   :  { %2915 = vadd.xlane.f32.xlu0 %v2914_v2 }
0x15db   :  { %v2894_v15 = vpop.f32.mrb[72].mxu1 }
0x15dc   :  { %v3565_v51 = vpop.f32.mrb[73].mxu1 }
0x15dd   :  { %v2896_v42 = vpop.f32.mrb[74].mxu1 }
0x15de   :  { %v2897_v26 = vadd.f32 %v2896_v42, %v2803_v46  ;;  %v3566_v47 = vpop.f32.mrb[75].mxu1 }
0x15e0   :  { %v2909_v53 = vadd.f32 %v2897_v26, %v4854_v44 }
0x15e2   :  { %v2917_v20 = vsel %vm131_vm0, %v2909_v53, 0.0 }
0x15e3   :  { %2918 = vadd.xlane.f32.xlu0 %v2917_v20  ;;  %v2901_v17 = vpop.f32.mrb[76].mxu1 }
0x15e4   :  { %v2902_v36 = vadd.f32 %v2901_v17, %v2803_v46  ;;  %v3569_v39 = vpop.f32.mrb[77].mxu1 }
0x15e5   :  { %v2904_v29 = vpop.f32.mrb[78].mxu1 }
0x15e6   :  { %v2910_v57 = vadd.f32 %v2902_v36, %v4860_v10  ;;  %v3570_v16 = vpop.f32.mrb[79].mxu1 }
0x15e8   :  { %v2920_v24 = vsel %vm131_vm0, %v2910_v57, 0.0 }
0x15e9   :  { %2921 = vadd.xlane.f32.xlu1 %v2920_v24 }
0x1665   :  { %v2913_v40 = vpop.xlane.xlu1 %2912 }
0x1666   :  { %v2923_v13 = vmul.f32 0.03125, %v2913_v40 }
0x1667   :  { %v2916_v14 = vpop.xlane.xlu0 %2915 }
0x1668   :  { %v2927_v12 = vsub.f32 %v2907_v35, %v2923_v13  ;;  %v2924_v37 = vmul.f32 0.03125, %v2916_v14 }
0x166a   :  { %v2928_v63 = vsub.f32 %v2908_v49, %v2924_v37  ;;  %v2931_v44 = vmul.f32 %v2927_v12, %v2927_v12 }
0x166c   :  { %v2935_v6 = vsel %vm131_vm0, %v2931_v44, 0.0  ;;  %v2932_v52 = vmul.f32 %v2928_v63, %v2928_v63 }
0x166d   :  { %2936 = vadd.xlane.f32.xlu0 %v2935_v6 }
0x166e   :  { %v2938_v34 = vsel %vm131_vm0, %v2932_v52, 0.0 }
0x166f   :  { %2939 = vadd.xlane.f32.xlu1 %v2938_v34 }
0x1670   :  { %v2919_v62 = vpop.xlane.xlu0 %2918 }
0x1671   :  { %v2925_v10 = vmul.f32 0.03125, %v2919_v62 }
0x1673   :  { %v2929_v50 = vsub.f32 %v2909_v53, %v2925_v10 }
0x1675   :  { %v2933_v3 = vmul.f32 %v2929_v50, %v2929_v50 }
0x1676   :  { %v2922_v7 = vpop.xlane.xlu1 %2921 }
0x1677   :  { %v2926_v23 = vmul.f32 0.03125, %v2922_v7  ;;  %v2941_v19 = vsel %vm131_vm0, %v2933_v3, 0.0 }
0x1678   :  { %2942 = vadd.xlane.f32.xlu0 %v2941_v19 }
0x1679   :  { %v2930_v60 = vsub.f32 %v2910_v57, %v2926_v23 }
0x167b   :  { %v2934_v0 = vmul.f32 %v2930_v60, %v2930_v60 }
0x167d   :  { %v2944_v21 = vsel %vm131_vm0, %v2934_v0, 0.0 }
0x167e   :  { %2945 = vadd.xlane.f32.xlu1 %v2944_v21 }
0x16fa   :  { %v2937_v18 = vpop.xlane.xlu0 %2936 }
0x16fb   :  { %v2947_v4 = vmul.f32 0.03125, %v2937_v18 }
0x16fc   :  { %v2940_v38 = vpop.xlane.xlu1 %2939 }
0x16fd   :  { %v2951_v5 = vadd.f32 1e-06, %v2947_v4  ;;  %v2948_v33 = vmul.f32 0.03125, %v2940_v38 }
0x16ff   :  { %3829 = vrsqrt.f32 %v2951_v5  ;;  %v2952_v25 = vadd.f32 1e-06, %v2948_v33 }
0x1701   :  { %3831 = vrsqrt.f32 %v2952_v25 }
0x1705   :  { %v2943_v31 = vpop.xlane.xlu0 %2942 }
0x1706   :  { %v2949_v27 = vmul.f32 0.03125, %v2943_v31 }
0x1708   :  { %v2953_v30 = vadd.f32 1e-06, %v2949_v27 }
0x1709   :  { %v3830_v54 = vpop.eup %3829 }
0x170a   :  { %v2959_v22 = vmul.f32 %v3830_v54, %v2927_v12  ;;  %3833 = vrsqrt.f32 %v2953_v30 }
0x170b   :  { %v3832_v1 = vpop.eup %3831  ;;  %v2946_v43 = vpop.xlane.xlu1 %2945 }
0x170c   :  { %v2963_v11 = vmul.f32 %v2959_v22, %v4519_v32  ;;  %v2960_v48 = vmul.f32 %v3832_v1, %v2928_v63  ;;  %v2950_v9 = vmul.f32 0.03125, %v2946_v43 }
0x170e   :  { %v2967_v55 = vadd.f32 %v2963_v11, %v4522_v45  ;;  %v2964_v46 = vmul.f32 %v2960_v48, %v4519_v32  ;;  %v2954_v8 = vadd.f32 1e-06, %v2950_v9 }
0x1710   :  { %3144 = vst.msk [vmem:[%s5001_s8 + $0x20] sm:$0xff] %vm131_vm0, %v2967_v55  ;;  %v2968_v61 = vadd.f32 %v2964_v46, %v4522_v45  ;;  %3835 = vrsqrt.f32 %v2954_v8  ;;  %v2976_v59 = vsel %vm131_vm0, %v2967_v55, 0.0 }
0x1712   :  { %3145 = vst.msk [vmem:[%s5001_s8 + $0x28] sm:$0xff] %vm131_vm0, %v2968_v61  ;;  %v2977_v58 = vsel %vm131_vm0, %v2968_v61, 0.0 }
0x1713   :  { %v2978_v41 = vadd.f32 %v2977_v58, %v2976_v59 }
0x1714   :  { %v3834_v35 = vpop.eup %3833 }
0x1715   :  { %v2961_v28 = vmul.f32 %v3834_v35, %v2929_v50  ;;  %v2979_v56 = vrot.slane %v2978_v41, 4 }
0x1717   :  { %v2965_v49 = vmul.f32 %v2961_v28, %v4519_v32  ;;  %v2980_v42 = vadd.f32 %v2979_v56, %v2978_v41 }
0x1719   :  { %v2969_v2 = vadd.f32 %v2965_v49, %v4522_v45  ;;  %v2981_v53 = vrot.slane %v2980_v42, 2 }
0x171a   :  { %v3836_v15 = vpop.eup %3835 }
0x171b   :  { %3146 = vst.msk [vmem:[%s5001_s8 + $0x30] sm:$0xff] %vm131_vm0, %v2969_v2  ;;  %v2962_v51 = vmul.f32 %v3836_v15, %v2930_v60  ;;  %v2985_v20 = vsel %vm131_vm0, %v2969_v2, 0.0  ;;  %v2982_v39 = vadd.f32 %v2981_v53, %v2980_v42 }
0x171d   :  { %v2966_v26 = vmul.f32 %v2962_v51, %v4519_v32  ;;  %v2983_v16 = vrot.slane %v2982_v39, 1 }
0x171f   :  { %v2970_v47 = vadd.f32 %v2966_v26, %v4522_v45  ;;  %v2984_v32 = vadd.f32 %v2983_v16, %v2982_v39 }
0x1721   :  { %3147 = vst.msk [vmem:[%s5001_s8 + $0x38] sm:$0xff] %vm131_vm0, %v2970_v47  ;;  %v2986_v17 = vsel %vm131_vm0, %v2970_v47, 0.0  ;;  %v2995_v14 = vmul.f32 0.0625, %v2984_v32 }
0x1722   :  { %v2987_v36 = vadd.f32 %v2986_v17, %v2985_v20 }
0x1724   :  { %v2988_v29 = vrot.slane %v2987_v36, 4 }
0x1726   :  { %v2989_v57 = vadd.f32 %v2988_v29, %v2987_v36 }
0x1728   :  { %v2990_v24 = vrot.slane %v2989_v57, 2 }
0x172a   :  { %v2991_v40 = vadd.f32 %v2990_v24, %v2989_v57 }
0x172c   :  { %v2992_v13 = vrot.slane %v2991_v40, 1 }
0x172e   :  { %v2993_v45 = vadd.f32 %v2992_v13, %v2991_v40 }
0x1730   :  { %v2996_v12 = vmul.f32 0.0625, %v2993_v45 }
0x1732   :  { %v3000_v37 = vsel %vm2999_vm7, %v2996_v12, %v2995_v14 }
0x1733   :  { %3003 = vst.msk [vmem:[%s5002_s9] sm:$0x3] %vm3002_vm8, %v3000_v37 }

</bundles_post_ra>
